<compile_context>
chip_gen: v6e
topology: v6e:2x2x1
jax: 0.10.0
libtpu: 0.0.40
codegen_flags: <defaults>
</compile_context>

<pallas_src>
import functools

import jax
import jax.numpy as jnp
from jax.experimental import pallas as pl
from jax.experimental.pallas import tpu as pltpu


def attention_kernel(x_ref, gamma_ref, beta_ref, wqkv_ref, wo_ref, o_ref, *,
                     heads, dim_head, eps, approx_recip):
    # x_ref:     (1, N, D)      bf16  (streamed activation)
    # gamma_ref: (1, D)         f32
    # beta_ref:  (1, D)         f32
    # wqkv_ref:  (D, 3*inner)   bf16  columns [q | k | v], scale folded into q
    # wo_ref:    (inner, D)     bf16
    # o_ref:     (1, N, D)      f32
    inner = heads * dim_head

    # ----- LayerNorm (f32 statistics, biased variance, eps inside rsqrt) -----
    x = x_ref[0].astype(jnp.float32)                       # (N, D)
    mean = jnp.mean(x, axis=-1, keepdims=True)
    xc = x - mean
    var = jnp.mean(xc * xc, axis=-1, keepdims=True)
    y = xc * jax.lax.rsqrt(var + eps)
    y = y * gamma_ref[...] + beta_ref[...]                 # broadcasts (1, D)

    # ----- fused QKV projection: one wide matmul, f32 accumulation -----
    qkv = jnp.dot(y.astype(jnp.bfloat16), wqkv_ref[...],
                  preferred_element_type=jnp.float32)      # (N, 3*inner)
    qkv = qkv.astype(jnp.bfloat16)

    # ----- per-head scaled-dot-product attention (scale already in Wq) -----
    ctx_parts = []
    for h in range(heads):
        lo = h * dim_head
        qh = qkv[:, lo:lo + dim_head]                            # (N, dh)
        kh = qkv[:, inner + lo:inner + lo + dim_head]            # (N, dh)
        vh = qkv[:, 2 * inner + lo:2 * inner + lo + dim_head]    # (N, dh)

        s = jnp.einsum('qd,kd->qk', qh, kh,
                       preferred_element_type=jnp.float32)       # (N, N) f32
        m = jnp.max(s, axis=-1, keepdims=True)
        e = jnp.exp(s - m)
        den = jnp.sum(e, axis=-1, keepdims=True)
        if approx_recip:
            p = e * pl.reciprocal(den, approx=True)              # EUP slot
        else:
            p = e / den
        ctx_h = jnp.dot(p.astype(jnp.bfloat16), vh,
                        preferred_element_type=jnp.float32)      # (N, dh)
        ctx_parts.append(ctx_h.astype(jnp.bfloat16))

    # ----- output projection: single full-depth (N, inner) x (inner, D) -----
    ctx = jnp.concatenate(ctx_parts, axis=-1)                    # (N, inner)
    out = jnp.dot(ctx, wo_ref[...], preferred_element_type=jnp.float32)
    o_ref[0] = out.astype(o_ref.dtype)                           # lane-dense store


def attention_forward(x, gamma, beta, w_qkv, w_out, *, heads, dim_head,
                      eps=1e-5, approx_recip=True):
    """x: (B, N, D).  w_qkv: (3*inner, D), w_out: (D, inner) (PyTorch Linear layout)."""
    B, N, D = x.shape
    inner = heads * dim_head
    assert w_qkv.shape == (3 * inner, D)
    assert w_out.shape == (D, inner)
    scale = dim_head ** (-0.5)

    # Weight prep (wrapper glue, not hot path): fuse q|k|v into one (D, 3*inner)
    # matrix, fold the attention scale into the q columns, cast MXU operands to
    # bf16.  Layout matches PyTorch: qkv = x @ W_qkv.T, chunk(3) along columns,
    # head h occupies columns [h*dh, (h+1)*dh) of its chunk.
    wqkv = jnp.asarray(w_qkv, jnp.float32).T                      # (D, 3*inner)
    wqkv = wqkv.at[:, :inner].multiply(scale)
    wqkv = wqkv.astype(jnp.bfloat16)
    wo = jnp.asarray(w_out, jnp.float32).T.astype(jnp.bfloat16)   # (inner, D)

    gamma2 = jnp.asarray(gamma, jnp.float32).reshape(1, D)
    beta2 = jnp.asarray(beta, jnp.float32).reshape(1, D)
    x_bf16 = jnp.asarray(x, jnp.bfloat16)                         # halve streamed DMA

    kernel = functools.partial(attention_kernel, heads=heads, dim_head=dim_head,
                               eps=eps, approx_recip=approx_recip)

    # Rough per-step VMEM footprint (double-buffered I/O + weights + live
    # activations) -> explicit scoped-VMEM limit with headroom.
    bytes_io = 2 * (N * D * 2) + 2 * (N * D * 4)                  # x bf16 + o f32
    bytes_w = 2 * (D * 3 * inner * 2 + inner * D * 2)             # fused weights
    bytes_act = (3 * N * D * 4                                    # x_f32, xc, y
                 + N * 3 * inner * (4 + 2)                        # qkv f32 + bf16
                 + 3 * N * N * 4                                  # s, e, p (one head)
                 + 2 * N * inner * 2)                             # ctx parts + concat
    vmem_limit = int(min(100 * 2 ** 20,
                         max(32 * 2 ** 20, 2 * (bytes_io + bytes_w + bytes_act))))

    flops = B * (2 * N * D * 3 * inner                            # qkv projection
                 + heads * 2 * 2 * N * N * dim_head               # scores + ctx
                 + 2 * N * inner * D)                             # out projection
    transcendentals = B * heads * N * N                           # softmax exp
    bytes_accessed = (B * N * D * 2 + B * N * D * 4
                      + D * 3 * inner * 2 + inner * D * 2 + 2 * D * 4)

    return pl.pallas_call(
        kernel,
        out_shape=jax.ShapeDtypeStruct((B, N, D), jnp.float32),
        grid_spec=pltpu.PrefetchScalarGridSpec(
            num_scalar_prefetch=0,
            grid=(B,),
            in_specs=[
                pl.BlockSpec((1, N, D), lambda b: (b, 0, 0)),
                pl.BlockSpec((1, D), lambda b: (0, 0)),
                pl.BlockSpec((1, D), lambda b: (0, 0)),
                pl.BlockSpec((D, 3 * inner), lambda b: (0, 0)),
                pl.BlockSpec((inner, D), lambda b: (0, 0)),
            ],
            out_specs=pl.BlockSpec((1, N, D), lambda b: (b, 0, 0)),
        ),
        compiler_params=pltpu.CompilerParams(
            dimension_semantics=("parallel",),
            vmem_limit_bytes=vmem_limit,
        ),
        cost_estimate=pl.CostEstimate(
            flops=flops,
            transcendentals=transcendentals,
            bytes_accessed=bytes_accessed,
        ),
    )(x_bf16, gamma2, beta2, wqkv, wo)


def attention_reference(x, gamma, beta, w_qkv, w_out, *, heads, dim_head, eps=1e-5):
    """Pure-JAX f32 reference mirroring the PyTorch forward, for validation."""
    B, N, D = x.shape
    inner = heads * dim_head
    mean = jnp.mean(x, axis=-1, keepdims=True)
    var = jnp.mean((x - mean) ** 2, axis=-1, keepdims=True)
    y = (x - mean) / jnp.sqrt(var + eps) * gamma + beta
    qkv = y @ w_qkv.T                                             # (B, N, 3*inner)
    q, k, v = jnp.split(qkv, 3, axis=-1)

    def to_heads(t):  # 'b n (h d) -> b h n d'
        return t.reshape(B, N, heads, dim_head).transpose(0, 2, 1, 3)

    q, k, v = map(to_heads, (q, k, v))
    dots = jnp.einsum("bhnd,bhmd->bhnm", q, k) * (dim_head ** (-0.5))
    attn = jax.nn.softmax(dots, axis=-1)
    out = jnp.einsum("bhnm,bhmd->bhnd", attn, v)
    out = out.transpose(0, 2, 1, 3).reshape(B, N, inner)          # 'b h n d -> b n (h d)'
    return out @ w_out.T


if __name__ == "__main__":
    # Small, TPU-friendly shapes consistent with the module (dim and inner are
    # multiples of 128 so the in-kernel qkv/ctx/output slabs are lane-dense).
    B, N, D = 2, 128, 128
    heads, dim_head = 4, 64
    inner = heads * dim_head

    key = jax.random.PRNGKey(0)
    kx, kq, ko, kg, kb = jax.random.split(key, 5)

    x = jax.random.normal(kx, (B, N, D), dtype=jnp.float32)
    # Deterministic synthetic parameters (PyTorch Linear layout: (out, in)).
    w_qkv = jax.random.normal(kq, (3 * inner, D), dtype=jnp.float32) * 0.05
    w_out = jax.random.normal(ko, (D, inner), dtype=jnp.float32) * 0.05
    gamma = 1.0 + 0.1 * jax.random.normal(kg, (D,), dtype=jnp.float32)
    beta = 0.1 * jax.random.normal(kb, (D,), dtype=jnp.float32)

    out = attention_forward(x, gamma, beta, w_qkv, w_out,
                            heads=heads, dim_head=dim_head)
    out = jax.block_until_ready(out)

    ref = attention_reference(x, gamma, beta, w_qkv, w_out,
                              heads=heads, dim_head=dim_head)
    assert out.shape == (B, N, D)
    # bf16 streamed input + bf16 matmul operands + approx reciprocal -> loosened
    # tolerance vs. the f32 reference (standard flash-attention-style trade-off).
    max_err = float(jnp.max(jnp.abs(out - ref)))
    assert jnp.allclose(out, ref, atol=3e-2, rtol=3e-2), max_err

    print("KERNEL_OK")
</pallas_src>

<mosaic_0001>
module attributes {stable_mosaic.version = 11 : i64} {
  func.func @attention_kernel(%arg0: i32, %arg1: memref<1x128x128xbf16, #tpu.memory_space<vmem>>, %arg2: memref<1x128xf32, #tpu.memory_space<vmem>>, %arg3: memref<1x128xf32, #tpu.memory_space<vmem>>, %arg4: memref<128x768xbf16, #tpu.memory_space<vmem>>, %arg5: memref<256x128xbf16, #tpu.memory_space<vmem>>, %arg6: memref<1x128x128xf32, #tpu.memory_space<vmem>>) attributes {dimension_semantics = [#tpu.dimension_semantics<parallel>], iteration_bounds = array<i64: 2>, scalar_prefetch = 0 : i64, scratch_operands = 0 : i64, tpu.core_type = #tpu.core_type<tc>, window_params = [{transform_indices = @transform_0, window_bounds = array<i64: 1, 128, 128>}, {pipeline_mode = #tpu.pipeline_mode<synchronous>, transform_indices = @transform_1, window_bounds = array<i64: 1, 128>}, {pipeline_mode = #tpu.pipeline_mode<synchronous>, transform_indices = @transform_2, window_bounds = array<i64: 1, 128>}, {pipeline_mode = #tpu.pipeline_mode<synchronous>, transform_indices = @transform_3, window_bounds = array<i64: 128, 768>}, {pipeline_mode = #tpu.pipeline_mode<synchronous>, transform_indices = @transform_4, window_bounds = array<i64: 256, 128>}, {transform_indices = @transform_5, window_bounds = array<i64: 1, 128, 128>}]} {
    %c0 = arith.constant 0 : index
    %c0_0 = arith.constant 0 : index
    %c0_1 = arith.constant 0 : index
    %0 = vector.load %arg1[%c0, %c0_0, %c0_1] : memref<1x128x128xbf16, #tpu.memory_space<vmem>>, vector<1x128x128xbf16>
    %1 = vector.shape_cast %0 : vector<1x128x128xbf16> to vector<128x128xbf16>
    %2 = arith.extf %1 : vector<128x128xbf16> to vector<128x128xf32>
    %cst = arith.constant dense<0.000000e+00> : vector<128xf32>
    %3 = vector.multi_reduction <add>, %2, %cst [1] : vector<128x128xf32> to vector<128xf32>
    %4 = vector.shape_cast %3 : vector<128xf32> to vector<128x1xf32>
    %cst_2 = arith.constant 1.280000e+02 : f32
    %5 = vector.broadcast %cst_2 : f32 to vector<128x1xf32>
    %6 = arith.divf %4, %5 : vector<128x1xf32>
    %7 = vector.broadcast %6 : vector<128x1xf32> to vector<128x128xf32>
    %8 = arith.subf %2, %7 : vector<128x128xf32>
    %9 = arith.mulf %8, %8 : vector<128x128xf32>
    %cst_3 = arith.constant dense<0.000000e+00> : vector<128xf32>
    %10 = vector.multi_reduction <add>, %9, %cst_3 [1] : vector<128x128xf32> to vector<128xf32>
    %11 = vector.shape_cast %10 : vector<128xf32> to vector<128x1xf32>
    %cst_4 = arith.constant 1.280000e+02 : f32
    %12 = vector.broadcast %cst_4 : f32 to vector<128x1xf32>
    %13 = arith.divf %11, %12 : vector<128x1xf32>
    %cst_5 = arith.constant 9.99999974E-6 : f32
    %14 = vector.broadcast %cst_5 : f32 to vector<128x1xf32>
    %15 = arith.addf %13, %14 : vector<128x1xf32>
    %16 = math.rsqrt %15 : vector<128x1xf32>
    %17 = vector.broadcast %16 : vector<128x1xf32> to vector<128x128xf32>
    %18 = arith.mulf %8, %17 : vector<128x128xf32>
    %c0_6 = arith.constant 0 : index
    %c0_7 = arith.constant 0 : index
    %19 = vector.load %arg2[%c0_6, %c0_7] : memref<1x128xf32, #tpu.memory_space<vmem>>, vector<1x128xf32>
    %20 = vector.broadcast %19 : vector<1x128xf32> to vector<128x128xf32>
    %21 = arith.mulf %18, %20 : vector<128x128xf32>
    %c0_8 = arith.constant 0 : index
    %c0_9 = arith.constant 0 : index
    %22 = vector.load %arg3[%c0_8, %c0_9] : memref<1x128xf32, #tpu.memory_space<vmem>>, vector<1x128xf32>
    %23 = vector.broadcast %22 : vector<1x128xf32> to vector<128x128xf32>
    %24 = arith.addf %21, %23 : vector<128x128xf32>
    %25 = arith.truncf %24 : vector<128x128xf32> to vector<128x128xbf16>
    %c0_10 = arith.constant 0 : index
    %c0_11 = arith.constant 0 : index
    %26 = vector.load %arg4[%c0_10, %c0_11] : memref<128x768xbf16, #tpu.memory_space<vmem>>, vector<128x768xbf16>
    %cst_12 = arith.constant dense<0.000000e+00> : vector<128x768xf32>
    %27 = tpu.matmul %25, %26, %cst_12 {dimension_numbers = #tpu.dot_dimension_numbers<[1], [0], [0], [1], [0, 0, 1, 1], [], []>} : vector<128x128xbf16>, vector<128x768xbf16>, vector<128x768xf32> -> vector<128x768xf32>
    %28 = arith.truncf %27 : vector<128x768xf32> to vector<128x768xbf16>
    %29 = vector.extract_strided_slice %28 {offsets = [0, 0], sizes = [128, 64], strides = [1, 1]} : vector<128x768xbf16> to vector<128x64xbf16>
    %30 = vector.extract_strided_slice %28 {offsets = [0, 256], sizes = [128, 64], strides = [1, 1]} : vector<128x768xbf16> to vector<128x64xbf16>
    %31 = vector.extract_strided_slice %28 {offsets = [0, 512], sizes = [128, 64], strides = [1, 1]} : vector<128x768xbf16> to vector<128x64xbf16>
    "tpu.trace_start"() <{level = 10 : i32, message = "qd,kd->qk"}> : () -> ()
    %cst_13 = arith.constant dense<0.000000e+00> : vector<128x128xf32>
    %32 = tpu.matmul %29, %30, %cst_13 {dimension_numbers = #tpu.dot_dimension_numbers<[1], [1], [0], [0], [0, 0, 1, 0], [], []>} : vector<128x64xbf16>, vector<128x64xbf16>, vector<128x128xf32> -> vector<128x128xf32>
    "tpu.trace_stop"() : () -> ()
    %cst_14 = arith.constant dense<0xFF800000> : vector<128xf32>
    %33 = vector.multi_reduction <maximumf>, %32, %cst_14 [1] : vector<128x128xf32> to vector<128xf32>
    %34 = vector.shape_cast %33 : vector<128xf32> to vector<128x1xf32>
    %35 = vector.broadcast %34 : vector<128x1xf32> to vector<128x128xf32>
    %36 = arith.subf %32, %35 : vector<128x128xf32>
    %37 = math.exp %36 : vector<128x128xf32>
    %cst_15 = arith.constant dense<0.000000e+00> : vector<128xf32>
    %38 = vector.multi_reduction <add>, %37, %cst_15 [1] : vector<128x128xf32> to vector<128xf32>
    %39 = vector.shape_cast %38 : vector<128xf32> to vector<128x1xf32>
    %40 = tpu.reciprocal %39 {approx = true} : vector<128x1xf32> -> vector<128x1xf32>
    %41 = vector.broadcast %40 : vector<128x1xf32> to vector<128x128xf32>
    %42 = arith.mulf %37, %41 : vector<128x128xf32>
    %43 = arith.truncf %42 : vector<128x128xf32> to vector<128x128xbf16>
    %cst_16 = arith.constant dense<0.000000e+00> : vector<128x64xf32>
    %44 = tpu.matmul %43, %31, %cst_16 {dimension_numbers = #tpu.dot_dimension_numbers<[1], [0], [0], [1], [0, 0, 1, 1], [], []>} : vector<128x128xbf16>, vector<128x64xbf16>, vector<128x64xf32> -> vector<128x64xf32>
    %45 = arith.truncf %44 : vector<128x64xf32> to vector<128x64xbf16>
    %46 = vector.extract_strided_slice %28 {offsets = [0, 64], sizes = [128, 64], strides = [1, 1]} : vector<128x768xbf16> to vector<128x64xbf16>
    %47 = vector.extract_strided_slice %28 {offsets = [0, 320], sizes = [128, 64], strides = [1, 1]} : vector<128x768xbf16> to vector<128x64xbf16>
    %48 = vector.extract_strided_slice %28 {offsets = [0, 576], sizes = [128, 64], strides = [1, 1]} : vector<128x768xbf16> to vector<128x64xbf16>
    "tpu.trace_start"() <{level = 10 : i32, message = "qd,kd->qk"}> : () -> ()
    %cst_17 = arith.constant dense<0.000000e+00> : vector<128x128xf32>
    %49 = tpu.matmul %46, %47, %cst_17 {dimension_numbers = #tpu.dot_dimension_numbers<[1], [1], [0], [0], [0, 0, 1, 0], [], []>} : vector<128x64xbf16>, vector<128x64xbf16>, vector<128x128xf32> -> vector<128x128xf32>
    "tpu.trace_stop"() : () -> ()
    %cst_18 = arith.constant dense<0xFF800000> : vector<128xf32>
    %50 = vector.multi_reduction <maximumf>, %49, %cst_18 [1] : vector<128x128xf32> to vector<128xf32>
    %51 = vector.shape_cast %50 : vector<128xf32> to vector<128x1xf32>
    %52 = vector.broadcast %51 : vector<128x1xf32> to vector<128x128xf32>
    %53 = arith.subf %49, %52 : vector<128x128xf32>
    %54 = math.exp %53 : vector<128x128xf32>
    %cst_19 = arith.constant dense<0.000000e+00> : vector<128xf32>
    %55 = vector.multi_reduction <add>, %54, %cst_19 [1] : vector<128x128xf32> to vector<128xf32>
    %56 = vector.shape_cast %55 : vector<128xf32> to vector<128x1xf32>
    %57 = tpu.reciprocal %56 {approx = true} : vector<128x1xf32> -> vector<128x1xf32>
    %58 = vector.broadcast %57 : vector<128x1xf32> to vector<128x128xf32>
    %59 = arith.mulf %54, %58 : vector<128x128xf32>
    %60 = arith.truncf %59 : vector<128x128xf32> to vector<128x128xbf16>
    %cst_20 = arith.constant dense<0.000000e+00> : vector<128x64xf32>
    %61 = tpu.matmul %60, %48, %cst_20 {dimension_numbers = #tpu.dot_dimension_numbers<[1], [0], [0], [1], [0, 0, 1, 1], [], []>} : vector<128x128xbf16>, vector<128x64xbf16>, vector<128x64xf32> -> vector<128x64xf32>
    %62 = arith.truncf %61 : vector<128x64xf32> to vector<128x64xbf16>
    %63 = vector.extract_strided_slice %28 {offsets = [0, 128], sizes = [128, 64], strides = [1, 1]} : vector<128x768xbf16> to vector<128x64xbf16>
    %64 = vector.extract_strided_slice %28 {offsets = [0, 384], sizes = [128, 64], strides = [1, 1]} : vector<128x768xbf16> to vector<128x64xbf16>
    %65 = vector.extract_strided_slice %28 {offsets = [0, 640], sizes = [128, 64], strides = [1, 1]} : vector<128x768xbf16> to vector<128x64xbf16>
    "tpu.trace_start"() <{level = 10 : i32, message = "qd,kd->qk"}> : () -> ()
    %cst_21 = arith.constant dense<0.000000e+00> : vector<128x128xf32>
    %66 = tpu.matmul %63, %64, %cst_21 {dimension_numbers = #tpu.dot_dimension_numbers<[1], [1], [0], [0], [0, 0, 1, 0], [], []>} : vector<128x64xbf16>, vector<128x64xbf16>, vector<128x128xf32> -> vector<128x128xf32>
    "tpu.trace_stop"() : () -> ()
    %cst_22 = arith.constant dense<0xFF800000> : vector<128xf32>
    %67 = vector.multi_reduction <maximumf>, %66, %cst_22 [1] : vector<128x128xf32> to vector<128xf32>
    %68 = vector.shape_cast %67 : vector<128xf32> to vector<128x1xf32>
    %69 = vector.broadcast %68 : vector<128x1xf32> to vector<128x128xf32>
    %70 = arith.subf %66, %69 : vector<128x128xf32>
    %71 = math.exp %70 : vector<128x128xf32>
    %cst_23 = arith.constant dense<0.000000e+00> : vector<128xf32>
    %72 = vector.multi_reduction <add>, %71, %cst_23 [1] : vector<128x128xf32> to vector<128xf32>
    %73 = vector.shape_cast %72 : vector<128xf32> to vector<128x1xf32>
    %74 = tpu.reciprocal %73 {approx = true} : vector<128x1xf32> -> vector<128x1xf32>
    %75 = vector.broadcast %74 : vector<128x1xf32> to vector<128x128xf32>
    %76 = arith.mulf %71, %75 : vector<128x128xf32>
    %77 = arith.truncf %76 : vector<128x128xf32> to vector<128x128xbf16>
    %cst_24 = arith.constant dense<0.000000e+00> : vector<128x64xf32>
    %78 = tpu.matmul %77, %65, %cst_24 {dimension_numbers = #tpu.dot_dimension_numbers<[1], [0], [0], [1], [0, 0, 1, 1], [], []>} : vector<128x128xbf16>, vector<128x64xbf16>, vector<128x64xf32> -> vector<128x64xf32>
    %79 = arith.truncf %78 : vector<128x64xf32> to vector<128x64xbf16>
    %80 = vector.extract_strided_slice %28 {offsets = [0, 192], sizes = [128, 64], strides = [1, 1]} : vector<128x768xbf16> to vector<128x64xbf16>
    %81 = vector.extract_strided_slice %28 {offsets = [0, 448], sizes = [128, 64], strides = [1, 1]} : vector<128x768xbf16> to vector<128x64xbf16>
    %82 = vector.extract_strided_slice %28 {offsets = [0, 704], sizes = [128, 64], strides = [1, 1]} : vector<128x768xbf16> to vector<128x64xbf16>
    "tpu.trace_start"() <{level = 10 : i32, message = "qd,kd->qk"}> : () -> ()
    %cst_25 = arith.constant dense<0.000000e+00> : vector<128x128xf32>
    %83 = tpu.matmul %80, %81, %cst_25 {dimension_numbers = #tpu.dot_dimension_numbers<[1], [1], [0], [0], [0, 0, 1, 0], [], []>} : vector<128x64xbf16>, vector<128x64xbf16>, vector<128x128xf32> -> vector<128x128xf32>
    "tpu.trace_stop"() : () -> ()
    %cst_26 = arith.constant dense<0xFF800000> : vector<128xf32>
    %84 = vector.multi_reduction <maximumf>, %83, %cst_26 [1] : vector<128x128xf32> to vector<128xf32>
    %85 = vector.shape_cast %84 : vector<128xf32> to vector<128x1xf32>
    %86 = vector.broadcast %85 : vector<128x1xf32> to vector<128x128xf32>
    %87 = arith.subf %83, %86 : vector<128x128xf32>
    %88 = math.exp %87 : vector<128x128xf32>
    %cst_27 = arith.constant dense<0.000000e+00> : vector<128xf32>
    %89 = vector.multi_reduction <add>, %88, %cst_27 [1] : vector<128x128xf32> to vector<128xf32>
    %90 = vector.shape_cast %89 : vector<128xf32> to vector<128x1xf32>
    %91 = tpu.reciprocal %90 {approx = true} : vector<128x1xf32> -> vector<128x1xf32>
    %92 = vector.broadcast %91 : vector<128x1xf32> to vector<128x128xf32>
    %93 = arith.mulf %88, %92 : vector<128x128xf32>
    %94 = arith.truncf %93 : vector<128x128xf32> to vector<128x128xbf16>
    %cst_28 = arith.constant dense<0.000000e+00> : vector<128x64xf32>
    %95 = tpu.matmul %94, %82, %cst_28 {dimension_numbers = #tpu.dot_dimension_numbers<[1], [0], [0], [1], [0, 0, 1, 1], [], []>} : vector<128x128xbf16>, vector<128x64xbf16>, vector<128x64xf32> -> vector<128x64xf32>
    %96 = arith.truncf %95 : vector<128x64xf32> to vector<128x64xbf16>
    %97 = tpu.concatenate %45, %62, %79, %96 in 1 : vector<128x64xbf16>, vector<128x64xbf16>, vector<128x64xbf16>, vector<128x64xbf16> -> vector<128x256xbf16>
    %c0_29 = arith.constant 0 : index
    %c0_30 = arith.constant 0 : index
    %98 = vector.load %arg5[%c0_29, %c0_30] : memref<256x128xbf16, #tpu.memory_space<vmem>>, vector<256x128xbf16>
    %cst_31 = arith.constant dense<0.000000e+00> : vector<128x128xf32>
    %99 = tpu.matmul %97, %98, %cst_31 {dimension_numbers = #tpu.dot_dimension_numbers<[1], [0], [0], [1], [0, 0, 1, 1], [], []>} : vector<128x256xbf16>, vector<256x128xbf16>, vector<128x128xf32> -> vector<128x128xf32>
    %c0_32 = arith.constant 0 : index
    %c0_33 = arith.constant 0 : index
    %c0_34 = arith.constant 0 : index
    %100 = vector.load %arg6[%c0_32, %c0_33, %c0_34] : memref<1x128x128xf32, #tpu.memory_space<vmem>>, vector<1x128x128xf32>
    %101 = vector.shape_cast %100 : vector<1x128x128xf32> to vector<128x128xf32>
    %102 = vector.shape_cast %99 : vector<128x128xf32> to vector<1x128x128xf32>
    tpu.vector_store %arg6[%c0_32, %c0_33, %c0_34], %102 {strides = array<i32>} : memref<1x128x128xf32, #tpu.memory_space<vmem>>, vector<1x128x128xf32>,
    return
  }
  func.func @transform_0(%arg0: i32) -> (i32, i32, i32) {
    %c0_i32 = arith.constant 0 : i32
    %c0_i32_0 = arith.constant 0 : i32
    %c0_i32_1 = arith.constant 0 : i32
    return %arg0, %c0_i32, %c0_i32_0 : i32, i32, i32
  }
  func.func @transform_1(%arg0: i32) -> (i32, i32) {
    %c0_i32 = arith.constant 0 : i32
    %c0_i32_0 = arith.constant 0 : i32
    %c0_i32_1 = arith.constant 0 : i32
    return %c0_i32, %c0_i32_0 : i32, i32
  }
  func.func @transform_2(%arg0: i32) -> (i32, i32) {
    %c0_i32 = arith.constant 0 : i32
    %c0_i32_0 = arith.constant 0 : i32
    %c0_i32_1 = arith.constant 0 : i32
    return %c0_i32, %c0_i32_0 : i32, i32
  }
  func.func @transform_3(%arg0: i32) -> (i32, i32) {
    %c0_i32 = arith.constant 0 : i32
    %c0_i32_0 = arith.constant 0 : i32
    %c0_i32_1 = arith.constant 0 : i32
    return %c0_i32, %c0_i32_0 : i32, i32
  }
  func.func @transform_4(%arg0: i32) -> (i32, i32) {
    %c0_i32 = arith.constant 0 : i32
    %c0_i32_0 = arith.constant 0 : i32
    %c0_i32_1 = arith.constant 0 : i32
    return %c0_i32, %c0_i32_0 : i32, i32
  }
  func.func @transform_5(%arg0: i32) -> (i32, i32, i32) {
    %c0_i32 = arith.constant 0 : i32
    %c0_i32_0 = arith.constant 0 : i32
    %c0_i32_1 = arith.constant 0 : i32
    return %arg0, %c0_i32, %c0_i32_0 : i32, i32, i32
  }
}

</mosaic_0001>

<bundles_post_ra>
// kernel: tpu_custom_call.1
= control target key start
LH: loop header
LB: loop body
LE: loop exit
PB: predicated region body
PF: predicated region fallthrough
CT: control target
= control target key end

     0   :  { %10 = vsyncpa [#allocation3], 0  ;;  %s6362_s0 = inlined_call_operand.hbm [shape: bf16[2,128,128], index: 0, kind: input, shape index: {}]   ;;  %s6363_s1 = inlined_call_operand.vmem [shape: f32[1,128], index: 1, kind: input, shape index: {}]   ;;  %s6364_s2 = inlined_call_operand.vmem [shape: f32[1,128], index: 2, kind: input, shape index: {}]   ;;  %s6365_s3 = inlined_call_operand.hbm [shape: bf16[128,768], index: 3, kind: input, shape index: {}]   ;;  %s6366_s4 = inlined_call_operand.hbm [shape: bf16[256,128], index: 4, kind: input, shape index: {}]   ;;  %s6367_s5 = inlined_call_operand.hbm [shape: f32[2,128,128], index: 5, kind: output, shape index: {}]  }
   0x1   :  { %12 = vsyncpa [#allocation3 + $0x1], 0 }
   0x2   :  { %13 = vsyncpa [#allocation6], 0 }
   0x3   :  { %14 = vsyncpa [#allocation4], 0 }
   0x4   :  { %16 = vsyncpa [#allocation4 + $0x1], 0  ;;  %s4735_s18 = smov 0   ;;  %s4737_s19 = smov 0  }
   0x5   :  { %s4739_s20 = smov 0   ;;  %s4741_s21 = smov 0  }
   0x6 LB: > { %s4756_s22 = sadd.s32 4294967295, %s4691_s21   ;;  %s3439_s23 = sadd.s32 4294967294, %s4691_s21   ;;  %s4691_s21 = sphi %s4741_s21, %s6588_s21   ;;  %s4687_s20 = sphi %s4739_s20, %s6587_s20   ;;  %s4683_s19 = sphi %s4737_s19, %s6586_s19   ;;  %s4679_s18 = sphi %s4735_s18, %s6585_s18  }
   0x7   : > { %p42_p0 = scmp.ne.s32.totalorder %s4683_s19, %s4679_s18  ;;  %p6368_p1 = scmp.eq.s32.totalorder %s4756_s22, 0 }
   0x8   : > { %p156_p3 = scmp.eq.s32.totalorder %s3439_s23, 1  ;;  %p3440_p5 = scmp.ge.s32.totalorder %s4691_s21, 1 }
   0x9   : > { %p4765_p4 = por %p6368_p1, %p42_p0  ;;  %p163_p7 = scmp.lt.s32.totalorder %s4691_s21, 3 }
   0xa   : > { %p4770_p6 = por %p156_p3, %p42_p0  ;;  %s4693_s27 = smov [#allocation5]  }
   0xb   : > { %s6426_s24 = scalar_select %p4765_p4, 1, 0 }
   0xc   : > { %s6427_s25 = scalar_select %p4770_p6, 1, 0 }
   0xd   : > { %p4775_p8 = pnand %p3440_p5, %p163_p7  ;;  %s181_s28 = sshll.u32 %s4693_s27, 4  ;;  %s182_s28 = int_to_ptr.vmem [resolvable:$true] %s181_s28 }
   0xe   : > { %s4694_s30 = smov [#allocation7]   ;;  %s4554_s7 = scalar_lea.vmem %s182_s28, 6144 }
   0xf   : > { %s6428_s26 = scalar_select %p4775_p8, 1, 0 }
  0x10   : > { %p4104_p9 = pneg %p4775_p8  ;;  %s194_s6 = sshll.u32 %s4694_s30, 4  ;;  %s195_s6 = int_to_ptr.vmem [resolvable:$true] %s194_s6 }
  0x11   : > { %p4555_p13 = scmp.ne.s32.totalorder %s182_s28, %s4554_s7  ;;  %p4562_p5 = scmp.lt.s32.totalorder %s182_s28, %s182_s28 }
  0x12   : > { %p4784_p11 = pnand %p4104_p9, %p6368_p1  ;;  %p4563_p7 = scmp.lt.s32.totalorder %s4554_s7, %s4554_s7 }
  0x14   : > { %p4545_p12 = pneg %p4784_p11  ;;  %p4564_p10 = por %p4563_p7, %p4562_p5 }
  0x16   : > { %p4557_p0 = pnand %p4555_p13, %p4545_p12 }
  0x18   : > { %p4558_p3 = pneg %p4557_p0 }
  0x1a   : > { %p4565_p9 = pnand %p4564_p10, %p4558_p3 }
  0x1c   : > { %4568 = shalt.err (!%p4565_p9)
}
  0x1d   : > { %s4695_s8 = smov 384   ;;  %s4696_s9 = smov 24  }
  0x1e   : > { %4107 = dma.hbm_to_vmem [thread:$0]  (!%p4784_p11), %s6365_s3, 6144, %s182_s28, [#allocation6], %s4695_s8, %s4695_s8, %s4696_s9  }
  0x1f   : > { %s4580_s12 = scalar_lea.vmem %s195_s6, 2048  ;;  %p4588_p2 = scmp.lt.s32.totalorder %s195_s6, %s195_s6 }
  0x20   : > { %p4581_p1 = scmp.ne.s32.totalorder %s195_s6, %s4580_s12  ;;  %p4589_p6 = scmp.lt.s32.totalorder %s4580_s12, %s4580_s12 }
  0x22   : > { %p4583_p13 = pnand %p4581_p1, %p4545_p12  ;;  %p4590_p5 = por %p4589_p6, %p4588_p2 }
  0x24   : > { %p4584_p0 = pneg %p4583_p13 }
  0x26   : > { %p4591_p10 = pnand %p4590_p5, %p4584_p0 }
  0x28   : > { %4594 = shalt.err (!%p4591_p10)
}
  0x29   : > { %s6369_s13 = smov 64   ;;  %s4698_s14 = smov 4  }
  0x2a   : > { %4110 = dma.hbm_to_vmem [thread:$0]  (!%p4784_p11), %s6366_s4, 2048, %s195_s6, [#allocation6], %s6369_s13, %s6369_s13, %s4698_s14  }
  0x2b   : > { %s4810_s17 = sadd.s32 1, %s4691_s21   ;;  %s29_s27 = sadd.s32 1, %s4687_s20 }
  0x2c   : > { %s26_s23 = ssub.s32 %s4691_s21, %s4810_s17  ;;  %p36_p2 = scmp.ne.s32.totalorder %s4687_s20, %s4683_s19 }
  0x2d   : > { %p27_p1 = scmp.eq.s32.totalorder %s26_s23, 0  ;;  %p37_p6 = scmp.eq.s32.totalorder %s4691_s21, 0 }
  0x2e   : > { %p6430_p3 = scmp.eq.s32.totalorder %s4756_s22, 1  ;;  %p4121_p9 = scmp.lt.s32.totalorder %s4691_s21, 2 }
  0x2f   : > { %s4819_s28 = scalar_select %p27_p1, %s4687_s20, %s29_s27  }
  0x30   : > { %p38_p12 = por %p37_p6, %p36_p2  ;;  %p4823_p7 = por %p6430_p3, %p36_p2 }
  0x31   : > { %s208_s30 = sand.u32 1, %s4687_s20   ;;  %s3555_s6 = sshll.u32 %s4691_s21, 10 }
  0x32   : > { %s6431_s29 = scalar_select %p4823_p7, 1, 0 }
  0x33   : > { %s3444_s7 = sshll.u32 %s208_s30, 6  ;;  %s4833_s10 = scalar_lea.hbm %s6362_s0, %s3555_s6 }
  0x34   : > { %s212_s11 = scalar_lea.vmem [#allocation2], %s3444_s7  ;;  %p4837_p11 = pnand %p4121_p9, %p38_p12 }
  0x35   : > { %s219_s12 = sshll.u32 %s212_s11, 4  ;;  %s4841_s16 = scalar_lea.sflag [#allocation3], %s208_s30  ;;  %s4835_s12 = int_to_ptr.vmem [resolvable:$true] %s219_s12 }
  0x36   : > { %s4595_s23 = scalar_lea.hbm %s4833_s10, 1024  ;;  %p4597_p0 = pneg %p4837_p11 }
  0x37   : > { %p4596_p13 = scmp.ne.s32.totalorder %s4833_s10, %s4595_s23  ;;  %s4600_s7 = scalar_lea.hbm %s6362_s0, 2048 }
  0x38   : > { %p4601_p1 = scmp.lt.s32.totalorder %s4833_s10, %s6362_s0  ;;  %p4602_p2 = scmp.lt.s32.totalorder %s4600_s7, %s4595_s23 }
  0x39   : > { %p4598_p5 = pnand %p4597_p0, %p4596_p13 }
  0x3a   : > { %p4603_p6 = por %p4602_p2, %p4601_p1 }
  0x3b   : > { %p4599_p10 = pneg %p4598_p5 }
  0x3d   : > { %p4604_p12 = pnand %p4603_p6, %p4599_p10 }
  0x3f   : > { %4607 = shalt.err (!%p4604_p12)
}
  0x40   : > { %s4608_s30 = scalar_lea.vmem %s4835_s12, 1024  ;;  %s4699_s11 = smov [#allocation2]  }
  0x41   : > { %p4609_p3 = scmp.ne.s32.totalorder %s4835_s12, %s4608_s30  ;;  %s4613_s13 = sshll.u32 %s4699_s11, 4  ;;  %s4614_s13 = int_to_ptr.vmem [resolvable:$false] %s4613_s13 }
  0x42   : > { %s4615_s27 = scalar_lea.vmem %s4614_s13, 2048  ;;  %p4616_p5 = scmp.lt.s32.totalorder %s4835_s12, %s4614_s13 }
  0x43   : > { %p4611_p9 = pnand %p4609_p3, %p4597_p0  ;;  %p4617_p7 = scmp.lt.s32.totalorder %s4615_s27, %s4608_s30 }
  0x45   : > { %p4612_p13 = pneg %p4611_p9  ;;  %p4618_p4 = por %p4617_p7, %p4616_p5 }
  0x47   : > { %p4619_p8 = pnand %p4618_p4, %p4612_p13 }
  0x49   : > { %4622 = shalt.err (!%p4619_p8)
}
  0x4a   : > { %s6433_s23 = smov 64   ;;  %p6434_p0 = scmp.ne.s32.totalorder %s6428_s26, 0 }
  0x4b   : > { %4114 = dma.hbm_to_vmem [thread:$0]  (!%p4837_p11), %s4833_s10, 1024, %s4835_s12, %s4841_s16, %s6433_s23, %s6433_s23, %s4698_s14  }
  0x4c   : > { %231 = sbr.rel (%p6434_p0) target bundleno = 2716 (0xa9c), region = 40 }
  0x51   : > { %s4868_s6 = sand.u32 1, %s4683_s19   ;;  %p6435_p4 = scmp.ne.s32.totalorder %s6426_s24, 0 }
  0x52   : > { %s3448_s13 = sshll.u32 %s4868_s6, 6  ;;  %s234_s7 = scalar_lea.sflag [#allocation3], %s4868_s6 }
  0x53   : > { %s4872_s8 = scalar_lea.vmem [#allocation2], %s3448_s13 }
  0x54   : > { %4666 = dma.done.wait (%p6435_p4), %s234_s7, 1024  }
  0x55   : > { %4668 = vsyncadd (%p6435_p4), %s234_s7, 4294966272  ;;  %p6436_p8 = scmp.eq.s32.totalorder %s4756_s22, 0 }
  0x57   : > { %4670 = dma.done.wait (%p6436_p8), [#allocation6], 8192   ;;  %p6437_p7 = pmov %p6436_p8 }
  0x58   : > { %v3592_v0 = vld [vmem:[%s4872_s8 + $0x20] sm:$0xff]   ;;  %v3593_v1 = vld [vmem:[%s4872_s8 + $0x28] sm:$0xff]   ;;  %v4885_v4 = vld [vmem:[%s4872_s8 + $0x30] sm:$0xff]   ;;  %vm1211_vm0 = vcmask 523264   ;;  %s4701_s12 = smov 64   ;;  %s3451_s15 = sshll.u32 %s4868_s6, 7 }
  0x59   : > { %4672 = vsyncadd (%p6437_p7), [#allocation6], 4294959104  ;;  %v3575_v2 = vunpack.c.l.bf16 %v3592_v0  ;;  %v3579_v3 = vunpack.c.l.bf16 %v3593_v1  ;;  %v3576_v5 = vunpack.c.h.bf16 %v3592_v0  ;;  %v3580_v6 = vunpack.c.h.bf16 %v3593_v1  ;;  %v4888_v7 = vld [vmem:[%s4872_s8 + $0x38] sm:$0xff]   ;;  %v4893_v10 = vld [vmem:[%s4872_s8] sm:$0xff]   ;;  %s6294_s16 = scalar_lea.vmem [#allocation8], %s3451_s15  ;;  %s3556_s9 = sshll.u32 %s4756_s22, 11 }
  0x5a   : > { %v3583_v8 = vunpack.c.l.bf16 %v4885_v4  ;;  %v3584_v9 = vunpack.c.h.bf16 %v4885_v4  ;;  %v3587_v11 = vunpack.c.l.bf16 %v4888_v7  ;;  %v3588_v12 = vunpack.c.h.bf16 %v4888_v7  ;;  %v4898_v13 = vld [vmem:[%s4872_s8 + $0x8] sm:$0xff]   ;;  %v4903_v16 = vld [vmem:[%s4872_s8 + $0x10] sm:$0xff]   ;;  %v4912_v19 = vld [vmem:[%s4872_s8 + $0x18] sm:$0xff]   ;;  %s3347_s30 = sshll.u32 %s6294_s16, 4  ;;  %s6316_s23 = scalar_lea.hbm %s6367_s5, %s3556_s9  ;;  %s6318_s30 = int_to_ptr.vmem [resolvable:$true] %s3347_s30 }
  0x5b   : > { %321 = vadd.xlane.f32.xlu0 %v3575_v2  ;;  %325 = vadd.xlane.f32.xlu1 %v3579_v3  ;;  %v3559_v14 = vunpack.c.l.bf16 %v4893_v10  ;;  %v3560_v15 = vunpack.c.h.bf16 %v4893_v10  ;;  %v3563_v17 = vunpack.c.l.bf16 %v4898_v13  ;;  %v3564_v18 = vunpack.c.h.bf16 %v4898_v13  ;;  %v4167_v24 = vld [vmem:[#allocation5 + $0x154] ss:$24 sps:$4 sm:$0xff]   ;;  %v4169_v25 = vld [vmem:[#allocation5 + $0x150] ss:$24 sps:$4 sm:$0xff]   ;;  %v4170_v61 = vld [vmem:[#allocation5 + $0x124] ss:$24 sps:$4 sm:$0xff]  }
  0x5c   : > { %v3567_v20 = vunpack.c.l.bf16 %v4903_v16  ;;  %v3568_v21 = vunpack.c.h.bf16 %v4903_v16  ;;  %v3571_v22 = vunpack.c.l.bf16 %v4912_v19  ;;  %v3572_v23 = vunpack.c.h.bf16 %v4912_v19  ;;  %4044 = vmatprep.subr.bf16.mxu1 %v4167_v24  ;;  %824 = vmatprep.subr.bf16.mxu0 %v4167_v24  ;;  %v4172_v62 = vld [vmem:[#allocation5 + $0x120] ss:$24 sps:$4 sm:$0xff]   ;;  %v4173_v7 = vld [vmem:[#allocation5 + $0xf4] ss:$24 sps:$4 sm:$0xff]   ;;  %s3334_s13 = scalar_lea.sflag [#allocation4], %s4868_s6  ;;  %s4623_s7 = scalar_lea.vmem %s6318_s30, 2048 }
  0x5d   : > { %4052 = vmatpush1.bf16.msra.mxu1 %v4169_v25  ;;  %825 = vmatpush1.bf16.msra.mxu0 %v4169_v25  ;;  %v4185_v19 = vld [vmem:[#allocation5 + $0x34] ss:$24 sps:$4 sm:$0xff]   ;;  %p4624_p11 = scmp.ne.s32.totalorder %s6318_s30, %s4623_s7  ;;  %p6582_p10 = scmp.ne.s32.totalorder %s6431_s29, 0 }
  0x5e   : > { %4045 = vmatprep.subr.bf16.mxu1 %v4170_v61  ;;  %826 = vmatprep.subr.bf16.mxu0 %v4170_v61  ;;  %s4702_s22 = smov [#allocation8]  }
  0x5f   : > { %323 = vadd.xlane.f32.xlu0 %v3576_v5  ;;  %327 = vadd.xlane.f32.xlu1 %v3580_v6  ;;  %p4625_p1 = pnand %p4624_p11, %p6582_p10  ;;  %s4627_s8 = sshll.u32 %s4702_s22, 4  ;;  %s4628_s8 = int_to_ptr.vmem [resolvable:$false] %s4627_s8 }
  0x60   : > { %s4629_s24 = scalar_lea.vmem %s4628_s8, 4096  ;;  %p4630_p6 = scmp.lt.s32.totalorder %s6318_s30, %s4628_s8 }
  0x61   : > { %4053 = vmatpush1.bf16.msra.mxu1 %v4172_v62  ;;  %827 = vmatpush1.bf16.msra.mxu0 %v4172_v62  ;;  %p4626_p2 = pneg %p4625_p1  ;;  %p4631_p12 = scmp.lt.s32.totalorder %s4629_s24, %s4623_s7 }
  0x62   : > { %4046 = vmatprep.subr.bf16.mxu1 %v4173_v7  ;;  %828 = vmatprep.subr.bf16.mxu0 %v4173_v7 }
  0x63   : > { %329 = vadd.xlane.f32.xlu0 %v3583_v8  ;;  %331 = vadd.xlane.f32.xlu1 %v3584_v9  ;;  %p4632_p3 = por %p4631_p12, %p4630_p6 }
  0x65   : > { %p4633_p9 = pnand %p4632_p3, %p4626_p2 }
  0x67   : > { %333 = vadd.xlane.f32.xlu0 %v3587_v11  ;;  %335 = vadd.xlane.f32.xlu1 %v3588_v12 }
  0x6b   : > { %305 = vadd.xlane.f32.xlu0 %v3559_v14  ;;  %307 = vadd.xlane.f32.xlu1 %v3560_v15 }
  0x6f   : > { %309 = vadd.xlane.f32.xlu0 %v3563_v17  ;;  %311 = vadd.xlane.f32.xlu1 %v3564_v18 }
  0x73   : > { %313 = vadd.xlane.f32.xlu0 %v3567_v20  ;;  %315 = vadd.xlane.f32.xlu1 %v3568_v21 }
  0x77   : > { %317 = vadd.xlane.f32.xlu0 %v3571_v22  ;;  %319 = vadd.xlane.f32.xlu1 %v3572_v23 }
  0xe4   : > { %v322_v26 = vpop.xlane.xlu0 %321  ;;  %v326_v27 = vpop.xlane.xlu1 %325 }
  0xe5   : > { %v346_v28 = vmul.f32 0.0078125, %v322_v26  ;;  %v348_v29 = vmul.f32 0.0078125, %v326_v27  ;;  %v4176_v26 = vld [vmem:[#allocation5 + $0xc4] ss:$24 sps:$4 sm:$0xff]   ;;  %v4178_v27 = vld [vmem:[#allocation5 + $0xc0] ss:$24 sps:$4 sm:$0xff]  }
  0xe7   : > { %v4930_v30 = vsub.f32 %v3575_v2, %v346_v28  ;;  %v4932_v31 = vsub.f32 %v3579_v3, %v348_v29 }
  0xe8   : > { %v324_v32 = vpop.xlane.xlu0 %323  ;;  %v328_v33 = vpop.xlane.xlu1 %327 }
  0xe9   : > { %v347_v34 = vmul.f32 0.0078125, %v324_v32  ;;  %v378_v35 = vmul.f32 %v4930_v30, %v4930_v30  ;;  %v349_v36 = vmul.f32 0.0078125, %v328_v33  ;;  %v380_v38 = vmul.f32 %v4932_v31, %v4932_v31 }
  0xeb   : > { %402 = vadd.xlane.f32.xlu0 %v378_v35  ;;  %v4936_v37 = vsub.f32 %v3576_v5, %v347_v34  ;;  %v4940_v39 = vsub.f32 %v3580_v6, %v349_v36  ;;  %v4179_v35 = vld [vmem:[#allocation5 + $0x94] ss:$24 sps:$4 sm:$0xff]   ;;  %v4181_v36 = vld [vmem:[#allocation5 + $0x90] ss:$24 sps:$4 sm:$0xff]  }
  0xec   : > { %v330_v40 = vpop.xlane.xlu0 %329  ;;  %v332_v41 = vpop.xlane.xlu1 %331 }
  0xed   : > { %v350_v42 = vmul.f32 0.0078125, %v330_v40  ;;  %v379_v43 = vmul.f32 %v4936_v37, %v4936_v37  ;;  %v351_v44 = vmul.f32 0.0078125, %v332_v41  ;;  %v381_v45 = vmul.f32 %v4940_v39, %v4940_v39  ;;  %v4182_v40 = vld [vmem:[#allocation5 + $0x64] ss:$24 sps:$4 sm:$0xff]  }
  0xef   : > { %404 = vadd.xlane.f32.xlu1 %v379_v43  ;;  %406 = vadd.xlane.f32.xlu0 %v380_v38  ;;  %v4946_v46 = vsub.f32 %v3583_v8, %v350_v42  ;;  %v4948_v47 = vsub.f32 %v3584_v9, %v351_v44  ;;  %v4188_v42 = vld [vmem:[#allocation5 + $0x4] ss:$24 sps:$4 sm:$0xff]   ;;  %v4190_v43 = vld [vmem:[#allocation5] ss:$24 sps:$4 sm:$0xff]  }
  0xf0   : > { %v334_v48 = vpop.xlane.xlu0 %333  ;;  %v336_v49 = vpop.xlane.xlu1 %335  ;;  %v4193_v44 = vld [vmem:[#allocation5 + $0x15c] ss:$24 sps:$4 sm:$0xff]  }
  0xf1   : > { %v352_v50 = vmul.f32 0.0078125, %v334_v48  ;;  %v382_v51 = vmul.f32 %v4946_v46, %v4946_v46  ;;  %v353_v52 = vmul.f32 0.0078125, %v336_v49  ;;  %v383_v53 = vmul.f32 %v4948_v47, %v4948_v47  ;;  %v4208_v48 = vld [vmem:[#allocation5 + $0x164] ss:$24 sps:$4 sm:$0xff]  }
  0xf3   : > { %408 = vadd.xlane.f32.xlu1 %v381_v45  ;;  %410 = vadd.xlane.f32.xlu0 %v382_v51  ;;  %v4954_v54 = vsub.f32 %v3587_v11, %v352_v50  ;;  %v4956_v55 = vsub.f32 %v3588_v12, %v353_v52  ;;  %v4175_v11 = vld [vmem:[#allocation5 + $0xf0] ss:$24 sps:$4 sm:$0xff]   ;;  %v4700_v45 = vmov 0  }
  0xf4   : > { %v306_v56 = vpop.xlane.xlu0 %305  ;;  %v308_v57 = vpop.xlane.xlu1 %307  ;;  %4054 = vmatpush1.bf16.msra.mxu1 %v4175_v11  ;;  %829 = vmatpush1.bf16.msra.mxu0 %v4175_v11 }
  0xf5   : > { %v338_v58 = vmul.f32 0.0078125, %v306_v56  ;;  %v384_v59 = vmul.f32 %v4954_v54, %v4954_v54  ;;  %v339_v60 = vmul.f32 0.0078125, %v308_v57  ;;  %v385_v63 = vmul.f32 %v4956_v55, %v4956_v55  ;;  %4047 = vmatprep.subr.bf16.mxu1 %v4176_v26  ;;  %830 = vmatprep.subr.bf16.mxu0 %v4176_v26 }
  0xf6   : > { %896 = vmatprep.mubr.bf16.mxu1 %v4700_v45  ;;  %856 = vmatprep.mubr.bf16.mxu0 %v4700_v45 }
  0xf7   : > { %412 = vadd.xlane.f32.xlu1 %v383_v53  ;;  %414 = vadd.xlane.f32.xlu0 %v384_v59  ;;  %v4964_v0 = vsub.f32 %v3559_v14, %v338_v58  ;;  %v4968_v1 = vsub.f32 %v3560_v15, %v339_v60 }
  0xf8   : > { %v310_v2 = vpop.xlane.xlu0 %309  ;;  %v312_v3 = vpop.xlane.xlu1 %311  ;;  %4055 = vmatpush1.bf16.msra.mxu1 %v4178_v27  ;;  %831 = vmatpush1.bf16.msra.mxu0 %v4178_v27 }
  0xf9   : > { %v340_v4 = vmul.f32 0.0078125, %v310_v2  ;;  %v370_v5 = vmul.f32 %v4964_v0, %v4964_v0  ;;  %v341_v6 = vmul.f32 0.0078125, %v312_v3  ;;  %v371_v8 = vmul.f32 %v4968_v1, %v4968_v1  ;;  %4048 = vmatprep.subr.bf16.mxu1 %v4179_v35  ;;  %832 = vmatprep.subr.bf16.mxu0 %v4179_v35 }
  0xfb   : > { %416 = vadd.xlane.f32.xlu1 %v385_v63  ;;  %386 = vadd.xlane.f32.xlu0 %v370_v5  ;;  %v4976_v9 = vsub.f32 %v3563_v17, %v340_v4  ;;  %v4980_v10 = vsub.f32 %v3564_v18, %v341_v6 }
  0xfc   : > { %v314_v12 = vpop.xlane.xlu0 %313  ;;  %v316_v14 = vpop.xlane.xlu1 %315  ;;  %4056 = vmatpush1.bf16.msra.mxu1 %v4181_v36  ;;  %833 = vmatpush1.bf16.msra.mxu0 %v4181_v36 }
  0xfd   : > { %v342_v15 = vmul.f32 0.0078125, %v314_v12  ;;  %v372_v24 = vmul.f32 %v4976_v9, %v4976_v9  ;;  %v343_v25 = vmul.f32 0.0078125, %v316_v14  ;;  %v373_v13 = vmul.f32 %v4980_v10, %v4980_v10  ;;  %4049 = vmatprep.subr.bf16.mxu1 %v4182_v40  ;;  %834 = vmatprep.subr.bf16.mxu0 %v4182_v40 }
  0xff   : > { %388 = vadd.xlane.f32.xlu1 %v371_v8  ;;  %390 = vadd.xlane.f32.xlu0 %v372_v24  ;;  %v4988_v17 = vsub.f32 %v3567_v20, %v342_v15  ;;  %v4992_v18 = vsub.f32 %v3568_v21, %v343_v25 }
 0x100   : > { %v318_v28 = vpop.xlane.xlu0 %317  ;;  %v320_v29 = vpop.xlane.xlu1 %319 }
 0x101   : > { %v344_v32 = vmul.f32 0.0078125, %v318_v28  ;;  %v374_v33 = vmul.f32 %v4988_v17, %v4988_v17  ;;  %v345_v34 = vmul.f32 0.0078125, %v320_v29  ;;  %v375_v16 = vmul.f32 %v4992_v18, %v4992_v18 }
 0x103   : > { %392 = vadd.xlane.f32.xlu1 %v373_v13  ;;  %394 = vadd.xlane.f32.xlu0 %v374_v33  ;;  %v5000_v20 = vsub.f32 %v3571_v22, %v344_v32  ;;  %v5004_v21 = vsub.f32 %v3572_v23, %v345_v34  ;;  %v4184_v22 = vld [vmem:[#allocation5 + $0x60] ss:$24 sps:$4 sm:$0xff]   ;;  %v4187_v23 = vld [vmem:[#allocation5 + $0x30] ss:$24 sps:$4 sm:$0xff]  }
 0x104   : > { %4057 = vmatpush1.bf16.msra.mxu1 %v4184_v22  ;;  %835 = vmatpush1.bf16.msra.mxu0 %v4184_v22  ;;  %v5016_v13 = vld [vmem:[%s6363_s1] ss:$0 sm:$0xff] }
 0x105   : > { %v376_v38 = vmul.f32 %v5000_v20, %v5000_v20  ;;  %v377_v41 = vmul.f32 %v5004_v21, %v5004_v21  ;;  %4050 = vmatprep.subr.bf16.mxu1 %v4185_v19  ;;  %836 = vmatprep.subr.bf16.mxu0 %v4185_v19 }
 0x107   : > { %396 = vadd.xlane.f32.xlu1 %v375_v16  ;;  %398 = vadd.xlane.f32.xlu0 %v376_v38 }
 0x108   : > { %4058 = vmatpush1.bf16.msra.mxu1 %v4187_v23  ;;  %837 = vmatpush1.bf16.msra.mxu0 %v4187_v23 }
 0x109   : > { %4051 = vmatprep.subr.bf16.mxu1 %v4188_v42  ;;  %838 = vmatprep.subr.bf16.mxu0 %v4188_v42 }
 0x10b   : > { %400 = vadd.xlane.f32.xlu1 %v377_v41  ;;  %v5023_v41 = vld [vmem:[%s6364_s2] ss:$0 sm:$0xff] }
 0x10c   : > { %4059 = vmatpush1.bf16.msra.mxu1 %v4190_v43  ;;  %839 = vmatpush1.bf16.msra.mxu0 %v4190_v43 }
 0x10d   : > { %937 = vmatprep.subr.bf16.mxu1 %v4193_v44  ;;  %1050 = vmatprep.subr.bf16.mxu0 %v4208_v48 }
 0x174   : > { %v403_v49 = vpop.xlane.xlu0 %402 }
 0x175   : > { %v426_v50 = vmul.f32 0.0078125, %v403_v49 }
 0x177   : > { %v442_v51 = vadd.f32 1e-05, %v426_v50 }
 0x178   : > { %v405_v52 = vpop.xlane.xlu1 %404  ;;  %v407_v53 = vpop.xlane.xlu0 %406 }
 0x179   : > { %4255 = vrsqrt.f32 %v442_v51  ;;  %v427_v56 = vmul.f32 0.0078125, %v405_v52  ;;  %v428_v57 = vmul.f32 0.0078125, %v407_v53  ;;  %v4191_v53 = vld [vmem:[#allocation5 + $0x158] ss:$24 sps:$4 sm:$0xff]  }
 0x17b   : > { %v443_v58 = vadd.f32 1e-05, %v427_v56  ;;  %v444_v59 = vadd.f32 1e-05, %v428_v57 }
 0x17c   : > { %v409_v60 = vpop.xlane.xlu1 %408  ;;  %v411_v61 = vpop.xlane.xlu0 %410 }
 0x17d   : > { %4257 = vrsqrt.f32 %v443_v58  ;;  %v429_v62 = vmul.f32 0.0078125, %v409_v60  ;;  %v430_v63 = vmul.f32 0.0078125, %v411_v61  ;;  %v4196_v58 = vld [vmem:[#allocation5 + $0x12c] ss:$24 sps:$4 sm:$0xff]  }
 0x17e   : > { %4259 = vrsqrt.f32 %v444_v59 }
 0x17f   : > { %v445_v2 = vadd.f32 1e-05, %v429_v62  ;;  %v446_v6 = vadd.f32 1e-05, %v430_v63 }
 0x180   : > { %v413_v3 = vpop.xlane.xlu1 %412  ;;  %v415_v4 = vpop.xlane.xlu0 %414 }
 0x181   : > { %4261 = vrsqrt.f32 %v445_v2  ;;  %v431_v5 = vmul.f32 0.0078125, %v413_v3  ;;  %v432_v24 = vmul.f32 0.0078125, %v415_v4 }
 0x183   : > { %v447_v7 = vadd.f32 1e-05, %v431_v5  ;;  %v448_v35 = vadd.f32 1e-05, %v432_v24 }
 0x184   : > { %v417_v8 = vpop.xlane.xlu1 %416  ;;  %v387_v11 = vpop.xlane.xlu0 %386 }
 0x185   : > { %4263 = vrsqrt.f32 %v447_v7  ;;  %v433_v12 = vmul.f32 0.0078125, %v417_v8  ;;  %v418_v14 = vmul.f32 0.0078125, %v387_v11 }
 0x186   : > { %v4256_v15 = vpop.eup %4255  ;;  %4265 = vrsqrt.f32 %v446_v6  ;;  %v4199_v6 = vld [vmem:[#allocation5 + $0xfc] ss:$24 sps:$4 sm:$0xff]  }
 0x187   : > { %v434_v25 = vadd.f32 1e-05, %v418_v14  ;;  %v474_v26 = vmul.f32 %v4256_v15, %v4930_v30  ;;  %v449_v27 = vadd.f32 1e-05, %v433_v12  ;;  %v4197_v15 = vld [vmem:[#allocation5 + $0xf8] ss:$24 sps:$4 sm:$0xff]  }
 0x188   : > { %v389_v28 = vpop.xlane.xlu1 %388  ;;  %v391_v29 = vpop.xlane.xlu0 %390 }
 0x189   : > { %v419_v32 = vmul.f32 0.0078125, %v389_v28  ;;  %v420_v33 = vmul.f32 0.0078125, %v391_v29  ;;  %4267 = vrsqrt.f32 %v434_v25  ;;  %v497_v16 = vmul.f32 %v5016_v13, %v474_v26  ;;  %v4202_v28 = vld [vmem:[#allocation5 + $0xcc] ss:$24 sps:$4 sm:$0xff]  }
 0x18a   : > { %v4258_v34 = vpop.eup %4257  ;;  %4269 = vrsqrt.f32 %v449_v27 }
 0x18b   : > { %v4260_v36 = vpop.eup %4259  ;;  %v435_v38 = vadd.f32 1e-05, %v419_v32  ;;  %v436_v40 = vadd.f32 1e-05, %v420_v33  ;;  %v475_v30 = vmul.f32 %v4258_v34, %v4936_v37  ;;  %v520_v48 = vadd.f32 %v5023_v41, %v497_v16  ;;  %v4200_v16 = vld [vmem:[#allocation5 + $0xc8] ss:$24 sps:$4 sm:$0xff]  }
 0x18c   : > { %v393_v22 = vpop.xlane.xlu1 %392  ;;  %v395_v19 = vpop.xlane.xlu0 %394  ;;  %v476_v49 = vmul.f32 %v4260_v36, %v4932_v31 }
 0x18d   : > { %4271 = vrsqrt.f32 %v435_v38  ;;  %v421_v23 = vmul.f32 0.0078125, %v393_v22  ;;  %v498_v42 = vmul.f32 %v5016_v13, %v475_v30  ;;  %v422_v44 = vmul.f32 0.0078125, %v395_v19 }
 0x18e   : > { %v4262_v43 = vpop.eup %4261  ;;  %4273 = vrsqrt.f32 %v448_v35  ;;  %v499_v2 = vmul.f32 %v5016_v13, %v476_v49  ;;  %v4206_v49 = vld [vmem:[#allocation5 + $0x160] ss:$24 sps:$4 sm:$0xff]  }
 0x18f   : > { %4275 = vrsqrt.f32 %v436_v40  ;;  %v437_v37 = vadd.f32 1e-05, %v421_v23  ;;  %v521_v50 = vadd.f32 %v5023_v41, %v498_v42  ;;  %v477_v51 = vmul.f32 %v4262_v43, %v4940_v39  ;;  %v4194_v39 = vld [vmem:[#allocation5 + $0x128] ss:$24 sps:$4 sm:$0xff]   ;;  %v4205_v40 = vld [vmem:[#allocation5 + $0x9c] ss:$24 sps:$4 sm:$0xff]  }
 0x190   : > { %v397_v52 = vpop.xlane.xlu1 %396  ;;  %v438_v62 = vadd.f32 1e-05, %v422_v44  ;;  %v399_v31 = vpop.xlane.xlu0 %398  ;;  %v522_v14 = vadd.f32 %v5023_v41, %v499_v2 }
 0x191   : > { %4277 = vrsqrt.f32 %v437_v37  ;;  %v423_v56 = vmul.f32 0.0078125, %v397_v52  ;;  %v5030_v57 = vpack.c.bf16 %v521_v50, %v520_v48  ;;  %v500_v60 = vmul.f32 %v5016_v13, %v477_v51  ;;  %v4203_v48 = vld [vmem:[#allocation5 + $0x98] ss:$24 sps:$4 sm:$0xff]   ;;  %v4211_v50 = vld [vmem:[#allocation5 + $0x6c] ss:$24 sps:$4 sm:$0xff]  }
 0x192   : > { %v4264_v59 = vpop.eup %4263  ;;  %v424_v8 = vmul.f32 0.0078125, %v399_v31  ;;  %v4214_v51 = vld [vmem:[#allocation5 + $0x134] ss:$24 sps:$4 sm:$0xff]  }
 0x193   : > { %v4266_v61 = vpop.eup %4265  ;;  %v439_v63 = vadd.f32 1e-05, %v423_v56  ;;  %897 = vmatmul.mubr.bf16.vlgmr.msra.gmra.mxu1 %v5030_v57  ;;  %v523_v5 = vadd.f32 %v5023_v41, %v500_v60  ;;  %v479_v7 = vmul.f32 %v4264_v59, %v4948_v47  ;;  %v4212_v59 = vld [vmem:[#allocation5 + $0x130] ss:$24 sps:$4 sm:$0xff]  }
 0x194   : > { %v401_v3 = vpop.xlane.xlu1 %400  ;;  %938 = vmatpush1.bf16.msra.mxu1 %v4191_v53  ;;  %906 = vmatprep.mubr.bf16.mxu1 %v4700_v45  ;;  %v478_v11 = vmul.f32 %v4266_v61, %v4946_v46  ;;  %v440_v32 = vadd.f32 1e-05, %v424_v8  ;;  %v4226_v8 = vld [vmem:[#allocation5 + $0xd4] ss:$24 sps:$4 sm:$0xff]  }
 0x195   : > { %4279 = vrsqrt.f32 %v439_v63  ;;  %v425_v4 = vmul.f32 0.0078125, %v401_v3  ;;  %939 = vmatprep.subr.bf16.mxu1 %v4196_v58  ;;  %v5041_v27 = vpack.c.bf16 %v523_v5, %v522_v14  ;;  %v502_v29 = vmul.f32 %v5016_v13, %v479_v7  ;;  %v4209_v58 = vld [vmem:[#allocation5 + $0x68] ss:$24 sps:$4 sm:$0xff]   ;;  %v4220_v63 = vld [vmem:[#allocation5 + $0x104] ss:$24 sps:$4 sm:$0xff]  }
 0x196   : > { %v4268_v12 = vpop.eup %4267  ;;  %4281 = vrsqrt.f32 %v438_v62  ;;  %v501_v46 = vmul.f32 %v5016_v13, %v478_v11  ;;  %v4217_v62 = vld [vmem:[#allocation5 + $0x3c] ss:$24 sps:$4 sm:$0xff]   ;;  %v4218_v5 = vld [vmem:[#allocation5 + $0x100] ss:$24 sps:$4 sm:$0xff]  }
 0x197   : > { %v466_v24 = vmul.f32 %v4268_v12, %v4964_v0  ;;  %v4270_v25 = vpop.eup %4269  ;;  %v441_v26 = vadd.f32 1e-05, %v425_v4  ;;  %v525_v38 = vadd.f32 %v5023_v41, %v502_v29  ;;  %v4215_v4 = vld [vmem:[#allocation5 + $0x38] ss:$24 sps:$4 sm:$0xff]  }
 0x198   : > { %940 = vmatpush1.bf16.msra.mxu1 %v4194_v39  ;;  %v481_v30 = vmul.f32 %v4270_v25, %v4956_v55 }
 0x199   : > { %941 = vmatprep.subr.bf16.mxu1 %v4199_v6  ;;  %v489_v35 = vmul.f32 %v5016_v13, %v466_v24  ;;  %4283 = vrsqrt.f32 %v441_v26  ;;  %v4224_v24 = vld [vmem:[#allocation5 + $0xd0] ss:$24 sps:$4 sm:$0xff]   ;;  %v4229_v26 = vld [vmem:[#allocation5 + $0xa4] ss:$24 sps:$4 sm:$0xff]  }
 0x19a   : > { %v4272_v47 = vpop.eup %4271  ;;  %4285 = vrsqrt.f32 %v440_v32  ;;  %v504_v52 = vmul.f32 %v5016_v13, %v481_v30  ;;  %v4227_v32 = vld [vmem:[#allocation5 + $0xa0] ss:$24 sps:$4 sm:$0xff]  }
 0x19b   : > { %v4274_v33 = vpop.eup %4273  ;;  %907 = vmatmul.mubr.bf16.gmra.mxu1 %v5041_v27  ;;  %v467_v34 = vmul.f32 %v4272_v47, %v4968_v1  ;;  %v524_v1 = vadd.f32 %v5023_v41, %v501_v46  ;;  %v512_v23 = vadd.f32 %v5023_v41, %v489_v35  ;;  %v4230_v35 = vld [vmem:[#allocation5 + $0x70] ss:$24 sps:$4 sm:$0xff]  }
 0x19c   : > { %v4276_v0 = vpop.eup %4275  ;;  %942 = vmatpush1.bf16.msra.mxu1 %v4197_v15  ;;  %916 = vmatprep.mubr.bf16.mxu1 %v4700_v45  ;;  %v480_v19 = vmul.f32 %v4274_v33, %v4954_v54  ;;  %v527_v61 = vadd.f32 %v5023_v41, %v504_v52  ;;  %v4221_v15 = vld [vmem:[#allocation5 + $0x8] ss:$24 sps:$4 sm:$0xff]   ;;  %v4232_v33 = vld [vmem:[#allocation5 + $0x74] ss:$24 sps:$4 sm:$0xff]  }
 0x19d   : > { %943 = vmatprep.subr.bf16.mxu1 %v4202_v28  ;;  %v490_v36 = vmul.f32 %v5016_v13, %v467_v34  ;;  %v468_v43 = vmul.f32 %v4276_v0, %v4976_v9  ;;  %v5060_v55 = vpack.c.bf16 %v525_v38, %v524_v1  ;;  %v4235_v0 = vld [vmem:[#allocation5 + $0x44] ss:$24 sps:$4 sm:$0xff]  }
 0x19e   : > { %v4278_v22 = vpop.eup %4277 }
 0x19f   : > { %v513_v42 = vadd.f32 %v5023_v41, %v490_v36  ;;  %v469_v44 = vmul.f32 %v4278_v22, %v4980_v10  ;;  %v491_v9 = vmul.f32 %v5016_v13, %v468_v43  ;;  %v503_v10 = vmul.f32 %v5016_v13, %v480_v19  ;;  %v4233_v36 = vld [vmem:[#allocation5 + $0x40] ss:$24 sps:$4 sm:$0xff]  }
 0x1a0   : > { %944 = vmatpush1.bf16.msra.mxu1 %v4200_v16 }
 0x1a1   : > { %v5058_v37 = vpack.c.bf16 %v513_v42, %v512_v23  ;;  %945 = vmatprep.subr.bf16.mxu1 %v4205_v40  ;;  %v492_v54 = vmul.f32 %v5016_v13, %v469_v44  ;;  %v514_v2 = vadd.f32 %v5023_v41, %v491_v9  ;;  %v526_v3 = vadd.f32 %v5023_v41, %v503_v10  ;;  %v4238_v40 = vld [vmem:[#allocation5 + $0x14] ss:$24 sps:$4 sm:$0xff]  }
 0x1a2   : > { %v4280_v53 = vpop.eup %4279 }
 0x1a3   : > { %857 = vmatmul.mubr.bf16.vlgmr.msra.gmra.mxu0 %v5058_v37  ;;  %917 = vmatmul.mubr.bf16.gmra.mxu1 %v5060_v55  ;;  %v4282_v56 = vpop.eup %4281  ;;  %v515_v60 = vadd.f32 %v5023_v41, %v492_v54  ;;  %v471_v31 = vmul.f32 %v4280_v53, %v4992_v18  ;;  %v5076_v7 = vpack.c.bf16 %v527_v61, %v526_v3  ;;  %v4223_v18 = vld [vmem:[#allocation5 + $0xc] ss:$24 sps:$4 sm:$0xff]  }
 0x1a4   : > { %946 = vmatpush1.bf16.msra.mxu1 %v4203_v48  ;;  %1051 = vmatpush1.bf16.msra.mxu0 %v4206_v49  ;;  %v470_v39 = vmul.f32 %v4282_v56, %v4988_v17 }
 0x1a5   : > { %947 = vmatprep.subr.bf16.mxu1 %v4211_v50  ;;  %1052 = vmatprep.subr.bf16.mxu0 %v4214_v51  ;;  %v529_v6 = vpack.c.bf16 %v515_v60, %v514_v2  ;;  %v494_v11 = vmul.f32 %v5016_v13, %v471_v31 }
 0x1a6   : > { %866 = vmatprep.mubr.bf16.mxu0 %v4700_v45  ;;  %926 = vmatprep.mubr.bf16.mxu1 %v4700_v45  ;;  %v4284_v12 = vpop.eup %4283  ;;  %v493_v17 = vmul.f32 %v5016_v13, %v470_v39 }
 0x1a7   : > { %v4286_v14 = vpop.eup %4285  ;;  %v517_v25 = vadd.f32 %v5023_v41, %v494_v11  ;;  %v473_v28 = vmul.f32 %v4284_v12, %v5004_v21 }
 0x1a8   : > { %948 = vmatpush1.bf16.msra.mxu1 %v4209_v58  ;;  %1053 = vmatpush1.bf16.msra.mxu0 %v4212_v59  ;;  %v516_v29 = vadd.f32 %v5023_v41, %v493_v17  ;;  %v472_v47 = vmul.f32 %v4286_v14, %v5000_v20 }
 0x1a9   : > { %949 = vmatprep.subr.bf16.mxu1 %v4217_v62  ;;  %1054 = vmatprep.subr.bf16.mxu0 %v4220_v63  ;;  %v496_v34 = vmul.f32 %v5016_v13, %v473_v28 }
 0x1aa   : > { %v530_v46 = vpack.c.bf16 %v517_v25, %v516_v29  ;;  %v495_v21 = vmul.f32 %v5016_v13, %v472_v47  ;;  %v4236_v13 = vld [vmem:[#allocation5 + $0x10] ss:$24 sps:$4 sm:$0xff]  }
 0x1ab   : > { %867 = vmatmul.mubr.bf16.gmra.mxu0 %v529_v6  ;;  %927 = vmatmul.mubr.bf16.gmra.mxu1 %v5076_v7  ;;  %v519_v20 = vadd.f32 %v5023_v41, %v496_v34 }
 0x1ac   : > { %950 = vmatpush1.bf16.msra.mxu1 %v4215_v4  ;;  %1055 = vmatpush1.bf16.msra.mxu0 %v4218_v5  ;;  %v518_v16 = vadd.f32 %v5023_v41, %v495_v21 }
 0x1ad   : > { %951 = vmatprep.subr.bf16.mxu1 %v4223_v18  ;;  %1056 = vmatprep.subr.bf16.mxu0 %v4226_v8 }
 0x1ae   : > { %876 = vmatprep.mubr.bf16.mxu0 %v4700_v45  ;;  %969 = vmatprep.mubr.bf16.mxu1 %v4700_v45  ;;  %v531_v38 = vpack.c.bf16 %v519_v20, %v518_v16 }
 0x1b0   : > { %952 = vmatpush1.bf16.msra.mxu1 %v4221_v15  ;;  %1057 = vmatpush1.bf16.msra.mxu0 %v4224_v24 }
 0x1b1   : > { %1058 = vmatprep.subr.bf16.mxu0 %v4229_v26 }
 0x1b3   : > { %877 = vmatmul.mubr.bf16.gmra.mxu0 %v530_v46  ;;  %970 = vmatmul.mubr.bf16.vlgmr.msra.gmra.mxu1 %v5058_v37 }
 0x1b4   : > { %1059 = vmatpush1.bf16.msra.mxu0 %v4227_v32  ;;  %886 = vmatprep.mubr.bf16.mxu0 %v4700_v45 }
 0x1b5   : > { %1060 = vmatprep.subr.bf16.mxu0 %v4232_v33  ;;  %979 = vmatprep.mubr.bf16.mxu1 %v4700_v45 }
 0x1b8   : > { %1061 = vmatpush1.bf16.msra.mxu0 %v4230_v35 }
 0x1b9   : > { %1062 = vmatprep.subr.bf16.mxu0 %v4235_v0 }
 0x1bb   : > { %887 = vmatmul.mubr.bf16.gmra.mxu0 %v531_v38  ;;  %980 = vmatmul.mubr.bf16.gmra.mxu1 %v529_v6 }
 0x1bc   : > { %1063 = vmatpush1.bf16.msra.mxu0 %v4233_v36  ;;  %989 = vmatprep.mubr.bf16.mxu1 %v4700_v45 }
 0x1bd   : > { %1064 = vmatprep.subr.bf16.mxu0 %v4238_v40  ;;  %1082 = vmatprep.mubr.bf16.mxu0 %v4700_v45 }
 0x1c0   : > { %1065 = vmatpush1.bf16.msra.mxu0 %v4236_v13 }
 0x1c3   : > { %990 = vmatmul.mubr.bf16.gmra.mxu1 %v530_v46  ;;  %1083 = vmatmul.mubr.bf16.vlgmr.msra.gmra.mxu0 %v5058_v37 }
 0x1c4   : > { %999 = vmatprep.mubr.bf16.mxu1 %v4700_v45  ;;  %1092 = vmatprep.mubr.bf16.mxu0 %v4700_v45 }
 0x1cb   : > { %1000 = vmatmul.mubr.bf16.gmra.mxu1 %v531_v38  ;;  %1093 = vmatmul.mubr.bf16.gmra.mxu0 %v529_v6 }
 0x1cc   : > { %1009 = vmatprep.mubr.bf16.mxu1 %v4700_v45  ;;  %1102 = vmatprep.mubr.bf16.mxu0 %v4700_v45 }
 0x1d3   : > { %1010 = vmatmul.mubr.bf16.gmra.mxu1 %v5030_v57  ;;  %1103 = vmatmul.mubr.bf16.gmra.mxu0 %v530_v46 }
 0x1d4   : > { %1019 = vmatprep.mubr.bf16.mxu1 %v4700_v45  ;;  %1112 = vmatprep.mubr.bf16.mxu0 %v4700_v45 }
 0x1db   : > { %1020 = vmatmul.mubr.bf16.gmra.mxu1 %v5041_v27  ;;  %1113 = vmatmul.mubr.bf16.gmra.mxu0 %v531_v38 }
 0x1dc   : > { %1029 = vmatprep.mubr.bf16.mxu1 %v4700_v45  ;;  %1122 = vmatprep.mubr.bf16.mxu0 %v4700_v45 }
 0x1e3   : > { %1030 = vmatmul.mubr.bf16.gmra.mxu1 %v5060_v55  ;;  %1123 = vmatmul.mubr.bf16.gmra.mxu0 %v5030_v57 }
 0x1e4   : > { %1039 = vmatprep.mubr.bf16.mxu1 %v4700_v45  ;;  %1132 = vmatprep.mubr.bf16.mxu0 %v4700_v45 }
 0x1eb   : > { %1040 = vmatmul.mubr.bf16.gmra.mxu1 %v5076_v7  ;;  %1133 = vmatmul.mubr.bf16.gmra.mxu0 %v5041_v27 }
 0x1ec   : > { %1142 = vmatprep.mubr.bf16.mxu0 %v4700_v45 }
 0x1f3   : > { %1143 = vmatmul.mubr.bf16.gmra.mxu0 %v5060_v55 }
 0x1f4   : > { %1152 = vmatprep.mubr.bf16.mxu0 %v4700_v45 }
 0x1fb   : > { %1153 = vmatmul.mubr.bf16.gmra.mxu0 %v5076_v7 }
 0x253   : > { %v898_v41 = vpop.f32.mrf.mxu1 }
 0x255   : > { %v5117_v30 = vpop.f32.mrf.mxu1 }
 0x257   : > { %v902_v57 = vpop.f32.mrf.mxu1 }
 0x258   : > { %v5119_v22 = vpack.c.bf16 %v902_v57, %v898_v41 }
 0x259   : > { %v5121_v1 = vpop.f32.mrf.mxu1 }
 0x25a   : > { %6438 = vst [vmem:[#allocation12_spill] sm:$0xff] %v5121_v1 }
 0x25b   : > { %v908_v19 = vpop.f32.mrf.mxu1 }
 0x25d   : > { %v5123_v23 = vpop.f32.mrf.mxu1 }
 0x25e   : > { %6439 = vst [vmem:[#allocation13_spill] sm:$0xff] %v5123_v23 }
 0x25f   : > { %v912_v27 = vpop.f32.mrf.mxu1 }
 0x260   : > { %v5125_v42 = vpack.c.bf16 %v912_v27, %v908_v19 }
 0x261   : > { %v5127_v43 = vpop.f32.mrf.mxu1 }
 0x262   : > { %6440 = vst [vmem:[#allocation14_spill] sm:$0xff] %v5127_v43 }
 0x263   : > { %v858_v44 = vpop.f32.mrf.mxu0  ;;  %v918_v45 = vpop.f32.mrf.mxu1 }
 0x265   : > { %v5129_v48 = vpop.f32.mrf.mxu0  ;;  %v5131_v49 = vpop.f32.mrf.mxu1 }
 0x266   : > { %6441 = vst [vmem:[#allocation15_spill] sm:$0xff] %v5131_v49 }
 0x267   : > { %v862_v37 = vpop.f32.mrf.mxu0  ;;  %v922_v55 = vpop.f32.mrf.mxu1 }
 0x268   : > { %v5133_v50 = vpack.c.bf16 %v862_v37, %v858_v44  ;;  %v5135_v51 = vpack.c.bf16 %v922_v55, %v918_v45 }
 0x269   : > { %v5137_v54 = vpop.f32.mrf.mxu0  ;;  %v5139_v52 = vpop.f32.mrf.mxu1 }
 0x26a   : > { %6442 = vst [vmem:[#allocation16_spill] sm:$0xff] %v5139_v52  ;;  %3804 = vmatprep.mubr.msk.bf16.mxu1 %vm1211_vm0, %v5133_v50 }
 0x26b   : > { %v5143_v53 = vpop.f32.mrf.mxu0  ;;  %v928_v9 = vpop.f32.mrf.mxu1 }
 0x26d   : > { %v5145_v10 = vpop.f32.mrf.mxu0  ;;  %v5147_v56 = vpop.f32.mrf.mxu1 }
 0x26e   : > { %6443 = vst [vmem:[#allocation17_spill] sm:$0xff] %v5147_v56 }
 0x26f   : > { %v5149_v58 = vpop.f32.mrf.mxu0  ;;  %v932_v59 = vpop.f32.mrf.mxu1 }
 0x270   : > { %v5151_v60 = vpack.c.bf16 %v932_v59, %v928_v9 }
 0x271   : > { %v5153_v61 = vpop.f32.mrf.mxu0  ;;  %v5155_v62 = vpop.f32.mrf.mxu1 }
 0x272   : > { %6444 = vst [vmem:[#allocation18_spill] sm:$0xff] %v5155_v62 }
 0x273   : > { %v5157_v63 = vpop.f32.mrf.mxu0  ;;  %v971_v31 = vpop.f32.mrf.mxu1 }
 0x275   : > { %v5159_v2 = vpop.f32.mrf.mxu0  ;;  %v973_v3 = vpop.f32.mrf.mxu1 }
 0x277   : > { %v5161_v39 = vpop.f32.mrf.mxu0  ;;  %v975_v4 = vpop.f32.mrf.mxu1 }
 0x278   : > { %v5163_v5 = vpack.c.bf16 %v975_v4, %v971_v31 }
 0x279   : > { %v5165_v6 = vpop.f32.mrf.mxu0  ;;  %v977_v7 = vpop.f32.mrf.mxu1 }
 0x27a   : > { %v5167_v18 = vpack.c.bf16 %v977_v7, %v973_v3 }
 0x27b   : > { %v5169_v8 = vpop.f32.mrf.mxu0  ;;  %v5171_v11 = vpop.f32.mrf.mxu1 }
 0x27c   : > { %6445 = vst [vmem:[#allocation19_spill] sm:$0xff] %v5167_v18 }
 0x27d   : > { %v5173_v12 = vpop.f32.mrf.mxu0  ;;  %v983_v14 = vpop.f32.mrf.mxu1 }
 0x27f   : > { %v5175_v17 = vpop.f32.mrf.mxu0  ;;  %v5177_v15 = vpop.f32.mrf.mxu1 }
 0x281   : > { %v5179_v24 = vpop.f32.mrf.mxu0  ;;  %v987_v25 = vpop.f32.mrf.mxu1 }
 0x282   : > { %v5181_v26 = vpack.c.bf16 %v987_v25, %v983_v14 }
 0x283   : > { %v5183_v28 = vpop.f32.mrf.mxu1  ;;  %v5185_v29 = vpop.f32.mrf.mxu0 }
 0x284   : > { %6446 = vst [vmem:[#allocation20_spill] sm:$0xff] %v5181_v26 }
 0x285   : > { %v993_v47 = vpop.f32.mrf.mxu1  ;;  %v1086_v32 = vpop.f32.mrf.mxu0 }
 0x287   : > { %v5187_v46 = vpop.f32.mrf.mxu1  ;;  %v5189_v33 = vpop.f32.mrf.mxu0 }
 0x289   : > { %v997_v34 = vpop.f32.mrf.mxu1  ;;  %v1090_v21 = vpop.f32.mrf.mxu0 }
 0x28a   : > { %v5191_v35 = vpack.c.bf16 %v997_v34, %v993_v47  ;;  %v5193_v20 = vpack.c.bf16 %v1090_v21, %v1086_v32 }
 0x28b   : > { %v1001_v0 = vpop.f32.mrf.mxu1  ;;  %v5195_v16 = vpop.f32.mrf.mxu0 }
 0x28c   : > { %6447 = vst [vmem:[#allocation21_spill] sm:$0xff] %v5193_v20 }
 0x28d   : > { %v1003_v36 = vpop.f32.mrf.mxu1  ;;  %v1096_v38 = vpop.f32.mrf.mxu0 }
 0x28f   : > { %v1005_v40 = vpop.f32.mrf.mxu1  ;;  %v5197_v13 = vpop.f32.mrf.mxu0 }
 0x291   : > { %v1007_v41 = vpop.f32.mrf.mxu1  ;;  %v1100_v57 = vpop.f32.mrf.mxu0 }
 0x292   : > { %v5199_v19 = vpack.c.bf16 %v1007_v41, %v1003_v36  ;;  %v5201_v27 = vpack.c.bf16 %v1100_v57, %v1096_v38 }
 0x293   : > { %v1011_v44 = vpop.f32.mrf.mxu1  ;;  %v5203_v45 = vpop.f32.mrf.mxu0 }
 0x294   : > { %6448 = vst [vmem:[#allocation22_spill] sm:$0xff] %v5201_v27 }
 0x295   : > { %v1013_v37 = vpop.f32.mrf.mxu1  ;;  %v1106_v55 = vpop.f32.mrf.mxu0 }
 0x297   : > { %v1015_v9 = vpop.f32.mrf.mxu1  ;;  %v5205_v59 = vpop.f32.mrf.mxu0 }
 0x298   : > { %v1189_v23 = vpack.c.bf16 %v1015_v9, %v1011_v44  ;;  %v1171_v9 = vpack.c.bf16 %v5177_v15, %v5171_v11  ;;  %v1175_v11 = vpack.c.bf16 %v5161_v39, %v5157_v63  ;;  %v1181_v15 = vpack.c.bf16 %v5175_v17, %v5169_v8 }
 0x299   : > { %v1017_v31 = vpop.f32.mrf.mxu1  ;;  %v1110_v3 = vpop.f32.mrf.mxu0  ;;  %v1179_v39 = vpack.c.bf16 %v5205_v59, %v5203_v45 }
 0x29a   : > { %v5207_v4 = vpack.c.bf16 %v1017_v31, %v1013_v37  ;;  %v5209_v7 = vpack.c.bf16 %v1110_v3, %v1106_v55 }
 0x29b   : > { %v1021_v14 = vpop.f32.mrf.mxu1  ;;  %v5211_v25 = vpop.f32.mrf.mxu0 }
 0x29c   : > { %6449 = vst [vmem:[#allocation23_spill] sm:$0xff] %v5207_v4  ;;  %6450 = vst [vmem:[#allocation24_spill] sm:$0xff] %v5209_v7 }
 0x29d   : > { %v1023_v47 = vpop.f32.mrf.mxu1  ;;  %v1116_v32 = vpop.f32.mrf.mxu0 }
 0x29f   : > { %v1025_v34 = vpop.f32.mrf.mxu1  ;;  %v5213_v21 = vpop.f32.mrf.mxu0 }
 0x2a1   : > { %v1027_v36 = vpop.f32.mrf.mxu1  ;;  %v1120_v38 = vpop.f32.mrf.mxu0 }
 0x2a2   : > { %v5215_v41 = vpack.c.bf16 %v1027_v36, %v1023_v47  ;;  %v5217_v57 = vpack.c.bf16 %v1120_v38, %v1116_v32  ;;  %v1195_v32 = vpack.c.bf16 %v1025_v34, %v1021_v14  ;;  %v1177_v34 = vpack.c.bf16 %v5187_v46, %v5183_v28 }
 0x2a3   : > { %v1031_v20 = vpop.f32.mrf.mxu1  ;;  %v1124_v27 = vpop.f32.mrf.mxu0  ;;  %v1169_v46 = vpack.c.bf16 %v5149_v58, %v5143_v53 }
 0x2a4   : > { %6451 = vst [vmem:[#allocation25_spill] sm:$0xff] %v5217_v57  ;;  %v1252_v53 = vsel %vm1211_vm0, %v1195_v32, 0  ;;  %v1243_v59 = vsel %vm1211_vm0, %v1177_v34, 0 }
 0x2a5   : > { %v5219_v37 = vpop.f32.mrf.mxu1  ;;  %v1126_v55 = vpop.f32.mrf.mxu0 }
 0x2a7   : > { %v1035_v31 = vpop.f32.mrf.mxu1  ;;  %v1128_v3 = vpop.f32.mrf.mxu0 }
 0x2a8   : > { %v1201_v7 = vpack.c.bf16 %v1035_v31, %v1031_v20  ;;  %v1191_v58 = vpack.c.bf16 %v1128_v3, %v1124_v27 }
 0x2a9   : > { %v5221_v62 = vpop.f32.mrf.mxu1  ;;  %v1130_v56 = vpop.f32.mrf.mxu0 }
 0x2aa   : > { %v5223_v52 = vpack.c.bf16 %v1130_v56, %v1126_v55  ;;  %1658 = vrot.lane.b32.xlu1 %v1201_v7, %s4701_s12  ;;  %v1183_v55 = vpack.c.bf16 %v1005_v40, %v1001_v0  ;;  %v1255_v28 = vsel %vm1211_vm0, %v1201_v7, 0  ;;  %v1167_v0 = vpack.c.bf16 %v5189_v33, %v5185_v29 }
 0x2ab   : > { %v1041_v47 = vpop.f32.mrf.mxu1  ;;  %v1134_v36 = vpop.f32.mrf.mxu0  ;;  %v1185_v40 = vpack.c.bf16 %v5213_v21, %v5211_v25  ;;  %v5292_v45 = vpack.c.bf16 %v5221_v62, %v5219_v37  ;;  %v1240_v62 = vsel %vm1211_vm0, %v1171_v9, 0 }
 0x2ac   : > { %6452 = vst [vmem:[#allocation26_spill] sm:$0xff] %v5223_v52 }
 0x2ad   : > { %v5226_v38 = vpop.f32.mrf.mxu1  ;;  %v1136_v57 = vpop.f32.mrf.mxu0 }
 0x2ae   : > { %1656 = vrot.lane.b32.xlu1 %v1195_v32, %s4701_s12 }
 0x2af   : > { %v1045_v49 = vpop.f32.mrf.mxu1  ;;  %v1138_v43 = vpop.f32.mrf.mxu0 }
 0x2b0   : > { %v1207_v20 = vpack.c.bf16 %v1045_v49, %v1041_v47  ;;  %v1197_v8 = vpack.c.bf16 %v1138_v43, %v1134_v36  ;;  %v1173_v43 = vpack.c.bf16 %v5197_v13, %v5195_v16  ;;  %v1237_v16 = vsel %vm1211_vm0, %v5163_v5, 0 }
 0x2b1   : > { %v1140_v31 = vpop.f32.mrf.mxu0  ;;  %v1047_v29 = vpop.f32.mrf.mxu1 }
 0x2b2   : > { %v5229_v1 = vpack.c.bf16 %v1140_v31, %v1136_v57  ;;  %1654 = vrot.lane.b32.xlu1 %v1189_v23, %s4701_s12  ;;  %1660 = vrot.lane.b32.xlu0 %v1207_v20, %s4701_s12  ;;  %v1258_v56 = vsel %vm1211_vm0, %v1207_v20, 0 }
 0x2b3   : > { %4060 = vmatprep.subr.msk.bf16.mxu1 %vm1211_vm0, %v1207_v20  ;;  %v1144_v14 = vpop.f32.mrf.mxu0 }
 0x2b4   : > { %6453 = vst [vmem:[#allocation27_spill] sm:$0xff] %v5229_v1  ;;  %3789 = vmatpush3.bf16.xpose.msra.mxu1 %v1258_v56 }
 0x2b5   : > { %4061 = vmatprep.subr.msk.bf16.mxu1 %vm1211_vm0, %v1201_v7  ;;  %v1146_v49 = vpop.f32.mrf.mxu0  ;;  %v5299_v7 = vpack.c.bf16 %v1047_v29, %v5226_v38  ;;  %v5408_v29 = vpack.c.bf16 %v5179_v24, %v5173_v12 }
 0x2b6   : > { %1650 = vrot.lane.b32.xlu1 %v1177_v34, %s4701_s12  ;;  %1652 = vrot.lane.b32.xlu0 %v1183_v55, %s4701_s12 }
 0x2b7   : > { %v1148_v44 = vpop.f32.mrf.mxu0  ;;  %6459 = vst [vmem:[#allocation33_spill] sm:$0xff] %v5408_v29 }
 0x2b8   : > { %v1203_v63 = vpack.c.bf16 %v1148_v44, %v1144_v14 }
 0x2b9   : > { %v1150_v57 = vpop.f32.mrf.mxu0 }
 0x2ba   : > { %v5242_v47 = vpack.c.bf16 %v1150_v57, %v1146_v49  ;;  %1646 = vrot.lane.b32.xlu1 %v5163_v5, %s4701_s12  ;;  %1648 = vrot.lane.b32.xlu0 %v1171_v9, %s4701_s12 }
 0x2bb   : > { %v1154_v17 = vpop.f32.mrf.mxu0 }
 0x2bc   : > { %6454 = vst [vmem:[#allocation28_spill] sm:$0xff] %v5242_v47  ;;  %3791 = vmatpush3.bf16.xpose.msra.mxu1 %v1255_v28 }
 0x2bd   : > { %4062 = vmatprep.subr.msk.bf16.mxu1 %vm1211_vm0, %v1195_v32  ;;  %v5283_v27 = vpop.f32.mrf.mxu0 }
 0x2be   : > { %1624 = vrot.lane.b32.xlu1 %v1169_v46, %s4701_s12  ;;  %1622 = vrot.lane.b32.xlu0 %v5133_v50, %s4701_s12  ;;  %v1249_v50 = vsel %vm1211_vm0, %v1189_v23, 0 }
 0x2bf   : > { %v1158_v33 = vpop.f32.mrf.mxu0 }
 0x2c0   : > { %v1209_v25 = vpack.c.bf16 %v1158_v33, %v1154_v17  ;;  %v6460_v33 = vld [vmem:[#allocation12_spill] sm:$0xff] }
 0x2c2   : > { %1626 = vrot.lane.b32.xlu0 %v1175_v11, %s4701_s12  ;;  %1628 = vrot.lane.b32.xlu1 %v1181_v15, %s4701_s12 }
 0x2c4   : > { %3793 = vmatpush3.bf16.xpose.msra.mxu1 %v1252_v53  ;;  %v2142_v53 = vsel %vm1211_vm0, %v5299_v7, 0 }
 0x2c5   : > { %4063 = vmatprep.subr.msk.bf16.mxu1 %vm1211_vm0, %v1189_v23  ;;  %v1246_v23 = vsel %vm1211_vm0, %v1183_v55, 0 }
 0x2c6   : > { %1630 = vrot.lane.b32.xlu0 %v5119_v22, %s4701_s12  ;;  %1632 = vrot.lane.b32.xlu1 %v5125_v42, %s4701_s12 }
 0x2ca   : > { %1634 = vrot.lane.b32.xlu0 %v5135_v51, %s4701_s12  ;;  %1636 = vrot.lane.b32.xlu1 %v5151_v60, %s4701_s12 }
 0x2cc   : > { %3795 = vmatpush3.bf16.xpose.msra.mxu1 %v1249_v50 }
 0x2cd   : > { %4064 = vmatprep.subr.msk.bf16.mxu1 %vm1211_vm0, %v1183_v55 }
 0x2ce   : > { %1975 = vrot.lane.b32.xlu0 %v1191_v58, %s4701_s12  ;;  %1979 = vrot.lane.b32.xlu1 %v1203_v63, %s4701_s12 }
 0x2d2   : > { %1971 = vrot.lane.b32.xlu0 %v1179_v39, %s4701_s12  ;;  %1977 = vrot.lane.b32.xlu1 %v1197_v8, %s4701_s12 }
 0x2d4   : > { %3797 = vmatpush3.bf16.xpose.msra.mxu1 %v1246_v23  ;;  %v2133_v23 = vsel %vm1211_vm0, %v5207_v4, 0 }
 0x2d5   : > { %4065 = vmatprep.subr.msk.bf16.mxu1 %vm1211_vm0, %v1177_v34 }
 0x2d6   : > { %1967 = vrot.lane.b32.xlu0 %v1167_v0, %s4701_s12  ;;  %1973 = vrot.lane.b32.xlu1 %v1185_v40, %s4701_s12 }
 0x2da   : > { %2542 = vrot.lane.b32.xlu0 %v5292_v45, %s4701_s12  ;;  %1969 = vrot.lane.b32.xlu1 %v1173_v43, %s4701_s12 }
 0x2dc   : > { %3799 = vmatpush3.bf16.xpose.msra.mxu1 %v1243_v59  ;;  %v5412_v59 = vpack.c.bf16 %v6460_v33, %v5117_v30 }
 0x2dd   : > { %4066 = vmatprep.subr.msk.bf16.mxu1 %vm1211_vm0, %v1171_v9 }
 0x2de   : > { %2544 = vrot.lane.b32.xlu1 %v5299_v7, %s4701_s12  ;;  %1981 = vrot.lane.b32.xlu0 %v1209_v25, %s4701_s12  ;;  %6461 = vst [vmem:[#allocation12_spill] sm:$0xff] %v5412_v59 }
 0x2e4   : > { %3801 = vmatpush3.bf16.xpose.msra.mxu1 %v1240_v62 }
 0x2e5   : > { %4067 = vmatprep.subr.msk.bf16.mxu1 %vm1211_vm0, %v5163_v5 }
 0x2ec   : > { %3803 = vmatpush3.bf16.xpose.msra.mxu1 %v1237_v16  ;;  %v6468_v16 = vld [vmem:[#allocation17_spill] sm:$0xff] }
 0x2ed   : > { %3820 = vmatprep.subr.bf16.mxu1 %v1209_v25 }
 0x2f3   : > { %3805 = vmatmul.mubr.msk.bf16.vlgmr.msra.gmra.mxu1 %vm1211_vm0, %v1169_v46 }
 0x2f4   : > { %3808 = vmatprep.mubr.msk.bf16.mxu1 %vm1211_vm0, %v1175_v11  ;;  %3821 = vmatpush3.bf16.msra.mxu1 %v1209_v25  ;;  %v6466_v25 = vld [vmem:[#allocation16_spill] sm:$0xff] }
 0x2f5   : > { %3822 = vmatprep.subr.bf16.mxu1 %v1203_v63 }
 0x2f8   : > { %3823 = vmatpush3.bf16.msra.mxu1 %v1203_v63 }
 0x2f9   : > { %3824 = vmatprep.subr.bf16.mxu1 %v1197_v8 }
 0x2fb   : > { %3809 = vmatmul.mubr.msk.bf16.gmra.mxu1 %vm1211_vm0, %v1181_v15 }
 0x2fc   : > { %3812 = vmatprep.mubr.msk.bf16.mxu1 %vm1211_vm0, %v5119_v22  ;;  %3825 = vmatpush3.bf16.msra.mxu1 %v1197_v8  ;;  %v5371_v8 = vpack.c.bf16 %v5137_v54, %v5129_v48  ;;  %v2127_v48 = vsel %vm1211_vm0, %v5191_v35, 0  ;;  %v2124_v54 = vsel %vm1211_vm0, %v5181_v26, 0 }
 0x2fd   : > { %3826 = vmatprep.subr.bf16.mxu1 %v1191_v58 }
 0x2fe   : > { %6456 = vst [vmem:[#allocation30_spill] sm:$0xff] %v5371_v8 }
 0x300   : > { %3827 = vmatpush3.bf16.msra.mxu1 %v1191_v58  ;;  %v2139_v58 = vsel %vm1211_vm0, %v5292_v45, 0 }
 0x301   : > { %3828 = vmatprep.subr.bf16.mxu1 %v1185_v40 }
 0x303   : > { %3813 = vmatmul.mubr.msk.bf16.gmra.mxu1 %vm1211_vm0, %v5125_v42 }
 0x304   : > { %3816 = vmatprep.mubr.msk.bf16.mxu1 %vm1211_vm0, %v5135_v51  ;;  %3829 = vmatpush3.bf16.msra.mxu1 %v1185_v40  ;;  %v2121_v40 = vsel %vm1211_vm0, %v5167_v18, 0 }
 0x305   : > { %3830 = vmatprep.subr.bf16.mxu1 %v1179_v39 }
 0x308   : > { %3831 = vmatpush3.bf16.msra.mxu1 %v1179_v39  ;;  %v2136_v39 = vsel %vm1211_vm0, %v5215_v41, 0 }
 0x309   : > { %3832 = vmatprep.subr.bf16.mxu1 %v1173_v43 }
 0x30b   : > { %3817 = vmatmul.mubr.msk.bf16.gmra.mxu1 %vm1211_vm0, %v5151_v60 }
 0x30c   : > { %3833 = vmatpush3.bf16.msra.mxu1 %v1173_v43  ;;  %v5396_v43 = vpack.c.bf16 %v5153_v61, %v5145_v10  ;;  %v6462_v10 = vld [vmem:[#allocation13_spill] sm:$0xff]  ;;  %v6463_v61 = vld [vmem:[#allocation14_spill] sm:$0xff] }
 0x30d   : > { %3834 = vmatprep.subr.bf16.mxu1 %v1167_v0 }
 0x30e   : > { %6457 = vst [vmem:[#allocation31_spill] sm:$0xff] %v5396_v43 }
 0x310   : > { %3835 = vmatpush3.bf16.msra.mxu1 %v1167_v0  ;;  %v2130_v0 = vsel %vm1211_vm0, %v5199_v19, 0 }
 0x31c   : > { %v1659_v13 = vpop.permute.xlu1 %1658 }
 0x31d   : > { %v1705_v21 = vsel %vm1211_vm0, %v1659_v13, 0 }
 0x320   : > { %v1657_v37 = vpop.permute.xlu1 %1656 }
 0x321   : > { %v1702_v36 = vsel %vm1211_vm0, %v1657_v37, 0 }
 0x324   : > { %v1661_v22 = vpop.permute.xlu0 %1660  ;;  %v1655_v32 = vpop.permute.xlu1 %1654 }
 0x325   : > { %4068 = vmatprep.subr.msk.bf16.mxu0 %vm1211_vm0, %v1661_v22  ;;  %v1708_v5 = vsel %vm1211_vm0, %v1661_v22, 0  ;;  %v1699_v31 = vsel %vm1211_vm0, %v1655_v32, 0  ;;  %v6469_v22 = vld [vmem:[#allocation18_spill] sm:$0xff] }
 0x326   : > { %3853 = vmatpush3.bf16.xpose.msra.mxu0 %v1708_v5  ;;  %v5443_v5 = vpack.c.bf16 %v6469_v22, %v6468_v16 }
 0x327   : > { %4069 = vmatprep.subr.msk.bf16.mxu0 %vm1211_vm0, %v1659_v13 }
 0x328   : > { %v1653_v42 = vpop.permute.xlu0 %1652  ;;  %v1651_v55 = vpop.permute.xlu1 %1650 }
 0x329   : > { %v1696_v34 = vsel %vm1211_vm0, %v1653_v42, 0  ;;  %v1693_v9 = vsel %vm1211_vm0, %v1651_v55, 0 }
 0x32c   : > { %v1649_v51 = vpop.permute.xlu0 %1648  ;;  %v1647_v46 = vpop.permute.xlu1 %1646 }
 0x32d   : > { %v1690_v28 = vsel %vm1211_vm0, %v1649_v51, 0  ;;  %v1687_v11 = vsel %vm1211_vm0, %v1647_v46, 0 }
 0x32e   : > { %3855 = vmatpush3.bf16.xpose.msra.mxu0 %v1705_v21 }
 0x32f   : > { %4070 = vmatprep.subr.msk.bf16.mxu0 %vm1211_vm0, %v1657_v37 }
 0x330   : > { %v1623_v60 = vpop.permute.xlu0 %1622  ;;  %v1625_v15 = vpop.permute.xlu1 %1624 }
 0x331   : > { %3868 = vmatprep.mubr.msk.bf16.mxu0 %vm1211_vm0, %v1623_v60 }
 0x334   : > { %v1627_v3 = vpop.permute.xlu0 %1626  ;;  %v1629_v50 = vpop.permute.xlu1 %1628 }
 0x336   : > { %3857 = vmatpush3.bf16.xpose.msra.mxu0 %v1702_v36 }
 0x337   : > { %4071 = vmatprep.subr.msk.bf16.mxu0 %vm1211_vm0, %v1655_v32 }
 0x338   : > { %v1631_v38 = vpop.permute.xlu0 %1630  ;;  %v1633_v63 = vpop.permute.xlu1 %1632 }
 0x33c   : > { %v1635_v20 = vpop.permute.xlu0 %1634  ;;  %v1637_v17 = vpop.permute.xlu1 %1636 }
 0x33e   : > { %3859 = vmatpush3.bf16.xpose.msra.mxu0 %v1699_v31 }
 0x33f   : > { %4072 = vmatprep.subr.msk.bf16.mxu0 %vm1211_vm0, %v1653_v42 }
 0x340   : > { %v5331_v56 = vpop.permute.xlu0 %1975 }
 0x344   : > { %v5333_v14 = vpop.permute.xlu0 %1971 }
 0x346   : > { %3861 = vmatpush3.bf16.xpose.msra.mxu0 %v1696_v34  ;;  %v5484_v34 = vpop.f32.mrf.mxu0 }
 0x347   : > { %4073 = vmatprep.subr.msk.bf16.mxu0 %vm1211_vm0, %v1651_v55 }
 0x348   : > { %v5337_v49 = vpop.permute.xlu0 %1967 }
 0x34c   : > { %v5339_v44 = vpop.permute.xlu0 %2542 }
 0x34d   : > { %6455 = vst [vmem:[#allocation29_spill] sm:$0xff] %v5339_v44 }
 0x34e   : > { %3863 = vmatpush3.bf16.xpose.msra.mxu0 %v1693_v9  ;;  %v5489_v9 = vpop.permute.xlu1 %1979 }
 0x34f   : > { %4074 = vmatprep.subr.msk.bf16.mxu0 %vm1211_vm0, %v1649_v51 }
 0x350   : > { %v5343_v57 = vpop.permute.xlu0 %1981 }
 0x351   : > { %3884 = vmatprep.subr.bf16.mxu1 %v5343_v57 }
 0x356   : > { %3865 = vmatpush3.bf16.xpose.msra.mxu0 %v1690_v28 }
 0x357   : > { %4075 = vmatprep.subr.msk.bf16.mxu0 %vm1211_vm0, %v1647_v46 }
 0x35e   : > { %3867 = vmatpush3.bf16.xpose.msra.mxu0 %v1687_v11 }
 0x35f   : > { %4076 = vmatprep.subr.msk.bf16.mxu0 %vm1211_vm0, %v5299_v7  ;;  %v6465_v7 = vld [vmem:[#allocation15_spill] sm:$0xff] }
 0x360   : > { %v5426_v12 = vpack.c.bf16 %v6466_v25, %v6465_v7  ;;  %6470 = vst [vmem:[#allocation15_spill] sm:$0xff] %v5443_v5 }
 0x362   : > { %6467 = vst [vmem:[#allocation14_spill] sm:$0xff] %v5426_v12 }
 0x365   : > { %3869 = vmatmul.mubr.msk.bf16.vlgmr.msra.gmra.mxu0 %vm1211_vm0, %v1625_v15  ;;  %v5499_v15 = vpop.permute.xlu1 %1977 }
 0x366   : > { %3872 = vmatprep.mubr.msk.bf16.mxu0 %vm1211_vm0, %v1627_v3  ;;  %3917 = vmatpush3.bf16.xpose.msra.mxu0 %v2142_v53 }
 0x367   : > { %4077 = vmatprep.subr.msk.bf16.mxu0 %vm1211_vm0, %v5292_v45  ;;  %v5400_v45 = vpack.c.bf16 %v5165_v6, %v5159_v2  ;;  %v5420_v2 = vpack.c.bf16 %v6463_v61, %v6462_v10 }
 0x369   : > { %6458 = vst [vmem:[#allocation32_spill] sm:$0xff] %v5400_v45  ;;  %6464 = vst [vmem:[#allocation13_spill] sm:$0xff] %v5420_v2 }
 0x36d   : > { %3873 = vmatmul.mubr.msk.bf16.gmra.mxu0 %vm1211_vm0, %v1629_v50 }
 0x36e   : > { %3876 = vmatprep.mubr.msk.bf16.mxu0 %vm1211_vm0, %v1631_v38  ;;  %3919 = vmatpush3.bf16.xpose.msra.mxu0 %v2139_v58 }
 0x36f   : > { %4078 = vmatprep.subr.msk.bf16.mxu0 %vm1211_vm0, %v5215_v41 }
 0x375   : > { %3877 = vmatmul.mubr.msk.bf16.gmra.mxu0 %vm1211_vm0, %v1633_v63  ;;  %v5511_v63 = vpop.permute.xlu1 %1973 }
 0x376   : > { %3880 = vmatprep.mubr.msk.bf16.mxu0 %vm1211_vm0, %v1635_v20  ;;  %3921 = vmatpush3.bf16.xpose.msra.mxu0 %v2136_v39 }
 0x377   : > { %4079 = vmatprep.subr.msk.bf16.mxu0 %vm1211_vm0, %v5207_v4 }
 0x37d   : > { %3881 = vmatmul.mubr.msk.bf16.gmra.mxu0 %vm1211_vm0, %v1637_v17 }
 0x37e   : > { %3923 = vmatpush3.bf16.xpose.msra.mxu0 %v2133_v23  ;;  %3932 = vmatprep.mubr.msk.bf16.mxu0 %vm1211_vm0, %v5371_v8 }
 0x37f   : > { %4080 = vmatprep.subr.msk.bf16.mxu0 %vm1211_vm0, %v5199_v19 }
 0x386   : > { %3925 = vmatpush3.bf16.xpose.msra.mxu0 %v2130_v0  ;;  %v5521_v0 = vpop.permute.xlu1 %1969 }
 0x387   : > { %4081 = vmatprep.subr.msk.bf16.mxu0 %vm1211_vm0, %v5191_v35 }
 0x38a   : > { %v5534_v61 = vpop.permute.xlu1 %2544 }
 0x38b   : > { %6471 = vst [vmem:[#allocation16_spill] sm:$0xff] %v5534_v61 }
 0x38e   : > { %3927 = vmatpush3.bf16.xpose.msra.mxu0 %v2127_v48 }
 0x38f   : > { %4082 = vmatprep.subr.msk.bf16.mxu0 %vm1211_vm0, %v5181_v26 }
 0x396   : > { %3929 = vmatpush3.bf16.xpose.msra.mxu0 %v2124_v54 }
 0x397   : > { %4083 = vmatprep.subr.msk.bf16.mxu0 %vm1211_vm0, %v5167_v18 }
 0x39e   : > { %3931 = vmatpush3.bf16.xpose.msra.mxu0 %v2121_v40 }
 0x3a5   : > { %3933 = vmatmul.mubr.msk.bf16.vlgmr.msra.gmra.mxu0 %vm1211_vm0, %v5396_v43 }
 0x3a6   : > { %3936 = vmatprep.mubr.msk.bf16.mxu0 %vm1211_vm0, %v5400_v45 }
 0x3ad   : > { %3937 = vmatmul.mubr.msk.bf16.gmra.mxu0 %vm1211_vm0, %v5408_v29 }
 0x3ae   : > { %3940 = vmatprep.mubr.msk.bf16.mxu0 %vm1211_vm0, %v5412_v59 }
 0x3b3   : > { %v5422_v6 = vpop.f32.mrf.mxu1 }
 0x3b4   : > { %1361 = vmax.xlane.f32.xlu0 %v5422_v6 }
 0x3b5   : > { %v5429_v30 = vpop.f32.mrf.mxu1  ;;  %3941 = vmatmul.mubr.msk.bf16.gmra.mxu0 %vm1211_vm0, %v5420_v2 }
 0x3b6   : > { %3944 = vmatprep.mubr.msk.bf16.mxu0 %vm1211_vm0, %v5426_v12 }
 0x3b7   : > { %v5435_v24 = vpop.f32.mrf.mxu1 }
 0x3b8   : > { %1357 = vmax.xlane.f32.xlu0 %v5429_v30 }
 0x3b9   : > { %v5438_v62 = vpop.f32.mrf.mxu1 }
 0x3ba   : > { %1359 = vmax.xlane.f32.xlu1 %v5438_v62 }
 0x3bb   : > { %v5445_v13 = vpop.f32.mrf.mxu1 }
 0x3bc   : > { %1363 = vmax.xlane.f32.xlu0 %v5435_v24 }
 0x3bd   : > { %v5448_v42 = vpop.f32.mrf.mxu1  ;;  %3945 = vmatmul.mubr.msk.bf16.gmra.mxu0 %vm1211_vm0, %v5443_v5 }
 0x3bf   : > { %v5452_v51 = vpop.f32.mrf.mxu1 }
 0x3c0   : > { %1371 = vmax.xlane.f32.xlu1 %v5452_v51  ;;  %1369 = vmax.xlane.f32.xlu0 %v5445_v13 }
 0x3c1   : > { %v5456_v21 = vpop.f32.mrf.mxu1 }
 0x3c3   : > { %v5458_v37 = vpop.f32.mrf.mxu1 }
 0x3c4   : > { %1367 = vmax.xlane.f32.xlu1 %v5456_v21  ;;  %1365 = vmax.xlane.f32.xlu0 %v5448_v42 }
 0x3c5   : > { %v5462_v60 = vpop.f32.mrf.mxu1 }
 0x3c7   : > { %v5464_v3 = vpop.f32.mrf.mxu1 }
 0x3c8   : > { %1379 = vmax.xlane.f32.xlu1 %v5464_v3  ;;  %1377 = vmax.xlane.f32.xlu0 %v5458_v37 }
 0x3c9   : > { %v5468_v36 = vpop.f32.mrf.mxu1 }
 0x3cb   : > { %v5470_v32 = vpop.f32.mrf.mxu1 }
 0x3cc   : > { %1375 = vmax.xlane.f32.xlu1 %v5468_v36  ;;  %1373 = vmax.xlane.f32.xlu0 %v5462_v60 }
 0x3cd   : > { %v5474_v38 = vpop.f32.mrf.mxu1 }
 0x3cf   : > { %v5476_v20 = vpop.f32.mrf.mxu1 }
 0x3d0   : > { %1387 = vmax.xlane.f32.xlu1 %v5476_v20  ;;  %1385 = vmax.xlane.f32.xlu0 %v5470_v32 }
 0x3d1   : > { %v5480_v31 = vpop.f32.mrf.mxu1 }
 0x3d4   : > { %1383 = vmax.xlane.f32.xlu1 %v5480_v31  ;;  %1381 = vmax.xlane.f32.xlu0 %v5474_v38 }
 0x425   : > { %v5486_v55 = vpop.f32.mrf.mxu0 }
 0x426   : > { %1811 = vmax.xlane.f32.xlu0 %v5486_v55 }
 0x427   : > { %v5491_v28 = vpop.f32.mrf.mxu0 }
 0x429   : > { %v5493_v46 = vpop.f32.mrf.mxu0 }
 0x42a   : > { %1807 = vmax.xlane.f32.xlu0 %v5491_v28  ;;  %1813 = vmax.xlane.f32.xlu1 %v5493_v46 }
 0x42b   : > { %v5497_v11 = vpop.f32.mrf.mxu0 }
 0x42d   : > { %v5501_v53 = vpop.f32.mrf.mxu0 }
 0x42e   : > { %1809 = vmax.xlane.f32.xlu1 %v5497_v11  ;;  %1819 = vmax.xlane.f32.xlu0 %v5501_v53 }
 0x42f   : > { %v5505_v50 = vpop.f32.mrf.mxu0 }
 0x431   : > { %v5507_v58 = vpop.f32.mrf.mxu0 }
 0x432   : > { %1815 = vmax.xlane.f32.xlu0 %v5505_v50  ;;  %1821 = vmax.xlane.f32.xlu1 %v5507_v58 }
 0x433   : > { %v5513_v39 = vpop.f32.mrf.mxu0 }
 0x435   : > { %v5515_v17 = vpop.f32.mrf.mxu0 }
 0x436   : > { %1817 = vmax.xlane.f32.xlu1 %v5513_v39  ;;  %1827 = vmax.xlane.f32.xlu0 %v5515_v17 }
 0x437   : > { %v5519_v23 = vpop.f32.mrf.mxu0 }
 0x439   : > { %v5523_v48 = vpop.f32.mrf.mxu0 }
 0x43a   : > { %1823 = vmax.xlane.f32.xlu0 %v5519_v23  ;;  %1829 = vmax.xlane.f32.xlu1 %v5523_v48 }
 0x43b   : > { %v5527_v54 = vpop.f32.mrf.mxu0 }
 0x43d   : > { %v1362_v40 = vpop.xlane.xlu0 %1361  ;;  %v5529_v33 = vpop.f32.mrf.mxu0 }
 0x43e   : > { %v1391_v10 = vsub.f32 %v5422_v6, %v1362_v40  ;;  %1825 = vmax.xlane.f32.xlu1 %v5527_v54  ;;  %1835 = vmax.xlane.f32.xlu0 %v5529_v33 }
 0x43f   : > { %v5536_v7 = vpop.f32.mrf.mxu0 }
 0x440   : > { %v1409_v25 = vmul.f32 1.442695, %v1391_v10 }
 0x441   : > { %v1358_v16 = vpop.xlane.xlu0 %1357  ;;  %v5538_v22 = vpop.f32.mrf.mxu0 }
 0x442   : > { %4287 = vpow2.f32 %v1409_v25  ;;  %v1389_v44 = vsub.f32 %v5429_v30, %v1358_v16  ;;  %1831 = vmax.xlane.f32.xlu0 %v5536_v7  ;;  %1837 = vmax.xlane.f32.xlu1 %v5538_v22 }
 0x443   : > { %v1360_v6 = vpop.xlane.xlu1 %1359  ;;  %v5543_v5 = vpop.f32.mrf.mxu0 }
 0x444   : > { %v1405_v40 = vmul.f32 1.442695, %v1389_v44  ;;  %v1390_v26 = vsub.f32 %v5438_v62, %v1360_v6 }
 0x445   : > { %v1364_v2 = vpop.xlane.xlu0 %1363 }
 0x446   : > { %4289 = vpow2.f32 %v1405_v40  ;;  %v1392_v10 = vsub.f32 %v5435_v24, %v1364_v2  ;;  %1833 = vmax.xlane.f32.xlu1 %v5543_v5  ;;  %v1407_v30 = vmul.f32 1.442695, %v1390_v26 }
 0x448   : > { %v1411_v12 = vmul.f32 1.442695, %v1392_v10 }
 0x449   : > { %v1372_v25 = vpop.xlane.xlu1 %1371  ;;  %v1370_v59 = vpop.xlane.xlu0 %1369 }
 0x44a   : > { %4291 = vpow2.f32 %v1411_v12  ;;  %v1396_v16 = vsub.f32 %v5452_v51, %v1372_v25  ;;  %v1395_v29 = vsub.f32 %v5445_v13, %v1370_v59 }
 0x44b   : > { %4293 = vpow2.f32 %v1407_v30 }
 0x44c   : > { %v1417_v44 = vmul.f32 1.442695, %v1395_v29  ;;  %v1419_v40 = vmul.f32 1.442695, %v1396_v16 }
 0x44d   : > { %v1368_v45 = vpop.xlane.xlu1 %1367  ;;  %v1366_v61 = vpop.xlane.xlu0 %1365 }
 0x44e   : > { %v1394_v62 = vsub.f32 %v5456_v21, %v1368_v45  ;;  %v1393_v2 = vsub.f32 %v5448_v42, %v1366_v61  ;;  %4295 = vpow2.f32 %v1417_v44 }
 0x44f   : > { %v5552_v24 = vpop.eup %4287  ;;  %4297 = vpow2.f32 %v1419_v40 }
 0x450   : > { %v1413_v6 = vmul.f32 1.442695, %v1393_v2  ;;  %1441 = vadd.xlane.f32.xlu0 %v5552_v24  ;;  %v1415_v51 = vmul.f32 1.442695, %v1394_v62 }
 0x451   : > { %v1380_v26 = vpop.xlane.xlu1 %1379  ;;  %v1378_v12 = vpop.xlane.xlu0 %1377 }
 0x452   : > { %v1400_v29 = vsub.f32 %v5464_v3, %v1380_v26  ;;  %v1399_v59 = vsub.f32 %v5458_v37, %v1378_v12  ;;  %4299 = vpow2.f32 %v1413_v6 }
 0x453   : > { %v5557_v13 = vpop.eup %4289  ;;  %4301 = vpow2.f32 %v1415_v51 }
 0x454   : > { %v1425_v45 = vmul.f32 1.442695, %v1399_v59  ;;  %1437 = vadd.xlane.f32.xlu0 %v5557_v13  ;;  %v1427_v61 = vmul.f32 1.442695, %v1400_v29 }
 0x455   : > { %v1376_v42 = vpop.xlane.xlu1 %1375  ;;  %v1374_v21 = vpop.xlane.xlu0 %1373 }
 0x456   : > { %v1398_v10 = vsub.f32 %v5468_v36, %v1376_v42  ;;  %v1397_v25 = vsub.f32 %v5462_v60, %v1374_v21  ;;  %4303 = vpow2.f32 %v1425_v45 }
 0x457   : > { %v5562_v30 = vpop.eup %4291  ;;  %4305 = vpow2.f32 %v1427_v61 }
 0x458   : > { %v1421_v3 = vmul.f32 1.442695, %v1397_v25  ;;  %1443 = vadd.xlane.f32.xlu1 %v5562_v30  ;;  %v1423_v16 = vmul.f32 1.442695, %v1398_v10  ;;  %v5565_v44 = vpop.eup %4293 }
 0x459   : > { %v1386_v37 = vpop.xlane.xlu0 %1385  ;;  %v1388_v40 = vpop.xlane.xlu1 %1387 }
 0x45a   : > { %4307 = vpow2.f32 %v1421_v3  ;;  %v1403_v62 = vsub.f32 %v5470_v32, %v1386_v37  ;;  %v1404_v60 = vsub.f32 %v5476_v20, %v1388_v40 }
 0x45b   : > { %v5568_v2 = vpop.eup %4295  ;;  %4309 = vpow2.f32 %v1423_v16 }
 0x45c   : > { %1439 = vadd.xlane.f32.xlu1 %v5565_v44  ;;  %1449 = vadd.xlane.f32.xlu0 %v5568_v2  ;;  %v5573_v36 = vpop.eup %4297  ;;  %v1433_v6 = vmul.f32 1.442695, %v1403_v62  ;;  %v1435_v12 = vmul.f32 1.442695, %v1404_v60 }
 0x45d   : > { %v1384_v51 = vpop.xlane.xlu1 %1383  ;;  %v1382_v8 = vpop.xlane.xlu0 %1381 }
 0x45e   : > { %4311 = vpow2.f32 %v1433_v6  ;;  %v1402_v59 = vsub.f32 %v5480_v31, %v1384_v51  ;;  %v1401_v52 = vsub.f32 %v5474_v38, %v1382_v8 }
 0x45f   : > { %v5575_v26 = vpop.eup %4299  ;;  %4313 = vpow2.f32 %v1435_v12 }
 0x460   : > { %1451 = vadd.xlane.f32.xlu1 %v5573_v36  ;;  %1445 = vadd.xlane.f32.xlu0 %v5575_v26  ;;  %v5579_v32 = vpop.eup %4301  ;;  %v1431_v10 = vmul.f32 1.442695, %v1402_v59  ;;  %v1429_v47 = vmul.f32 1.442695, %v1401_v52 }
 0x462   : > { %4315 = vpow2.f32 %v1431_v10 }
 0x463   : > { %v5581_v29 = vpop.eup %4303  ;;  %4317 = vpow2.f32 %v1429_v47 }
 0x464   : > { %1447 = vadd.xlane.f32.xlu1 %v5579_v32  ;;  %1457 = vadd.xlane.f32.xlu0 %v5581_v29  ;;  %v5588_v45 = vpop.eup %4305 }
 0x465   : > { %v5585_v20 = vpop.f32.mrf.mxu0 }
 0x467   : > { %v5590_v42 = vpop.f32.mrf.mxu0  ;;  %v5592_v21 = vpop.eup %4307 }
 0x468   : > { %1459 = vadd.xlane.f32.xlu1 %v5588_v45  ;;  %1453 = vadd.xlane.f32.xlu0 %v5592_v21  ;;  %v5598_v25 = vpop.eup %4309 }
 0x469   : > { %v5596_v61 = vpop.f32.mrf.mxu0 }
 0x46b   : > { %v5600_v3 = vpop.f32.mrf.mxu0  ;;  %v5606_v37 = vpop.eup %4311 }
 0x46c   : > { %1455 = vadd.xlane.f32.xlu1 %v5598_v25  ;;  %2245 = vmax.xlane.f32.xlu0 %v5585_v20  ;;  %6472 = vst [vmem:[#allocation17_spill] sm:$0xff] %v5606_v37  ;;  %v5610_v16 = vpop.eup %4313 }
 0x46d   : > { %v5604_v31 = vpop.f32.mrf.mxu0 }
 0x46f   : > { %v5612_v40 = vpop.f32.mrf.mxu0  ;;  %v5619_v60 = vpop.eup %4315 }
 0x470   : > { %2247 = vmax.xlane.f32.xlu1 %v5596_v61  ;;  %1465 = vadd.xlane.f32.xlu0 %v5606_v37  ;;  %6473 = vst [vmem:[#allocation18_spill] sm:$0xff] %v5619_v60 }
 0x471   : > { %v5616_v62 = vpop.f32.mrf.mxu0 }
 0x473   : > { %v5621_v6 = vpop.f32.mrf.mxu0 }
 0x474   : > { %1467 = vadd.xlane.f32.xlu1 %v5610_v16  ;;  %2241 = vmax.xlane.f32.xlu0 %v5590_v42 }
 0x475   : > { %v5624_v12 = vpop.f32.mrf.mxu0 }
 0x477   : > { %v5627_v51 = vpop.f32.mrf.mxu0 }
 0x478   : > { %2243 = vmax.xlane.f32.xlu1 %v5600_v3 }
 0x479   : > { %v5630_v59 = vpop.f32.mrf.mxu0 }
 0x47a   : > { %6474 = vst [vmem:[#allocation34_spill] sm:$0xff] %v5630_v59 }
 0x47b   : > { %v5633_v10 = vpop.f32.mrf.mxu0 }
 0x47c   : > { %1463 = vadd.xlane.f32.xlu1 %v5619_v60  ;;  %6475 = vst [vmem:[#allocation35_spill] sm:$0xff] %v5633_v10 }
 0x47d   : > { %v5638_v43 = vpop.f32.mrf.mxu0 }
 0x47e   : > { %6476 = vst [vmem:[#allocation36_spill] sm:$0xff] %v5638_v43 }
 0x47f   : > { %v5641_v18 = vpop.f32.mrf.mxu0 }
 0x480   : > { %2255 = vmax.xlane.f32.xlu1 %v5616_v62  ;;  %6477 = vst [vmem:[#allocation37_spill] sm:$0xff] %v5641_v18 }
 0x481   : > { %v5645_v1 = vpop.f32.mrf.mxu0 }
 0x482   : > { %6478 = vst [vmem:[#allocation38_spill] sm:$0xff] %v5645_v1 }
 0x483   : > { %v5648_v4 = vpop.f32.mrf.mxu0 }
 0x484   : > { %2251 = vmax.xlane.f32.xlu1 %v5621_v6  ;;  %6479 = vst [vmem:[#allocation39_spill] sm:$0xff] %v5648_v4 }
 0x488   : > { %2263 = vmax.xlane.f32.xlu1 %v5630_v59 }
 0x48a   : > { %2540 = vrot.lane.b32.xlu0 %v5215_v41, %s4701_s12  ;;  %v5651_v41 = vpop.eup %4317 }
 0x48c   : > { %2259 = vmax.xlane.f32.xlu1 %v5633_v10 }
 0x490   : > { %2269 = vmax.xlane.f32.xlu1 %v5638_v43 }
 0x494   : > { %2265 = vmax.xlane.f32.xlu1 %v5641_v18 }
 0x498   : > { %2271 = vmax.xlane.f32.xlu1 %v5645_v1 }
 0x49c   : > { %2267 = vmax.xlane.f32.xlu1 %v5648_v4 }
 0x4a9   : > { %1461 = vadd.xlane.f32.xlu0 %v5651_v41 }
 0x4ad   : > { %2253 = vmax.xlane.f32.xlu0 %v5604_v31 }
 0x4af   : > { %v1812_v43 = vpop.xlane.xlu0 %1811 }
 0x4b0   : > { %v1841_v8 = vsub.f32 %v5486_v55, %v1812_v43 }
 0x4b1   : > { %2249 = vmax.xlane.f32.xlu0 %v5612_v40 }
 0x4b2   : > { %v1859_v38 = vmul.f32 1.442695, %v1841_v8 }
 0x4b3   : > { %v1808_v52 = vpop.xlane.xlu0 %1807  ;;  %v1814_v18 = vpop.xlane.xlu1 %1813 }
 0x4b4   : > { %4319 = vpow2.f32 %v1859_v38  ;;  %v1839_v1 = vsub.f32 %v5491_v28, %v1808_v52  ;;  %v1842_v47 = vsub.f32 %v5493_v46, %v1814_v18 }
 0x4b5   : > { %2261 = vmax.xlane.f32.xlu0 %v5624_v12 }
 0x4b6   : > { %v1855_v4 = vmul.f32 1.442695, %v1839_v1  ;;  %v1861_v37 = vmul.f32 1.442695, %v1842_v47 }
 0x4b7   : > { %v1810_v10 = vpop.xlane.xlu1 %1809  ;;  %v1820_v59 = vpop.xlane.xlu0 %1819 }
 0x4b8   : > { %4321 = vpow2.f32 %v1855_v4  ;;  %v1840_v60 = vsub.f32 %v5497_v11, %v1810_v10  ;;  %v1845_v43 = vsub.f32 %v5501_v53, %v1820_v59 }
 0x4b9   : > { %2257 = vmax.xlane.f32.xlu0 %v5627_v51  ;;  %4323 = vpow2.f32 %v1861_v37 }
 0x4ba   : > { %v1867_v55 = vmul.f32 1.442695, %v1845_v43  ;;  %v1857_v28 = vmul.f32 1.442695, %v1840_v60 }
 0x4bb   : > { %v1816_v8 = vpop.xlane.xlu0 %1815  ;;  %v1822_v38 = vpop.xlane.xlu1 %1821 }
 0x4bc   : > { %v1843_v18 = vsub.f32 %v5505_v50, %v1816_v8  ;;  %v1846_v1 = vsub.f32 %v5507_v58, %v1822_v38  ;;  %4325 = vpow2.f32 %v1867_v55 }
 0x4bd   : > { %4327 = vpow2.f32 %v1857_v28 }
 0x4be   : > { %v1869_v46 = vmul.f32 1.442695, %v1846_v1  ;;  %v1863_v52 = vmul.f32 1.442695, %v1843_v18 }
 0x4bf   : > { %v1818_v4 = vpop.xlane.xlu1 %1817  ;;  %v1828_v47 = vpop.xlane.xlu0 %1827 }
 0x4c0   : > { %v1844_v11 = vsub.f32 %v5513_v39, %v1818_v4  ;;  %4329 = vpow2.f32 %v1869_v46  ;;  %v1849_v59 = vsub.f32 %v5515_v17, %v1828_v47 }
 0x4c1   : > { %v5666_v53 = vpop.eup %4319  ;;  %4331 = vpow2.f32 %v1863_v52 }
 0x4c2   : > { %v1865_v10 = vmul.f32 1.442695, %v1844_v11  ;;  %1891 = vadd.xlane.f32.xlu0 %v5666_v53  ;;  %v1875_v60 = vmul.f32 1.442695, %v1849_v59 }
 0x4c3   : > { %v1824_v50 = vpop.xlane.xlu0 %1823  ;;  %v1830_v37 = vpop.xlane.xlu1 %1829 }
 0x4c4   : > { %4333 = vpow2.f32 %v1865_v10  ;;  %v1847_v43 = vsub.f32 %v5519_v23, %v1824_v50  ;;  %v1850_v28 = vsub.f32 %v5523_v48, %v1830_v37 }
 0x4c5   : > { %v5670_v58 = vpop.eup %4321  ;;  %4335 = vpow2.f32 %v1875_v60 }
 0x4c6   : > { %1887 = vadd.xlane.f32.xlu1 %v5670_v58  ;;  %v5675_v38 = vpop.eup %4323  ;;  %v1871_v17 = vmul.f32 1.442695, %v1847_v43 }
 0x4c7   : > { %v1826_v39 = vpop.xlane.xlu1 %1825  ;;  %v1836_v8 = vpop.xlane.xlu0 %1835 }
 0x4c8   : > { %v1848_v55 = vsub.f32 %v5527_v54, %v1826_v39  ;;  %v1877_v54 = vmul.f32 1.442695, %v1850_v28  ;;  %v1853_v52 = vsub.f32 %v5529_v33, %v1836_v8 }
 0x4c9   : > { %v5678_v18 = vpop.eup %4325 }
 0x4ca   : > { %v1873_v1 = vmul.f32 1.442695, %v1848_v55  ;;  %1893 = vadd.xlane.f32.xlu1 %v5675_v38  ;;  %1899 = vadd.xlane.f32.xlu0 %v5678_v18  ;;  %v5682_v46 = vpop.eup %4327  ;;  %v1883_v50 = vmul.f32 1.442695, %v1853_v52 }
 0x4cb   : > { %v1838_v23 = vpop.xlane.xlu1 %1837  ;;  %v1832_v47 = vpop.xlane.xlu0 %1831 }
 0x4cc   : > { %4337 = vpow2.f32 %v1873_v1  ;;  %v1851_v37 = vsub.f32 %v5536_v7, %v1832_v47  ;;  %v1854_v43 = vsub.f32 %v5538_v22, %v1838_v23 }
 0x4cd   : > { %4339 = vpow2.f32 %v1871_v17  ;;  %v5685_v4 = vpop.eup %4329 }
 0x4ce   : > { %1889 = vadd.xlane.f32.xlu1 %v5682_v46  ;;  %1901 = vadd.xlane.f32.xlu0 %v5685_v4  ;;  %v5689_v11 = vpop.eup %4331  ;;  %4341 = vpow2.f32 %v1877_v54  ;;  %v1879_v33 = vmul.f32 1.442695, %v1851_v37  ;;  %v1885_v55 = vmul.f32 1.442695, %v1854_v43 }
 0x4cf   : > { %v1834_v48 = vpop.xlane.xlu1 %1833 }
 0x4d0   : > { %v1852_v59 = vsub.f32 %v5543_v5, %v1834_v48 }
 0x4d1   : > { %v5692_v10 = vpop.eup %4333 }
 0x4d2   : > { %v1881_v60 = vmul.f32 1.442695, %v1852_v59  ;;  %1895 = vadd.xlane.f32.xlu1 %v5689_v11  ;;  %1897 = vadd.xlane.f32.xlu0 %v5692_v10  ;;  %v5698_v39 = vpop.eup %4335 }
 0x4d3   : > { %6480 = vst [vmem:[#allocation40_spill] sm:$0xff] %v5698_v39 }
 0x4d4   : > { %4343 = vpow2.f32 %v1881_v60 }
 0x4d5   : > { %4345 = vpow2.f32 %v1883_v50 }
 0x4d6   : > { %1907 = vadd.xlane.f32.xlu0 %v5698_v39  ;;  %4347 = vpow2.f32 %v1879_v33 }
 0x4d7   : > { %4349 = vpow2.f32 %v1885_v55 }
 0x4d9   : > { %v5701_v5 = vpop.eup %4337  ;;  %v1442_v7 = vpop.xlane.xlu0 %1441 }
 0x4da   : > { %v5703_v8 = vpop.eup %4339  ;;  %1905 = vadd.xlane.f32.xlu1 %v5701_v5 }
 0x4db   : > { %1903 = vadd.xlane.f32.xlu0 %v5703_v8  ;;  %v5707_v17 = vpop.eup %4341 }
 0x4dc   : > { %6481 = vst [vmem:[#allocation41_spill] sm:$0xff] %v5707_v17 }
 0x4dd   : > { %v1438_v28 = vpop.xlane.xlu0 %1437 }
 0x4df   : > { %1909 = vadd.xlane.f32.xlu0 %v5707_v17 }
 0x4e1   : > { %v5710_v22 = vpop.eup %4343  ;;  %v1444_v1 = vpop.xlane.xlu1 %1443 }
 0x4e2   : > { %6482 = vst [vmem:[#allocation42_spill] sm:$0xff] %v5710_v22  ;;  %v5712_v23 = vpop.eup %4345  ;;  %1913 = vadd.xlane.f32.xlu1 %v5710_v22  ;;  %4351 = vrcp.f32 %v1444_v1 }
 0x4e3   : > { %6483 = vst [vmem:[#allocation43_spill] sm:$0xff] %v5712_v23  ;;  %1915 = vadd.xlane.f32.xlu0 %v5712_v23  ;;  %4353 = vrcp.f32 %v1438_v28  ;;  %v5716_v52 = vpop.eup %4347 }
 0x4e4   : > { %4355 = vrcp.f32 %v1442_v7  ;;  %6484 = vst [vmem:[#allocation44_spill] sm:$0xff] %v5716_v52  ;;  %v5719_v59 = vpop.eup %4349 }
 0x4e5   : > { %v1440_v54 = vpop.xlane.xlu1 %1439  ;;  %v1450_v47 = vpop.xlane.xlu0 %1449  ;;  %6485 = vst [vmem:[#allocation45_spill] sm:$0xff] %v5719_v59 }
 0x4e6   : > { %4357 = vrcp.f32 %v1440_v54 }
 0x4e7   : > { %1911 = vadd.xlane.f32.xlu0 %v5716_v52 }
 0x4e9   : > { %v1452_v48 = vpop.xlane.xlu1 %1451  ;;  %v1446_v50 = vpop.xlane.xlu0 %1445 }
 0x4ea   : > { %4359 = vrcp.f32 %v1452_v48 }
 0x4eb   : > { %1917 = vadd.xlane.f32.xlu0 %v5719_v59  ;;  %4361 = vrcp.f32 %v1446_v50 }
 0x4ec   : > { %4363 = vrcp.f32 %v1450_v47 }
 0x4ed   : > { %v1448_v37 = vpop.xlane.xlu1 %1447  ;;  %v1458_v60 = vpop.xlane.xlu0 %1457 }
 0x4ee   : > { %4365 = vrcp.f32 %v1448_v37 }
 0x4ef   : > { %v4352_v33 = vpop.eup %4351 }
 0x4f0   : > { %v4354_v43 = vpop.eup %4353  ;;  %v1488_v54 = vmul.f32 %v4352_v33, %v5562_v30 }
 0x4f1   : > { %v1460_v55 = vpop.xlane.xlu1 %1459  ;;  %v4356_v7 = vpop.eup %4355  ;;  %v1485_v23 = vmul.f32 %v4354_v43, %v5557_v13 }
 0x4f2   : > { %v1454_v28 = vpop.xlane.xlu0 %1453  ;;  %4367 = vrcp.f32 %v1460_v55  ;;  %v1487_v47 = vmul.f32 %v4356_v7, %v5552_v24 }
 0x4f3   : > { %v4358_v1 = vpop.eup %4357  ;;  %4369 = vrcp.f32 %v1454_v28 }
 0x4f4   : > { %v1486_v48 = vmul.f32 %v4358_v1, %v5565_v44  ;;  %4371 = vrcp.f32 %v1458_v60  ;;  %v1502_v52 = vpack.c.bf16 %v1488_v54, %v1487_v47 }
 0x4f5   : > { %v1456_v50 = vpop.xlane.xlu1 %1455 }
 0x4f6   : > { %4373 = vrcp.f32 %v1456_v50  ;;  %v2246_v37 = vpop.xlane.xlu0 %2245  ;;  %v1501_v59 = vpack.c.bf16 %v1486_v48, %v1485_v23 }
 0x4f7   : > { %v2275_v22 = vsub.f32 %v5585_v20, %v2246_v37  ;;  %v4360_v17 = vpop.eup %4359 }
 0x4f8   : > { %3836 = vmatprep.mubr.bf16.mxu1 %v1501_v59  ;;  %v4362_v55 = vpop.eup %4361  ;;  %v1492_v24 = vmul.f32 %v4360_v17, %v5573_v36 }
 0x4f9   : > { %v2293_v39 = vmul.f32 1.442695, %v2275_v22  ;;  %3837 = vmatmul.mubr.bf16.vlgmr.msra.gmra.mxu1 %v1502_v52  ;;  %v2248_v30 = vpop.xlane.xlu1 %2247  ;;  %v4364_v33 = vpop.eup %4363  ;;  %v1489_v20 = vmul.f32 %v4362_v55, %v5575_v26 }
 0x4fa   : > { %3885 = vmatpush3.bf16.msra.mxu1 %v5343_v57  ;;  %v5728_v13 = vpop.xlane.xlu0 %1465  ;;  %v1491_v22 = vmul.f32 %v4364_v33, %v5568_v2  ;;  %v2276_v57 = vsub.f32 %v5596_v61, %v2248_v30 }
 0x4fb   : > { %v4366_v44 = vpop.eup %4365  ;;  %4375 = vpow2.f32 %v2293_v39  ;;  %3886 = vmatprep.subr.bf16.mxu1 %v5489_v9 }
 0x4fc   : > { %v1490_v23 = vmul.f32 %v4366_v44, %v5579_v32  ;;  %v1504_v39 = vpack.c.bf16 %v1492_v24, %v1491_v22 }
 0x4fd   : > { %v1468_v59 = vpop.xlane.xlu1 %1467 }
 0x4fe   : > { %3887 = vmatpush3.bf16.msra.mxu1 %v5489_v9  ;;  %v2242_v52 = vpop.xlane.xlu0 %2241  ;;  %v1503_v60 = vpack.c.bf16 %v1490_v23, %v1489_v20  ;;  %v2295_v9 = vmul.f32 1.442695, %v2276_v57 }
 0x4ff   : > { %v2273_v43 = vsub.f32 %v5590_v42, %v2242_v52  ;;  %3888 = vmatprep.subr.bf16.mxu1 %v5499_v15  ;;  %v4368_v7 = vpop.eup %4367 }
 0x500   : > { %3840 = vmatprep.mubr.bf16.mxu1 %v1503_v60  ;;  %v4370_v36 = vpop.eup %4369  ;;  %v1496_v42 = vmul.f32 %v4368_v7, %v5588_v45  ;;  %v6487_v7 = vld [vmem:[#allocation17_spill] sm:$0xff] }
 0x501   : > { %v2289_v26 = vmul.f32 1.442695, %v2273_v43  ;;  %3841 = vmatmul.mubr.bf16.gmra.mxu1 %v1504_v39  ;;  %v2244_v32 = vpop.xlane.xlu1 %2243  ;;  %v4372_v17 = vpop.eup %4371  ;;  %v1493_v61 = vmul.f32 %v4370_v36, %v5592_v21 }
 0x502   : > { %3889 = vmatpush3.bf16.msra.mxu1 %v5499_v15  ;;  %v2274_v28 = vsub.f32 %v5600_v3, %v2244_v32  ;;  %v1495_v54 = vmul.f32 %v4372_v17, %v5581_v29 }
 0x503   : > { %v4374_v2 = vpop.eup %4373  ;;  %4377 = vpow2.f32 %v2289_v26  ;;  %3890 = vmatprep.subr.bf16.mxu1 %v5331_v56 }
 0x504   : > { %v1494_v1 = vmul.f32 %v4374_v2, %v5598_v25  ;;  %4379 = vpow2.f32 %v2295_v9  ;;  %v2291_v15 = vmul.f32 1.442695, %v2274_v28  ;;  %v1506_v50 = vpack.c.bf16 %v1496_v42, %v1495_v54  ;;  %v6489_v42 = vld [vmem:[#allocation35_spill] sm:$0xff] }
 0x505   : > { %v1464_v45 = vpop.xlane.xlu1 %1463 }
 0x506   : > { %3891 = vmatpush3.bf16.msra.mxu1 %v5331_v56  ;;  %v1505_v48 = vpack.c.bf16 %v1494_v1, %v1493_v61  ;;  %4381 = vpow2.f32 %v2291_v15 }
 0x507   : > { %3892 = vmatprep.subr.bf16.mxu1 %v5511_v63  ;;  %4383 = vrcp.f32 %v1468_v59 }
 0x508   : > { %v5748_v47 = vpop.eup %4375  ;;  %3844 = vmatprep.mubr.bf16.mxu1 %v1505_v48  ;;  %4385 = vrcp.f32 %v1464_v45  ;;  %v6490_v48 = vld [vmem:[#allocation36_spill] sm:$0xff] }
 0x509   : > { %2325 = vadd.xlane.f32.xlu1 %v5748_v47  ;;  %3845 = vmatmul.mubr.bf16.gmra.mxu1 %v1506_v50  ;;  %4387 = vrcp.f32 %v5728_v13 }
 0x50a   : > { %3893 = vmatpush3.bf16.msra.mxu1 %v5511_v63  ;;  %v5764_v63 = vpack.c.bf16 %v5484_v34, %v5283_v27  ;;  %v5776_v27 = vpop.permute.xlu0 %2540 }
 0x50b   : > { %3894 = vmatprep.subr.bf16.mxu1 %v5333_v14 }
 0x50e   : > { %3895 = vmatpush3.bf16.msra.mxu1 %v5333_v14 }
 0x50f   : > { %3896 = vmatprep.subr.bf16.mxu1 %v5521_v0 }
 0x510   : > { %v5755_v56 = vpop.eup %4377 }
 0x511   : > { %2321 = vadd.xlane.f32.xlu1 %v5755_v56  ;;  %v5760_v29 = vpop.eup %4379 }
 0x512   : > { %3897 = vmatpush3.bf16.msra.mxu1 %v5521_v0  ;;  %v2256_v0 = vpop.xlane.xlu1 %2255 }
 0x513   : > { %3898 = vmatprep.subr.bf16.mxu1 %v5337_v49  ;;  %v5769_v14 = vpop.eup %4381 }
 0x514   : > { %v4384_v24 = vpop.eup %4383 }
 0x515   : > { %2327 = vadd.xlane.f32.xlu1 %v5760_v29  ;;  %v4386_v23 = vpop.eup %4385 }
 0x516   : > { %3899 = vmatpush3.bf16.msra.mxu1 %v5337_v49  ;;  %v2252_v21 = vpop.xlane.xlu1 %2251  ;;  %v4388_v52 = vpop.eup %4387 }
 0x517   : > { %3948 = vmatprep.subr.bf16.mxu1 %v5764_v63  ;;  %v2278_v44 = vsub.f32 %v5621_v6, %v2252_v21  ;;  %v6486_v6 = vld [vmem:[#allocation18_spill] sm:$0xff]  ;;  %v1499_v36 = vmul.f32 %v4388_v52, %v6487_v7 }
 0x518   : > { %v1498_v39 = vmul.f32 %v4386_v23, %v6486_v6 }
 0x519   : > { %2323 = vadd.xlane.f32.xlu1 %v5769_v14  ;;  %v2299_v60 = vmul.f32 1.442695, %v2278_v44  ;;  %v6492_v44 = vld [vmem:[#allocation38_spill] sm:$0xff] }
 0x51a   : > { %v2264_v25 = vpop.xlane.xlu1 %2263 }
 0x51e   : > { %v2260_v49 = vpop.xlane.xlu1 %2259 }
 0x51f   : > { %v2282_v61 = vsub.f32 %v6489_v42, %v2260_v49  ;;  %v6491_v49 = vld [vmem:[#allocation37_spill] sm:$0xff] }
 0x521   : > { %v2307_v50 = vmul.f32 1.442695, %v2282_v61 }
 0x522   : > { %v2270_v55 = vpop.xlane.xlu1 %2269 }
 0x526   : > { %v2266_v59 = vpop.xlane.xlu1 %2265 }
 0x52a   : > { %2536 = vrot.lane.b32.xlu1 %v5199_v19, %s4701_s12  ;;  %v2280_v19 = vsub.f32 %v5616_v62, %v2256_v0  ;;  %v1500_v62 = vmul.f32 %v4384_v24, %v5610_v16  ;;  %v2272_v2 = vpop.xlane.xlu1 %2271 }
 0x52c   : > { %v2303_v13 = vmul.f32 1.442695, %v2280_v19  ;;  %v1508_v9 = vpack.c.bf16 %v1500_v62, %v1499_v36 }
 0x52e   : > { %2534 = vrot.lane.b32.xlu1 %v5191_v35, %s4701_s12  ;;  %v5794_v1 = vpop.xlane.xlu1 %2267 }
 0x532   : > { %v1462_v34 = vpop.xlane.xlu0 %1461 }
 0x533   : > { %4389 = vrcp.f32 %v1462_v34 }
 0x536   : > { %v2254_v3 = vpop.xlane.xlu0 %2253 }
 0x537   : > { %v2279_v37 = vsub.f32 %v5604_v31, %v2254_v3  ;;  %v2285_v3 = vsub.f32 %v6491_v49, %v2266_v59 }
 0x539   : > { %v2301_v30 = vmul.f32 1.442695, %v2279_v37  ;;  %v2313_v19 = vmul.f32 1.442695, %v2285_v3  ;;  %v6496_v3 = vld [vmem:[#allocation27_spill] sm:$0xff] }
 0x53a   : > { %v2250_v33 = vpop.xlane.xlu0 %2249 }
 0x53b   : > { %4391 = vpow2.f32 %v2301_v30  ;;  %v2277_v35 = vsub.f32 %v5612_v40, %v2250_v33 }
 0x53d   : > { %v2297_v20 = vmul.f32 1.442695, %v2277_v35  ;;  %v2288_v35 = vsub.f32 %v6492_v44, %v2272_v2 }
 0x53e   : > { %v2262_v22 = vpop.xlane.xlu0 %2261 }
 0x53f   : > { %4393 = vpow2.f32 %v2297_v20  ;;  %v2283_v31 = vsub.f32 %v5624_v12, %v2262_v22  ;;  %v6488_v12 = vld [vmem:[#allocation34_spill] sm:$0xff] }
 0x540   : > { %v4390_v57 = vpop.eup %4389  ;;  %4395 = vpow2.f32 %v2303_v13  ;;  %v2284_v28 = vsub.f32 %v6488_v12, %v2264_v25  ;;  %v2319_v13 = vmul.f32 1.442695, %v2288_v35  ;;  %v6497_v35 = vld [vmem:[#allocation26_spill] sm:$0xff] }
 0x541   : > { %v1497_v43 = vmul.f32 %v4390_v57, %v5651_v41  ;;  %4397 = vpow2.f32 %v2299_v60  ;;  %v2309_v26 = vmul.f32 1.442695, %v2283_v31 }
 0x542   : > { %v2258_v40 = vpop.xlane.xlu0 %2257  ;;  %v2311_v54 = vmul.f32 1.442695, %v2284_v28 }
 0x543   : > { %v2281_v32 = vsub.f32 %v5627_v51, %v2258_v40  ;;  %v1507_v17 = vpack.c.bf16 %v1498_v39, %v1497_v43  ;;  %4399 = vpow2.f32 %v2309_v26  ;;  %v2287_v51 = vsub.f32 %v6490_v48, %v2270_v55 }
 0x545   : > { %3848 = vmatprep.mubr.bf16.mxu1 %v1507_v17  ;;  %v2305_v16 = vmul.f32 1.442695, %v2281_v32  ;;  %v2317_v21 = vmul.f32 1.442695, %v2287_v51  ;;  %v6494_v51 = vld [vmem:[#allocation28_spill] sm:$0xff] }
 0x546   : > { %3849 = vmatmul.mubr.bf16.gmra.mxu1 %v1508_v9  ;;  %v6493_v9 = vld [vmem:[#allocation23_spill] sm:$0xff] }
 0x547   : > { %4401 = vpow2.f32 %v2305_v16 }
 0x548   : > { %v5790_v41 = vpop.eup %4391  ;;  %4403 = vpow2.f32 %v2311_v54 }
 0x549   : > { %2333 = vadd.xlane.f32.xlu0 %v5790_v41  ;;  %4405 = vpow2.f32 %v2307_v50 }
 0x54a   : > { %4407 = vpow2.f32 %v2317_v21 }
 0x54b   : > { %v1892_v25 = vpop.xlane.xlu0 %1891 }
 0x54c   : > { %v5797_v15 = vpop.eup %4393 }
 0x54d   : > { %2329 = vadd.xlane.f32.xlu0 %v5797_v15  ;;  %v5800_v0 = vpop.eup %4395 }
 0x54e   : > { %v5802_v34 = vpop.eup %4397 }
 0x54f   : > { %v1888_v45 = vpop.xlane.xlu1 %1887 }
 0x550   : > { %v5807_v30 = vpop.eup %4399 }
 0x551   : > { %2335 = vadd.xlane.f32.xlu0 %v5800_v0 }
 0x552   : > { %2331 = vadd.xlane.f32.xlu1 %v5802_v34 }
 0x553   : > { %v1894_v37 = vpop.xlane.xlu1 %1893  ;;  %v1900_v55 = vpop.xlane.xlu0 %1899 }
 0x554   : > { %4409 = vrcp.f32 %v1894_v37  ;;  %v5811_v20 = vpop.eup %4401 }
 0x555   : > { %4411 = vrcp.f32 %v1888_v45  ;;  %v5814_v22 = vpop.eup %4403 }
 0x556   : > { %2341 = vadd.xlane.f32.xlu1 %v5807_v30  ;;  %4413 = vrcp.f32 %v1892_v25  ;;  %v5817_v52 = vpop.eup %4405  ;;  %v6495_v25 = vld [vmem:[#allocation39_spill] sm:$0xff] }
 0x557   : > { %v1890_v33 = vpop.xlane.xlu1 %1889  ;;  %v1902_v24 = vpop.xlane.xlu0 %1901  ;;  %v2286_v49 = vsub.f32 %v6495_v25, %v5794_v1 }
 0x558   : > { %4415 = vrcp.f32 %v1890_v33  ;;  %v5819_v31 = vpop.eup %4407 }
 0x559   : > { %4417 = vpow2.f32 %v2313_v19  ;;  %v2315_v44 = vmul.f32 1.442695, %v2286_v49  ;;  %v6516_v49 = vld [vmem:[#allocation20_spill] sm:$0xff] }
 0x55a   : > { %2337 = vadd.xlane.f32.xlu1 %v5811_v20  ;;  %4419 = vrcp.f32 %v1902_v24 }
 0x55b   : > { %v1896_v23 = vpop.xlane.xlu1 %1895  ;;  %v1898_v59 = vpop.xlane.xlu0 %1897 }
 0x55c   : > { %4421 = vrcp.f32 %v1896_v23  ;;  %v6498_v23 = vld [vmem:[#allocation40_spill] sm:$0xff] }
 0x55d   : > { %4423 = vrcp.f32 %v1898_v59  ;;  %v6499_v59 = vld [vmem:[#allocation41_spill] sm:$0xff] }
 0x55e   : > { %2343 = vadd.xlane.f32.xlu1 %v5814_v22  ;;  %4425 = vrcp.f32 %v1900_v55 }
 0x55f   : > { %4427 = vpow2.f32 %v2319_v13  ;;  %v1908_v60 = vpop.xlane.xlu0 %1907 }
 0x561   : > { %v4410_v57 = vpop.eup %4409 }
 0x562   : > { %2339 = vadd.xlane.f32.xlu1 %v5817_v52  ;;  %v4412_v62 = vpop.eup %4411  ;;  %v1938_v7 = vmul.f32 %v4410_v57, %v5675_v38 }
 0x563   : > { %v1906_v43 = vpop.xlane.xlu1 %1905  ;;  %v4414_v6 = vpop.eup %4413  ;;  %v1935_v36 = vmul.f32 %v4412_v62, %v5670_v58  ;;  %v6501_v62 = vld [vmem:[#allocation24_spill] sm:$0xff] }
 0x564   : > { %v1904_v39 = vpop.xlane.xlu0 %1903  ;;  %4429 = vrcp.f32 %v1906_v43  ;;  %v1937_v17 = vmul.f32 %v4414_v6, %v5666_v53  ;;  %v6502_v6 = vld [vmem:[#allocation19_spill] sm:$0xff] }
 0x565   : > { %v4416_v40 = vpop.eup %4415  ;;  %4431 = vrcp.f32 %v1904_v39  ;;  %v6503_v39 = vld [vmem:[#allocation44_spill] sm:$0xff] }
 0x566   : > { %2349 = vadd.xlane.f32.xlu1 %v5819_v31  ;;  %v1936_v26 = vmul.f32 %v4416_v40, %v5682_v46  ;;  %v5826_v32 = vpop.eup %4417  ;;  %4433 = vrcp.f32 %v1908_v60  ;;  %v1952_v38 = vpack.c.bf16 %v1938_v7, %v1937_v17  ;;  %v6504_v7 = vld [vmem:[#allocation42_spill] sm:$0xff] }
 0x567   : > { %v4420_v2 = vpop.eup %4419  ;;  %2538 = vrot.lane.b32.xlu0 %v6493_v9, %s4701_s12  ;;  %v6505_v17 = vld [vmem:[#allocation22_spill] sm:$0xff] }
 0x568   : > { %v1910_v12 = vpop.xlane.xlu0 %1909  ;;  %v1951_v28 = vpack.c.bf16 %v1936_v26, %v1935_v36  ;;  %v1942_v45 = vmul.f32 %v4420_v2, %v5685_v4 }
 0x569   : > { %v4422_v16 = vpop.eup %4421  ;;  %4435 = vrcp.f32 %v1910_v12  ;;  %v6506_v12 = vld [vmem:[#allocation30_spill] sm:$0xff] }
 0x56a   : > { %v4424_v42 = vpop.eup %4423  ;;  %2345 = vadd.xlane.f32.xlu1 %v5826_v32  ;;  %3900 = vmatprep.mubr.bf16.mxu1 %v1951_v28  ;;  %v1939_v58 = vmul.f32 %v4422_v16, %v5689_v11  ;;  %v6507_v28 = vld [vmem:[#allocation43_spill] sm:$0xff] }
 0x56b   : > { %3901 = vmatmul.mubr.bf16.vlgmr.msra.gmra.mxu1 %v1952_v38  ;;  %v1940_v46 = vmul.f32 %v4424_v42, %v5692_v10  ;;  %v4426_v61 = vpop.eup %4425  ;;  %v1914_v54 = vpop.xlane.xlu1 %1913  ;;  %v6508_v38 = vld [vmem:[#allocation45_spill] sm:$0xff] }
 0x56c   : > { %v1916_v53 = vpop.xlane.xlu0 %1915  ;;  %3949 = vmatpush3.bf16.msra.mxu1 %v5764_v63  ;;  %v5835_v48 = vpop.eup %4427  ;;  %4437 = vrcp.f32 %v1914_v54  ;;  %v1941_v11 = vmul.f32 %v4426_v61, %v5678_v18  ;;  %v6511_v54 = vld [vmem:[#allocation16_spill] sm:$0xff] }
 0x56d   : > { %3950 = vmatprep.subr.bf16.mxu1 %v6494_v51  ;;  %v1953_v50 = vpack.c.bf16 %v1940_v46, %v1939_v58  ;;  %v6509_v58 = vld [vmem:[#allocation21_spill] sm:$0xff] }
 0x56e   : > { %2351 = vadd.xlane.f32.xlu1 %v5835_v48  ;;  %v1954_v37 = vpack.c.bf16 %v1942_v45, %v1941_v11  ;;  %v6513_v45 = vld [vmem:[#allocation33_spill] sm:$0xff]  ;;  %v6514_v11 = vld [vmem:[#allocation12_spill] sm:$0xff] }
 0x56f   : > { %3904 = vmatprep.mubr.bf16.mxu1 %v1953_v50  ;;  %v6512_v50 = vld [vmem:[#allocation32_spill] sm:$0xff] }
 0x570   : > { %v1912_v21 = vpop.xlane.xlu0 %1911  ;;  %3951 = vmatpush3.bf16.msra.mxu1 %v6494_v51 }
 0x571   : > { %v4430_v10 = vpop.eup %4429  ;;  %4439 = vrcp.f32 %v1912_v21  ;;  %3952 = vmatprep.subr.bf16.mxu1 %v6496_v3 }
 0x572   : > { %v4432_v55 = vpop.eup %4431  ;;  %v1944_v4 = vmul.f32 %v4430_v10, %v5701_v5  ;;  %4441 = vrcp.f32 %v1916_v53  ;;  %v6500_v5 = vld [vmem:[#allocation25_spill] sm:$0xff]  ;;  %v6510_v53 = vld [vmem:[#allocation31_spill] sm:$0xff]  ;;  %v6515_v10 = vld [vmem:[#allocation14_spill] sm:$0xff] }
 0x573   : > { %3905 = vmatmul.mubr.bf16.gmra.mxu1 %v1954_v37  ;;  %v1943_v19 = vmul.f32 %v4432_v55, %v5703_v8  ;;  %v4434_v33 = vpop.eup %4433  ;;  %v6517_v55 = vld [vmem:[#allocation13_spill] sm:$0xff] }
 0x574   : > { %v1918_v18 = vpop.xlane.xlu0 %1917  ;;  %3953 = vmatpush3.bf16.msra.mxu1 %v6496_v3  ;;  %v1945_v13 = vmul.f32 %v4434_v33, %v6498_v23 }
 0x575   : > { %4443 = vrcp.f32 %v1918_v18  ;;  %3954 = vmatprep.subr.bf16.mxu1 %v6497_v35  ;;  %v1955_v1 = vpack.c.bf16 %v1944_v4, %v1943_v19  ;;  %v6518_v19 = vld [vmem:[#allocation15_spill] sm:$0xff] }
 0x576   : > { %v4436_v24 = vpop.eup %4435  ;;  %4445 = vpow2.f32 %v2315_v44 }
 0x577   : > { %3908 = vmatprep.mubr.bf16.mxu1 %v1955_v1  ;;  %v1946_v60 = vmul.f32 %v4436_v24, %v6499_v59 }
 0x578   : > { %3955 = vmatpush3.bf16.msra.mxu1 %v6497_v35 }
 0x579   : > { %3956 = vmatprep.subr.bf16.mxu1 %v6500_v5  ;;  %v1956_v8 = vpack.c.bf16 %v1946_v60, %v1945_v13  ;;  %v4438_v57 = vpop.eup %4437  ;;  %v6519_v60 = vld [vmem:[#allocation29_spill] sm:$0xff] }
 0x57a   : > { %v1948_v36 = vmul.f32 %v4438_v57, %v6504_v7  ;;  %v2586_v7 = vsel %vm1211_vm0, %v5776_v27, 0 }
 0x57b   : > { %3909 = vmatmul.mubr.bf16.gmra.mxu1 %v1956_v8 }
 0x57c   : > { %3957 = vmatpush3.bf16.msra.mxu1 %v6500_v5 }
 0x57d   : > { %3958 = vmatprep.subr.bf16.mxu1 %v6501_v62 }
 0x57e   : > { %v4440_v43 = vpop.eup %4439 }
 0x57f   : > { %2530 = vrot.lane.b32.xlu1 %v6502_v6, %s4701_s12  ;;  %v1947_v40 = vmul.f32 %v4440_v43, %v6503_v39  ;;  %v4442_v26 = vpop.eup %4441 }
 0x580   : > { %3959 = vmatpush3.bf16.msra.mxu1 %v6501_v62  ;;  %v1949_v16 = vmul.f32 %v4442_v26, %v6507_v28 }
 0x581   : > { %3960 = vmatprep.subr.bf16.mxu1 %v6505_v17  ;;  %v1957_v2 = vpack.c.bf16 %v1948_v36, %v1947_v40 }
 0x582   : > { %v4444_v9 = vpop.eup %4443 }
 0x583   : > { %2506 = vrot.lane.b32.xlu1 %v6506_v12, %s4701_s12  ;;  %3912 = vmatprep.mubr.bf16.mxu1 %v1957_v2  ;;  %v1950_v42 = vmul.f32 %v4444_v9, %v6508_v38  ;;  %v5867_v61 = vpop.eup %4445 }
 0x584   : > { %3961 = vmatpush3.bf16.msra.mxu1 %v6505_v17 }
 0x585   : > { %3962 = vmatprep.subr.bf16.mxu1 %v6509_v58  ;;  %v1958_v46 = vpack.c.bf16 %v1950_v42, %v1949_v16 }
 0x586   : > { %2347 = vadd.xlane.f32.xlu0 %v5867_v61 }
 0x587   : > { %2508 = vrot.lane.b32.xlu1 %v6510_v53, %s4701_s12  ;;  %3913 = vmatmul.mubr.bf16.gmra.mxu1 %v1958_v46 }
 0x588   : > { %3963 = vmatpush3.bf16.msra.mxu1 %v6509_v58 }
 0x589   : > { %4084 = vmatprep.subr.msk.bf16.mxu1 %vm1211_vm0, %v6511_v54 }
 0x58b   : > { %2510 = vrot.lane.b32.xlu1 %v6512_v50, %s4701_s12 }
 0x58f   : > { %2512 = vrot.lane.b32.xlu1 %v6513_v45, %s4701_s12 }
 0x592   : > { %v2326_v21 = vpop.xlane.xlu1 %2325 }
 0x593   : > { %2514 = vrot.lane.b32.xlu1 %v6514_v11, %s4701_s12 }
 0x597   : > { %2518 = vrot.lane.b32.xlu1 %v6515_v10, %s4701_s12 }
 0x59a   : > { %v2322_v25 = vpop.xlane.xlu1 %2321 }
 0x59b   : > { %2863 = vrot.lane.b32.xlu1 %v6494_v51, %s4701_s12 }
 0x59c   : > { %2532 = vrot.lane.b32.xlu0 %v6516_v49, %s4701_s12 }
 0x59e   : > { %v2328_v37 = vpop.xlane.xlu1 %2327 }
 0x59f   : > { %4447 = vrcp.f32 %v2328_v37 }
 0x5a0   : > { %4449 = vrcp.f32 %v2322_v25  ;;  %2516 = vrot.lane.b32.xlu0 %v6517_v55, %s4701_s12 }
 0x5a1   : > { %4451 = vrcp.f32 %v2326_v21 }
 0x5a2   : > { %v2324_v4 = vpop.xlane.xlu1 %2323 }
 0x5a3   : > { %4453 = vrcp.f32 %v2324_v4 }
 0x5a4   : > { %2520 = vrot.lane.b32.xlu0 %v6518_v19, %s4701_s12 }
 0x5a6   : > { %v2537_v38 = vpop.permute.xlu1 %2536 }
 0x5a7   : > { %v2580_v55 = vsel %vm1211_vm0, %v2537_v38, 0 }
 0x5a8   : > { %2865 = vrot.lane.b32.xlu0 %v5764_v63, %s4701_s12 }
 0x5aa   : > { %v2535_v46 = vpop.permute.xlu1 %2534 }
 0x5ac   : > { %v4448_v33 = vpop.eup %4447  ;;  %2861 = vrot.lane.b32.xlu0 %v6496_v3, %s4701_s12  ;;  %v2592_v3 = vsel %vm1211_vm0, %v6511_v54, 0 }
 0x5ad   : > { %v4450_v51 = vpop.eup %4449  ;;  %v2372_v1 = vmul.f32 %v4448_v33, %v5760_v29 }
 0x5ae   : > { %v4452_v18 = vpop.eup %4451  ;;  %v2369_v24 = vmul.f32 %v4450_v51, %v5755_v56 }
 0x5af   : > { %v2371_v13 = vmul.f32 %v4452_v18, %v5748_v47 }
 0x5b0   : > { %v4454_v44 = vpop.eup %4453  ;;  %2859 = vrot.lane.b32.xlu0 %v6497_v35, %s4701_s12 }
 0x5b1   : > { %v2370_v23 = vmul.f32 %v4454_v44, %v5769_v14  ;;  %v2386_v63 = vpack.c.bf16 %v2372_v1, %v2371_v13  ;;  %v2589_v14 = vsel %vm1211_vm0, %v6519_v60, 0 }
 0x5b3   : > { %v2385_v59 = vpack.c.bf16 %v2370_v23, %v2369_v24 }
 0x5b5   : > { %3964 = vmatprep.mubr.bf16.mxu1 %v2385_v59  ;;  %v2577_v59 = vsel %vm1211_vm0, %v2535_v46, 0 }
 0x5b6   : > { %3965 = vmatmul.mubr.bf16.vlgmr.msra.gmra.mxu1 %v2386_v63 }
 0x5b7   : > { %3981 = vmatpush3.bf16.xpose.msra.mxu1 %v2592_v3 }
 0x5b8   : > { %4085 = vmatprep.subr.msk.bf16.mxu1 %vm1211_vm0, %v6519_v60 }
 0x5b9   : > { %v5905_v29 = vpop.f32.mrf.mxu1 }
 0x5bb   : > { %v5907_v35 = vpop.f32.mrf.mxu1 }
 0x5bd   : > { %v5909_v56 = vpop.f32.mrf.mxu1 }
 0x5bf   : > { %3983 = vmatpush3.bf16.xpose.msra.mxu1 %v2589_v14  ;;  %v5915_v8 = vpop.f32.mrf.mxu1 }
 0x5c0   : > { %4086 = vmatprep.subr.msk.bf16.mxu1 %vm1211_vm0, %v5776_v27 }
 0x5c1   : > { %v5921_v43 = vpop.f32.mrf.mxu1 }
 0x5c2   : > { %6520 = vst [vmem:[#allocation18_spill] sm:$0xff] %v5921_v43 }
 0x5c3   : > { %v5923_v6 = vpop.f32.mrf.mxu1 }
 0x5c5   : > { %v5925_v39 = vpop.f32.mrf.mxu1 }
 0x5c6   : > { %6521 = vst [vmem:[#allocation17_spill] sm:$0xff] %v5925_v39 }
 0x5c7   : > { %3985 = vmatpush3.bf16.xpose.msra.mxu1 %v2586_v7  ;;  %v5931_v36 = vpop.f32.mrf.mxu1 }
 0x5c9   : > { %v5935_v2 = vpop.f32.mrf.mxu1 }
 0x5ca   : > { %6522 = vst [vmem:[#allocation34_spill] sm:$0xff] %v5935_v2 }
 0x5cb   : > { %v5937_v9 = vpop.f32.mrf.mxu1 }
 0x5cc   : > { %6523 = vst [vmem:[#allocation35_spill] sm:$0xff] %v5937_v9 }
 0x5cd   : > { %v5939_v12 = vpop.f32.mrf.mxu1 }
 0x5ce   : > { %6524 = vst [vmem:[#allocation36_spill] sm:$0xff] %v5939_v12 }
 0x5cf   : > { %v5943_v16 = vpop.f32.mrf.mxu1 }
 0x5d0   : > { %6525 = vst [vmem:[#allocation37_spill] sm:$0xff] %v5943_v16 }
 0x5d2   : > { %v2334_v42 = vpop.xlane.xlu0 %2333 }
 0x5d3   : > { %4455 = vrcp.f32 %v2334_v42 }
 0x5d6   : > { %v2330_v53 = vpop.xlane.xlu0 %2329 }
 0x5d7   : > { %4457 = vrcp.f32 %v2330_v53 }
 0x5da   : > { %v2336_v54 = vpop.xlane.xlu0 %2335 }
 0x5db   : > { %v2332_v50 = vpop.xlane.xlu1 %2331  ;;  %4459 = vrcp.f32 %v2336_v54 }
 0x5dc   : > { %4461 = vrcp.f32 %v2332_v50 }
 0x5de   : > { %v2539_v45 = vpop.permute.xlu0 %2538 }
 0x5df   : > { %v2342_v11 = vpop.xlane.xlu1 %2341  ;;  %v2583_v21 = vsel %vm1211_vm0, %v2539_v45, 0  ;;  %4087 = vmatprep.subr.msk.bf16.mxu1 %vm1211_vm0, %v2539_v45 }
 0x5e0   : > { %3987 = vmatpush3.bf16.xpose.msra.mxu1 %v2583_v21  ;;  %v4456_v25 = vpop.eup %4455 }
 0x5e1   : > { %4088 = vmatprep.subr.msk.bf16.mxu1 %vm1211_vm0, %v2537_v38  ;;  %v2375_v33 = vmul.f32 %v4456_v25, %v5790_v41 }
 0x5e3   : > { %v2338_v10 = vpop.xlane.xlu1 %2337 }
 0x5e4   : > { %v4458_v37 = vpop.eup %4457 }
 0x5e5   : > { %v2373_v44 = vmul.f32 %v4458_v37, %v5797_v15 }
 0x5e7   : > { %v2344_v49 = vpop.xlane.xlu1 %2343 }
 0x5e8   : > { %v4460_v4 = vpop.eup %4459  ;;  %4463 = vrcp.f32 %v2344_v49  ;;  %3989 = vmatpush3.bf16.xpose.msra.mxu1 %v2580_v55 }
 0x5e9   : > { %v4462_v19 = vpop.eup %4461  ;;  %4465 = vrcp.f32 %v2338_v10  ;;  %4089 = vmatprep.subr.msk.bf16.mxu1 %vm1211_vm0, %v2535_v46  ;;  %v2376_v51 = vmul.f32 %v4460_v4, %v5800_v0 }
 0x5ea   : > { %4467 = vrcp.f32 %v2342_v11  ;;  %v2374_v1 = vmul.f32 %v4462_v19, %v5802_v34 }
 0x5eb   : > { %v2340_v18 = vpop.xlane.xlu1 %2339  ;;  %v2388_v24 = vpack.c.bf16 %v2376_v51, %v2375_v33 }
 0x5ec   : > { %4469 = vrcp.f32 %v2340_v18  ;;  %v2387_v23 = vpack.c.bf16 %v2374_v1, %v2373_v44 }
 0x5ee   : > { %3968 = vmatprep.mubr.bf16.mxu1 %v2387_v23 }
 0x5ef   : > { %v2350_v13 = vpop.xlane.xlu1 %2349  ;;  %3969 = vmatmul.mubr.bf16.gmra.mxu1 %v2388_v24 }
 0x5f0   : > { %3991 = vmatpush3.bf16.xpose.msra.mxu1 %v2577_v59 }
 0x5f3   : > { %v2346_v63 = vpop.xlane.xlu1 %2345 }
 0x5f5   : > { %v4464_v3 = vpop.eup %4463 }
 0x5f6   : > { %v4466_v41 = vpop.eup %4465  ;;  %v2380_v7 = vmul.f32 %v4464_v3, %v5814_v22 }
 0x5f7   : > { %v2352_v60 = vpop.xlane.xlu1 %2351  ;;  %v4468_v0 = vpop.eup %4467  ;;  %v2377_v15 = vmul.f32 %v4466_v41, %v5811_v20 }
 0x5f8   : > { %v2379_v42 = vmul.f32 %v4468_v0, %v5807_v30  ;;  %4471 = vrcp.f32 %v2352_v60 }
 0x5f9   : > { %v4470_v14 = vpop.eup %4469  ;;  %4473 = vrcp.f32 %v2346_v63 }
 0x5fa   : > { %v2378_v34 = vmul.f32 %v4470_v14, %v5817_v52  ;;  %v2390_v54 = vpack.c.bf16 %v2380_v7, %v2379_v42  ;;  %4475 = vrcp.f32 %v2350_v13 }
 0x5fb   : > { %v2531_v38 = vpop.permute.xlu1 %2530 }
 0x5fc   : > { %v2389_v53 = vpack.c.bf16 %v2378_v34, %v2377_v15  ;;  %v2571_v1 = vsel %vm1211_vm0, %v2531_v38, 0 }
 0x5fe   : > { %3972 = vmatprep.mubr.bf16.mxu1 %v2389_v53 }
 0x5ff   : > { %v2507_v46 = vpop.permute.xlu1 %2506  ;;  %3973 = vmatmul.mubr.bf16.gmra.mxu1 %v2390_v54 }
 0x603   : > { %v2509_v50 = vpop.permute.xlu1 %2508 }
 0x605   : > { %v4472_v19 = vpop.eup %4471 }
 0x606   : > { %v5961_v45 = vpop.f32.mrf.mxu1  ;;  %v4474_v33 = vpop.eup %4473  ;;  %v2384_v23 = vmul.f32 %v4472_v19, %v5835_v48 }
 0x607   : > { %6526 = vst [vmem:[#allocation38_spill] sm:$0xff] %v5961_v45  ;;  %v2511_v21 = vpop.permute.xlu1 %2510  ;;  %v4476_v44 = vpop.eup %4475  ;;  %v2381_v13 = vmul.f32 %v4474_v33, %v5826_v32 }
 0x608   : > { %v5963_v11 = vpop.f32.mrf.mxu1  ;;  %v2383_v3 = vmul.f32 %v4476_v44, %v5819_v31 }
 0x609   : > { %6527 = vst [vmem:[#allocation23_spill] sm:$0xff] %v5963_v11 }
 0x60a   : > { %v5965_v10 = vpop.f32.mrf.mxu1  ;;  %v2392_v0 = vpack.c.bf16 %v2384_v23, %v2383_v3 }
 0x60b   : > { %6528 = vst [vmem:[#allocation28_spill] sm:$0xff] %v5965_v10  ;;  %v2513_v52 = vpop.permute.xlu1 %2512 }
 0x60c   : > { %v5969_v22 = vpop.f32.mrf.mxu1 }
 0x60d   : > { %6529 = vst [vmem:[#allocation39_spill] sm:$0xff] %v5969_v22 }
 0x60f   : > { %v2348_v25 = vpop.xlane.xlu0 %2347  ;;  %v2515_v55 = vpop.permute.xlu1 %2514 }
 0x610   : > { %4477 = vrcp.f32 %v2348_v25 }
 0x613   : > { %v2533_v49 = vpop.permute.xlu0 %2532  ;;  %v2519_v51 = vpop.permute.xlu1 %2518 }
 0x614   : > { %v2574_v37 = vsel %vm1211_vm0, %v2533_v49, 0  ;;  %4090 = vmatprep.subr.msk.bf16.mxu1 %vm1211_vm0, %v2533_v49 }
 0x615   : > { %3993 = vmatpush3.bf16.xpose.msra.mxu1 %v2574_v37 }
 0x616   : > { %4091 = vmatprep.subr.msk.bf16.mxu1 %vm1211_vm0, %v2531_v38 }
 0x617   : > { %v2517_v4 = vpop.permute.xlu0 %2516  ;;  %v2864_v60 = vpop.permute.xlu1 %2863 }
 0x61b   : > { %v2521_v18 = vpop.permute.xlu0 %2520 }
 0x61d   : > { %v4478_v24 = vpop.eup %4477  ;;  %3995 = vmatpush3.bf16.xpose.msra.mxu1 %v2571_v1 }
 0x61e   : > { %v2382_v59 = vmul.f32 %v4478_v24, %v5867_v61 }
 0x61f   : > { %v2866_v63 = vpop.permute.xlu0 %2865 }
 0x620   : > { %4012 = vmatprep.subr.bf16.mxu0 %v2866_v63  ;;  %v2391_v41 = vpack.c.bf16 %v2382_v59, %v2381_v13 }
 0x621   : > { %4013 = vmatpush3.bf16.msra.mxu0 %v2866_v63 }
 0x622   : > { %3976 = vmatprep.mubr.bf16.mxu1 %v2391_v41  ;;  %4014 = vmatprep.subr.bf16.mxu0 %v2864_v60 }
 0x623   : > { %v2862_v14 = vpop.permute.xlu0 %2861  ;;  %3977 = vmatmul.mubr.bf16.gmra.mxu1 %v2392_v0 }
 0x624   : > { %3996 = vmatprep.mubr.msk.bf16.mxu1 %vm1211_vm0, %v2507_v46 }
 0x625   : > { %4015 = vmatpush3.bf16.msra.mxu0 %v2864_v60 }
 0x626   : > { %4016 = vmatprep.subr.bf16.mxu0 %v2862_v14 }
 0x627   : > { %v2860_v48 = vpop.permute.xlu0 %2859 }
 0x629   : > { %4017 = vmatpush3.bf16.msra.mxu0 %v2862_v14 }
 0x62a   : > { %4018 = vmatprep.subr.bf16.mxu0 %v2860_v48 }
 0x62b   : > { %v5982_v32 = vpop.f32.mrf.mxu1  ;;  %3997 = vmatmul.mubr.msk.bf16.vlgmr.msra.gmra.mxu1 %vm1211_vm0, %v2509_v50 }
 0x62c   : > { %4000 = vmatprep.mubr.msk.bf16.mxu1 %vm1211_vm0, %v2511_v21 }
 0x62d   : > { %v5986_v31 = vpop.f32.mrf.mxu1  ;;  %4019 = vmatpush3.bf16.msra.mxu0 %v2860_v48 }
 0x62f   : > { %v5988_v61 = vpop.f32.mrf.mxu1 }
 0x631   : > { %v5992_v15 = vpop.f32.mrf.mxu1 }
 0x633   : > { %v5996_v38 = vpop.f32.mrf.mxu1  ;;  %4001 = vmatmul.mubr.msk.bf16.gmra.mxu1 %vm1211_vm0, %v2513_v52 }
 0x634   : > { %4004 = vmatprep.mubr.msk.bf16.mxu1 %vm1211_vm0, %v2515_v55 }
 0x635   : > { %v6000_v42 = vpop.f32.mrf.mxu1 }
 0x637   : > { %v6002_v53 = vpop.f32.mrf.mxu1 }
 0x639   : > { %v6006_v46 = vpop.f32.mrf.mxu1 }
 0x63b   : > { %v6010_v21 = vpop.f32.mrf.mxu1  ;;  %4005 = vmatmul.mubr.msk.bf16.gmra.mxu1 %vm1211_vm0, %v2517_v4 }
 0x63c   : > { %4008 = vmatprep.mubr.msk.bf16.mxu1 %vm1211_vm0, %v2519_v51 }
 0x63d   : > { %v6014_v52 = vpop.f32.mrf.mxu1 }
 0x63f   : > { %v6016_v25 = vpop.f32.mrf.mxu1 }
 0x641   : > { %v6020_v37 = vpop.f32.mrf.mxu1 }
 0x643   : > { %4009 = vmatmul.mubr.msk.bf16.gmra.mxu1 %vm1211_vm0, %v2521_v18 }
 0x647   : > { %v6025_v19 = vpop.f32.mrf.mxu1 }
 0x649   : > { %v6027_v33 = vpop.f32.mrf.mxu1 }
 0x64b   : > { %v6029_v4 = vpop.f32.mrf.mxu1 }
 0x64d   : > { %v6033_v44 = vpop.f32.mrf.mxu1 }
 0x676   : > { %v6037_v24 = vpop.f32.mrf.mxu1 }
 0x678   : > { %v6039_v23 = vpop.f32.mrf.mxu1 }
 0x67a   : > { %v6041_v13 = vpop.f32.mrf.mxu1 }
 0x67c   : > { %v6045_v59 = vpop.f32.mrf.mxu1 }
 0x6af   : > { %v6049_v3 = vpop.f32.mrf.mxu1 }
 0x6b0   : > { %6530 = vst [vmem:[#allocation27_spill] sm:$0xff] %v6049_v3 }
 0x6b1   : > { %v6051_v41 = vpop.f32.mrf.mxu1 }
 0x6b3   : > { %v6053_v60 = vpop.f32.mrf.mxu1 }
 0x6b5   : > { %v6057_v14 = vpop.f32.mrf.mxu1 }
 0x6bf   : > { %v6061_v20 = vpop.f32.mrf.mxu1 }
 0x6c0   : > { %6531 = vst [vmem:[#allocation26_spill] sm:$0xff] %v6061_v20 }
 0x6c1   : > { %v6063_v30 = vpop.f32.mrf.mxu1 }
 0x6c2   : > { %6532 = vst [vmem:[#allocation40_spill] sm:$0xff] %v6063_v30 }
 0x6c3   : > { %v6065_v28 = vpop.f32.mrf.mxu1 }
 0x6c4   : > { %6533 = vst [vmem:[#allocation41_spill] sm:$0xff] %v6065_v28 }
 0x6c5   : > { %v6069_v40 = vpop.f32.mrf.mxu1 }
 0x6c6   : > { %6534 = vst [vmem:[#allocation25_spill] sm:$0xff] %v6069_v40 }
 0x6e3   : > { %v6073_v0 = vpop.f32.mrf.mxu1 }
 0x6e4   : > { %6535 = vst [vmem:[#allocation24_spill] sm:$0xff] %v6073_v0 }
 0x6e5   : > { %v6075_v47 = vpop.f32.mrf.mxu1 }
 0x6e6   : > { %6536 = vst [vmem:[#allocation19_spill] sm:$0xff] %v6075_v47 }
 0x6e7   : > { %v6077_v18 = vpop.f32.mrf.mxu1 }
 0x6e8   : > { %6537 = vst [vmem:[#allocation44_spill] sm:$0xff] %v6077_v18 }
 0x6e9   : > { %v6081_v57 = vpop.f32.mrf.mxu1 }
 0x6ea   : > { %6538 = vst [vmem:[#allocation42_spill] sm:$0xff] %v6081_v57 }
 0x6eb   : > { %v3998_v27 = vpop.f32.mrf.mxu1 }
 0x6ec   : > { %2695 = vmax.xlane.f32.xlu0 %v3998_v27 }
 0x6ed   : > { %v2628_v51 = vpop.f32.mrf.mxu1 }
 0x6ee   : > { %2691 = vmax.xlane.f32.xlu1 %v2628_v51 }
 0x6ef   : > { %v3999_v1 = vpop.f32.mrf.mxu1 }
 0x6f1   : > { %v2631_v26 = vpop.f32.mrf.mxu1 }
 0x6f2   : > { %2697 = vmax.xlane.f32.xlu1 %v3999_v1  ;;  %2693 = vmax.xlane.f32.xlu0 %v2631_v26 }
 0x6f3   : > { %v4002_v49 = vpop.f32.mrf.mxu1 }
 0x6f5   : > { %v2644_v55 = vpop.f32.mrf.mxu1 }
 0x6f6   : > { %2703 = vmax.xlane.f32.xlu0 %v4002_v49 }
 0x6f7   : > { %v4003_v54 = vpop.f32.mrf.mxu1 }
 0x6f8   : > { %2705 = vmax.xlane.f32.xlu1 %v4003_v54 }
 0x6f9   : > { %v2647_v50 = vpop.f32.mrf.mxu1 }
 0x6fa   : > { %2699 = vmax.xlane.f32.xlu0 %v2644_v55 }
 0x6fb   : > { %v6085_v48 = vpop.f32.mrf.mxu1 }
 0x6fc   : > { %2701 = vmax.xlane.f32.xlu1 %v2647_v50 }
 0x6fd   : > { %v6087_v7 = vpop.f32.mrf.mxu1 }
 0x6fe   : > { %2711 = vmax.xlane.f32.xlu0 %v6085_v48 }
 0x6ff   : > { %v6090_v63 = vpop.f32.mrf.mxu1 }
 0x700   : > { %2713 = vmax.xlane.f32.xlu1 %v6090_v63 }
 0x701   : > { %v6093_v34 = vpop.f32.mrf.mxu1 }
 0x702   : > { %2707 = vmax.xlane.f32.xlu0 %v6087_v7 }
 0x703   : > { %v6097_v45 = vpop.f32.mrf.mxu1 }
 0x704   : > { %2709 = vmax.xlane.f32.xlu1 %v6093_v34 }
 0x705   : > { %v6100_v10 = vpop.f32.mrf.mxu1 }
 0x706   : > { %2719 = vmax.xlane.f32.xlu0 %v6097_v45 }
 0x707   : > { %v6107_v0 = vpop.f32.mrf.mxu1 }
 0x709   : > { %v6110_v18 = vpop.f32.mrf.mxu1 }
 0x70a   : > { %2715 = vmax.xlane.f32.xlu0 %v6100_v10 }
 0x715   : > { %2855 = vrot.lane.b32.xlu1 %v6501_v62, %s4701_s12 }
 0x720   : > { %2857 = vrot.lane.b32.xlu0 %v6500_v5, %s4701_s12 }
 0x739   : > { %2721 = vmax.xlane.f32.xlu1 %v6107_v0 }
 0x73d   : > { %2717 = vmax.xlane.f32.xlu1 %v6110_v18 }
 0x775   : > { %v2696_v11 = vpop.xlane.xlu0 %2695 }
 0x776   : > { %v2725_v22 = vsub.f32 %v3998_v27, %v2696_v11 }
 0x777   : > { %v2692_v47 = vpop.xlane.xlu1 %2691 }
 0x778   : > { %v2743_v57 = vmul.f32 1.442695, %v2725_v22  ;;  %v2723_v2 = vsub.f32 %v2628_v51, %v2692_v47 }
 0x77a   : > { %4479 = vpow2.f32 %v2743_v57  ;;  %v2739_v12 = vmul.f32 1.442695, %v2723_v2 }
 0x77b   : > { %v2698_v20 = vpop.xlane.xlu1 %2697  ;;  %v2694_v62 = vpop.xlane.xlu0 %2693 }
 0x77c   : > { %v2726_v28 = vsub.f32 %v3999_v1, %v2698_v20  ;;  %4481 = vpow2.f32 %v2739_v12  ;;  %v2724_v9 = vsub.f32 %v2631_v26, %v2694_v62 }
 0x77e   : > { %v2745_v5 = vmul.f32 1.442695, %v2726_v28  ;;  %v2741_v43 = vmul.f32 1.442695, %v2724_v9 }
 0x77f   : > { %v2704_v16 = vpop.xlane.xlu0 %2703 }
 0x780   : > { %v2729_v30 = vsub.f32 %v4002_v49, %v2704_v16  ;;  %4483 = vpow2.f32 %v2745_v5 }
 0x781   : > { %v2706_v40 = vpop.xlane.xlu1 %2705 }
 0x782   : > { %v2751_v39 = vmul.f32 1.442695, %v2729_v30  ;;  %v2730_v27 = vsub.f32 %v4003_v54, %v2706_v40 }
 0x783   : > { %v2700_v3 = vpop.xlane.xlu0 %2699 }
 0x784   : > { %4485 = vpow2.f32 %v2751_v39  ;;  %v2727_v11 = vsub.f32 %v2644_v55, %v2700_v3  ;;  %v2753_v12 = vmul.f32 1.442695, %v2730_v27 }
 0x785   : > { %v2702_v22 = vpop.xlane.xlu1 %2701  ;;  %4487 = vpow2.f32 %v2741_v43 }
 0x786   : > { %v2747_v47 = vmul.f32 1.442695, %v2727_v11  ;;  %v2728_v57 = vsub.f32 %v2647_v50, %v2702_v22 }
 0x787   : > { %v6113_v2 = vpop.eup %4479  ;;  %v2712_v20 = vpop.xlane.xlu0 %2711 }
 0x788   : > { %4489 = vpow2.f32 %v2747_v47  ;;  %v2749_v26 = vmul.f32 1.442695, %v2728_v57  ;;  %2775 = vadd.xlane.f32.xlu1 %v6113_v2  ;;  %v2733_v22 = vsub.f32 %v6085_v48, %v2712_v20 }
 0x789   : > { %v6116_v28 = vpop.eup %4481  ;;  %v2714_v39 = vpop.xlane.xlu1 %2713 }
 0x78a   : > { %4491 = vpow2.f32 %v2749_v26  ;;  %v2734_v27 = vsub.f32 %v6090_v63, %v2714_v39 }
 0x78b   : > { %v2708_v9 = vpop.xlane.xlu0 %2707  ;;  %4493 = vpow2.f32 %v2753_v12  ;;  %v2759_v12 = vmul.f32 1.442695, %v2733_v22 }
 0x78c   : > { %2771 = vadd.xlane.f32.xlu1 %v6116_v28  ;;  %v2731_v62 = vsub.f32 %v6087_v7, %v2708_v9  ;;  %v2761_v57 = vmul.f32 1.442695, %v2734_v27 }
 0x78d   : > { %v6119_v40 = vpop.eup %4483  ;;  %v2710_v54 = vpop.xlane.xlu1 %2709 }
 0x78e   : > { %v2732_v5 = vsub.f32 %v6093_v34, %v2710_v54  ;;  %v2755_v11 = vmul.f32 1.442695, %v2731_v62 }
 0x78f   : > { %v2720_v43 = vpop.xlane.xlu0 %2719 }
 0x790   : > { %2777 = vadd.xlane.f32.xlu1 %v6119_v40  ;;  %v2757_v47 = vmul.f32 1.442695, %v2732_v5  ;;  %4495 = vpow2.f32 %v2755_v11 }
 0x791   : > { %v6122_v16 = vpop.eup %4485  ;;  %v2856_v3 = vpop.permute.xlu1 %2855 }
 0x792   : > { %2783 = vadd.xlane.f32.xlu0 %v6122_v16  ;;  %v6125_v30 = vpop.eup %4487  ;;  %4497 = vpow2.f32 %v2757_v47 }
 0x793   : > { %v2716_v50 = vpop.xlane.xlu0 %2715  ;;  %4499 = vpow2.f32 %v2761_v57 }
 0x794   : > { %2773 = vadd.xlane.f32.xlu1 %v6125_v30  ;;  %v2735_v26 = vsub.f32 %v6100_v10, %v2716_v50  ;;  %4501 = vpow2.f32 %v2759_v12 }
 0x795   : > { %v6128_v49 = vpop.eup %4489 }
 0x796   : > { %2779 = vadd.xlane.f32.xlu0 %v6128_v49  ;;  %v2763_v7 = vmul.f32 1.442695, %v2735_v26 }
 0x797   : > { %v6131_v55 = vpop.eup %4491  ;;  %v2858_v51 = vpop.permute.xlu0 %2857 }
 0x798   : > { %4020 = vmatprep.subr.bf16.mxu0 %v2858_v51  ;;  %2781 = vadd.xlane.f32.xlu1 %v6131_v55  ;;  %v6134_v1 = vpop.eup %4493  ;;  %4503 = vpow2.f32 %v2763_v7 }
 0x799   : > { %4021 = vmatpush3.bf16.msra.mxu0 %v2858_v51 }
 0x79a   : > { %2785 = vadd.xlane.f32.xlu0 %v6134_v1  ;;  %4022 = vmatprep.subr.bf16.mxu0 %v2856_v3 }
 0x79d   : > { %4023 = vmatpush3.bf16.msra.mxu0 %v2856_v3  ;;  %v6149_v54 = vpop.eup %4495  ;;  %v6539_v3 = vpack.c.bf16 %v5992_v15, %v5986_v31 }
 0x79f   : > { %v6152_v10 = vpop.eup %4497 }
 0x7a9   : > { %2851 = vrot.lane.b32.xlu1 %v6509_v58, %s4701_s12 }
 0x7b0   : > { %2853 = vrot.lane.b32.xlu0 %v6505_v17, %s4701_s12  ;;  %v2737_v17 = vsub.f32 %v6097_v45, %v2720_v43  ;;  %v6155_v45 = vpop.eup %4499 }
 0x7b2   : > { %v2767_v39 = vmul.f32 1.442695, %v2737_v17 }
 0x7c2   : > { %v2722_v58 = vpop.xlane.xlu1 %2721 }
 0x7c3   : > { %v2738_v34 = vsub.f32 %v6107_v0, %v2722_v58 }
 0x7c5   : > { %v2769_v20 = vmul.f32 1.442695, %v2738_v34 }
 0x7c6   : > { %v2718_v9 = vpop.xlane.xlu1 %2717 }
 0x7c7   : > { %v2736_v63 = vsub.f32 %v6110_v18, %v2718_v9  ;;  %v6158_v18 = vpop.eup %4501 }
 0x7c8   : > { %v6161_v0 = vpop.eup %4503 }
 0x7c9   : > { %v2765_v48 = vmul.f32 1.442695, %v2736_v63 }
 0x7cb   : > { %4505 = vpow2.f32 %v2765_v48 }
 0x7cc   : > { %4507 = vpow2.f32 %v2767_v39 }
 0x7cd   : > { %2787 = vadd.xlane.f32.xlu1 %v6149_v54  ;;  %4509 = vpow2.f32 %v2769_v20 }
 0x7cf   : > { %2789 = vadd.xlane.f32.xlu0 %v6152_v10 }
 0x7d1   : > { %2793 = vadd.xlane.f32.xlu1 %v6155_v45 }
 0x7d3   : > { %2791 = vadd.xlane.f32.xlu0 %v6158_v18 }
 0x7d7   : > { %2795 = vadd.xlane.f32.xlu0 %v6161_v0 }
 0x7d8   : > { %v6164_v43 = vpop.eup %4505 }
 0x7d9   : > { %2797 = vadd.xlane.f32.xlu1 %v6164_v43  ;;  %v6167_v50 = vpop.eup %4507 }
 0x7da   : > { %v6170_v51 = vpop.eup %4509 }
 0x7db   : > { %2799 = vadd.xlane.f32.xlu0 %v6167_v50 }
 0x7dd   : > { %2801 = vadd.xlane.f32.xlu1 %v6170_v51 }
 0x7ee   : > { %2988 = vrot.lane.b32.xlu1 %v6539_v3, %s4701_s12 }
 0x811   : > { %v2776_v62 = vpop.xlane.xlu1 %2775 }
 0x815   : > { %v2772_v5 = vpop.xlane.xlu1 %2771 }
 0x819   : > { %v2778_v27 = vpop.xlane.xlu1 %2777 }
 0x81a   : > { %4511 = vrcp.f32 %v2778_v27 }
 0x81b   : > { %v2784_v11 = vpop.xlane.xlu0 %2783  ;;  %4513 = vrcp.f32 %v2772_v5 }
 0x81c   : > { %4515 = vrcp.f32 %v2776_v62 }
 0x81d   : > { %v2774_v22 = vpop.xlane.xlu1 %2773 }
 0x81e   : > { %4517 = vrcp.f32 %v2774_v22 }
 0x81f   : > { %v2780_v47 = vpop.xlane.xlu0 %2779 }
 0x820   : > { %4519 = vrcp.f32 %v2780_v47 }
 0x821   : > { %v2782_v57 = vpop.xlane.xlu1 %2781 }
 0x822   : > { %4521 = vrcp.f32 %v2782_v57 }
 0x823   : > { %v2786_v12 = vpop.xlane.xlu0 %2785 }
 0x824   : > { %4523 = vrcp.f32 %v2786_v12 }
 0x825   : > { %4525 = vrcp.f32 %v2784_v11  ;;  %v2852_v15 = vpop.permute.xlu1 %2851 }
 0x827   : > { %v2854_v26 = vpop.permute.xlu0 %2853  ;;  %v4512_v58 = vpop.eup %4511 }
 0x828   : > { %4024 = vmatprep.subr.bf16.mxu0 %v2854_v26  ;;  %v4514_v31 = vpop.eup %4513  ;;  %v2822_v9 = vmul.f32 %v4512_v58, %v6119_v40 }
 0x829   : > { %4025 = vmatpush3.bf16.msra.mxu0 %v2854_v26  ;;  %v4516_v17 = vpop.eup %4515  ;;  %v2819_v34 = vmul.f32 %v4514_v31, %v6116_v28 }
 0x82a   : > { %4026 = vmatprep.subr.bf16.mxu0 %v2852_v15  ;;  %v2821_v48 = vmul.f32 %v4516_v17, %v6113_v2 }
 0x82b   : > { %v4518_v7 = vpop.eup %4517 }
 0x82c   : > { %v2820_v63 = vmul.f32 %v4518_v7, %v6125_v30  ;;  %v2836_v62 = vpack.c.bf16 %v2822_v9, %v2821_v48 }
 0x82d   : > { %v4520_v39 = vpop.eup %4519  ;;  %4027 = vmatpush3.bf16.msra.mxu0 %v2852_v15 }
 0x82e   : > { %v2835_v20 = vpack.c.bf16 %v2820_v63, %v2819_v34  ;;  %v2823_v5 = vmul.f32 %v4520_v39, %v6128_v49 }
 0x82f   : > { %v4522_v3 = vpop.eup %4521 }
 0x830   : > { %4028 = vmatprep.mubr.bf16.mxu0 %v2835_v20  ;;  %v2824_v27 = vmul.f32 %v4522_v3, %v6131_v55 }
 0x831   : > { %v4524_v11 = vpop.eup %4523  ;;  %4029 = vmatmul.mubr.bf16.vlgmr.msra.gmra.mxu0 %v2836_v62 }
 0x832   : > { %v4526_v22 = vpop.eup %4525  ;;  %v2837_v40 = vpack.c.bf16 %v2824_v27, %v2823_v5  ;;  %v2826_v28 = vmul.f32 %v4524_v11, %v6134_v1 }
 0x833   : > { %v2825_v30 = vmul.f32 %v4526_v22, %v6122_v16 }
 0x834   : > { %4032 = vmatprep.mubr.bf16.mxu0 %v2837_v40 }
 0x835   : > { %v2838_v47 = vpack.c.bf16 %v2826_v28, %v2825_v30  ;;  %v4241_v28 = vld [vmem:[#allocation7 + $0x70] sm:$0xff]  }
 0x836   : > { %v4242_v30 = vld [vmem:[#allocation7 + $0x30] sm:$0xff]  }
 0x839   : > { %4033 = vmatmul.mubr.bf16.gmra.mxu0 %v2838_v47  ;;  %v4245_v47 = vld [vmem:[#allocation7 + $0x60] sm:$0xff]  }
 0x856   : > { %v2788_v2 = vpop.xlane.xlu1 %2787 }
 0x857   : > { %4527 = vrcp.f32 %v2788_v2  ;;  %v4246_v2 = vld [vmem:[#allocation7 + $0x20] sm:$0xff]  }
 0x858   : > { %v2790_v57 = vpop.xlane.xlu0 %2789 }
 0x859   : > { %4529 = vrcp.f32 %v2790_v57  ;;  %v4249_v57 = vld [vmem:[#allocation7 + $0x50] sm:$0xff]  }
 0x85a   : > { %v2794_v12 = vpop.xlane.xlu1 %2793 }
 0x85b   : > { %4531 = vrcp.f32 %v2794_v12  ;;  %v4250_v12 = vld [vmem:[#allocation7 + $0x10] sm:$0xff]  }
 0x85c   : > { %v2792_v49 = vpop.xlane.xlu0 %2791 }
 0x85d   : > { %4533 = vrcp.f32 %v2792_v49  ;;  %v4251_v49 = vld [vmem:[#allocation7 + $0x48] sm:$0xff]  }
 0x860   : > { %v2796_v55 = vpop.xlane.xlu0 %2795 }
 0x861   : > { %4535 = vrcp.f32 %v2796_v55  ;;  %v4252_v55 = vld [vmem:[#allocation7 + $0x8] sm:$0xff]  }
 0x862   : > { %v2798_v26 = vpop.xlane.xlu1 %2797 }
 0x863   : > { %4537 = vrcp.f32 %v2798_v26  ;;  %v4253_v26 = vld [vmem:[#allocation7 + $0x40] sm:$0xff]  }
 0x864   : > { %v4528_v58 = vpop.eup %4527  ;;  %v2800_v31 = vpop.xlane.xlu0 %2799 }
 0x865   : > { %4539 = vrcp.f32 %v2800_v31  ;;  %v2827_v16 = vmul.f32 %v4528_v58, %v6149_v54  ;;  %v4254_v58 = vld [vmem:[#allocation7] sm:$0xff]  }
 0x866   : > { %v4530_v1 = vpop.eup %4529  ;;  %v2802_v15 = vpop.xlane.xlu1 %2801 }
 0x867   : > { %4541 = vrcp.f32 %v2802_v15  ;;  %v2828_v17 = vmul.f32 %v4530_v1, %v6152_v10 }
 0x868   : > { %v4532_v7 = vpop.eup %4531 }
 0x869   : > { %v2839_v9 = vpack.c.bf16 %v2828_v17, %v2827_v16  ;;  %v2830_v39 = vmul.f32 %v4532_v7, %v6155_v45  ;;  %v4240_v45 = vld [vmem:[#allocation7 + $0x38] sm:$0xff]  }
 0x86a   : > { %v4534_v34 = vpop.eup %4533 }
 0x86b   : > { %4036 = vmatprep.mubr.bf16.mxu0 %v2839_v9  ;;  %v2829_v63 = vmul.f32 %v4534_v34, %v6158_v18  ;;  %v4239_v18 = vld [vmem:[#allocation7 + $0x78] sm:$0xff]  }
 0x86c   : > { %3724 = vmatprep.subr.bf16.mxu0 %v4239_v18 }
 0x86d   : > { %v2840_v48 = vpack.c.bf16 %v2830_v39, %v2829_v63  ;;  %3725 = vmatpush3.bf16.msra.mxu0 %v4240_v45  ;;  %v6540_v39 = vpack.c.bf16 %v5988_v61, %v5982_v32  ;;  %v6543_v32 = vpack.c.bf16 %v6020_v37, %v6014_v52  ;;  %v6544_v61 = vpack.c.bf16 %v6016_v25, %v6010_v21 }
 0x86e   : > { %v4536_v20 = vpop.eup %4535  ;;  %3726 = vmatprep.subr.bf16.mxu0 %v4241_v28  ;;  %v6548_v45 = vpack.c.bf16 %v5915_v8, %v5907_v35  ;;  %v6551_v35 = vpack.c.bf16 %v6057_v14, %v6051_v41  ;;  %v6556_v41 = vld [vmem:[#allocation18_spill] sm:$0xff] }
 0x86f   : > { %4037 = vmatmul.mubr.bf16.gmra.mxu0 %v2840_v48  ;;  %v2831_v62 = vmul.f32 %v4536_v20, %v6161_v0  ;;  %v4243_v0 = vld [vmem:[#allocation7 + $0x68] sm:$0xff]  }
 0x870   : > { %v4538_v3 = vpop.eup %4537 }
 0x871   : > { %v2832_v5 = vmul.f32 %v4538_v3, %v6164_v43  ;;  %3727 = vmatpush3.bf16.msra.mxu0 %v4242_v30  ;;  %v4244_v43 = vld [vmem:[#allocation7 + $0x28] sm:$0xff]   ;;  %v6541_v3 = vpack.c.bf16 %v6006_v46, %v6000_v42  ;;  %v6545_v42 = vpack.c.bf16 %v6033_v44, %v6027_v33  ;;  %v6549_v30 = vpack.c.bf16 %v6041_v13, %v6037_v24 }
 0x872   : > { %v4540_v27 = vpop.eup %4539  ;;  %3728 = vmatprep.subr.bf16.mxu0 %v4243_v0  ;;  %v6552_v24 = vpack.c.bf16 %v5931_v36, %v5923_v6  ;;  %v6559_v6 = vld [vmem:[#allocation40_spill] sm:$0xff] }
 0x873   : > { %v2841_v54 = vpack.c.bf16 %v2832_v5, %v2831_v62  ;;  %v2833_v10 = vmul.f32 %v4540_v27, %v6167_v50  ;;  %v4247_v50 = vld [vmem:[#allocation7 + $0x58] sm:$0xff]   ;;  %v6542_v5 = vpack.c.bf16 %v6002_v53, %v5996_v38  ;;  %v6546_v38 = vpack.c.bf16 %v6029_v4, %v6025_v19  ;;  %v2989_v19 = vpop.permute.xlu1 %2988 }
 0x874   : > { %v4542_v11 = vpop.eup %4541  ;;  %v3030_v28 = vsel %vm1211_vm0, %v6548_v45, %v2989_v19  ;;  %v6580_v19 = vld [vmem:[#allocation38_spill] sm:$0xff] }
 0x875   : > { %4040 = vmatprep.mubr.bf16.mxu0 %v2841_v54  ;;  %v2834_v22 = vmul.f32 %v4542_v11, %v6170_v51  ;;  %3729 = vmatpush3.bf16.msra.mxu0 %v4244_v43  ;;  %v4248_v51 = vld [vmem:[#allocation7 + $0x18] sm:$0xff]  }
 0x876   : > { %3730 = vmatprep.subr.bf16.mxu0 %v4245_v47 }
 0x877   : > { %v2842_v40 = vpack.c.bf16 %v2834_v22, %v2833_v10 }
 0x879   : > { %4041 = vmatmul.mubr.bf16.gmra.mxu0 %v2842_v40  ;;  %v6547_v40 = vpack.c.bf16 %v6045_v59, %v6039_v23  ;;  %v6550_v23 = vpack.c.bf16 %v5909_v56, %v5905_v29 }
 0x87a   : > { %3731 = vmatpush3.bf16.msra.mxu0 %v4246_v2 }
 0x87b   : > { %3732 = vmatprep.subr.bf16.mxu0 %v4247_v50 }
 0x87e   : > { %3733 = vmatpush3.bf16.msra.mxu0 %v4248_v51  ;;  %v6553_v51 = vld [vmem:[#allocation27_spill] sm:$0xff] }
 0x87f   : > { %3734 = vmatprep.subr.bf16.mxu0 %v4249_v57  ;;  %v6554_v29 = vpack.c.bf16 %v6053_v60, %v6553_v51 }
 0x882   : > { %3735 = vmatpush3.bf16.msra.mxu0 %v4250_v12  ;;  %v6555_v12 = vld [vmem:[#allocation17_spill] sm:$0xff] }
 0x883   : > { %3736 = vmatprep.subr.bf16.mxu0 %v4251_v49  ;;  %v6557_v14 = vpack.c.bf16 %v6555_v12, %v6556_v41 }
 0x886   : > { %3737 = vmatpush3.bf16.msra.mxu0 %v4252_v55 }
 0x887   : > { %3738 = vmatprep.subr.bf16.mxu0 %v4253_v26 }
 0x88a   : > { %3739 = vmatpush3.bf16.msra.mxu0 %v4254_v58  ;;  %v6558_v58 = vld [vmem:[#allocation25_spill] sm:$0xff] }
 0x88b   : > { %v6560_v36 = vpack.c.bf16 %v6558_v58, %v6559_v6 }
 0x8f1   : > { %v4030_v31 = vpop.f32.mrf.mxu0 }
 0x8f3   : > { %v2909_v1 = vpop.f32.mrf.mxu0 }
 0x8f5   : > { %v4031_v15 = vpop.f32.mrf.mxu0 }
 0x8f6   : > { %v2973_v16 = vpack.c.bf16 %v4031_v15, %v4030_v31  ;;  %v6562_v15 = vld [vmem:[#allocation35_spill] sm:$0xff] }
 0x8f7   : > { %v2912_v17 = vpop.f32.mrf.mxu0 }
 0x8f8   : > { %v2972_v7 = vpack.c.bf16 %v2912_v17, %v2909_v1  ;;  %3014 = vrot.lane.b32.xlu1 %v2973_v16, %s4701_s12  ;;  %v6561_v1 = vld [vmem:[#allocation37_spill] sm:$0xff] }
 0x8f9   : > { %v4034_v9 = vpop.f32.mrf.mxu0  ;;  %v6563_v60 = vpack.c.bf16 %v6561_v1, %v6562_v15 }
 0x8fa   : > { %3012 = vrot.lane.b32.xlu0 %v2972_v7, %s4701_s12  ;;  %v6564_v7 = vld [vmem:[#allocation41_spill] sm:$0xff] }
 0x8fb   : > { %v2925_v34 = vpop.f32.mrf.mxu0 }
 0x8fd   : > { %v4035_v63 = vpop.f32.mrf.mxu0 }
 0x8fe   : > { %2990 = vrot.lane.b32.xlu0 %v6540_v39, %s4701_s12  ;;  %v2975_v62 = vpack.c.bf16 %v4035_v63, %v4034_v9  ;;  %v6565_v9 = vld [vmem:[#allocation26_spill] sm:$0xff] }
 0x8ff   : > { %v2928_v48 = vpop.f32.mrf.mxu0 }
 0x900   : > { %v2974_v20 = vpack.c.bf16 %v2928_v48, %v2925_v34  ;;  %v6566_v34 = vpack.c.bf16 %v6564_v7, %v6565_v9  ;;  %v6567_v48 = vld [vmem:[#allocation36_spill] sm:$0xff] }
 0x902   : > { %2992 = vrot.lane.b32.xlu0 %v6541_v3, %s4701_s12  ;;  %3016 = vrot.lane.b32.xlu1 %v2974_v20, %s4701_s12  ;;  %v6568_v20 = vld [vmem:[#allocation34_spill] sm:$0xff] }
 0x903   : > { %v6569_v3 = vpack.c.bf16 %v6567_v48, %v6568_v20 }
 0x906   : > { %2994 = vrot.lane.b32.xlu0 %v6542_v5, %s4701_s12  ;;  %3018 = vrot.lane.b32.xlu1 %v2975_v62, %s4701_s12 }
 0x90a   : > { %2996 = vrot.lane.b32.xlu0 %v6543_v32, %s4701_s12  ;;  %v6570_v32 = vld [vmem:[#allocation42_spill] sm:$0xff] }
 0x90e   : > { %2998 = vrot.lane.b32.xlu0 %v6544_v61, %s4701_s12  ;;  %v6571_v61 = vld [vmem:[#allocation19_spill] sm:$0xff] }
 0x912   : > { %3000 = vrot.lane.b32.xlu0 %v6545_v42, %s4701_s12  ;;  %v6572_v42 = vpack.c.bf16 %v6570_v32, %v6571_v61 }
 0x916   : > { %3002 = vrot.lane.b32.xlu0 %v6546_v38, %s4701_s12 }
 0x92f   : > { %v4038_v53 = vpop.f32.mrf.mxu0 }
 0x931   : > { %v2941_v46 = vpop.f32.mrf.mxu0 }
 0x933   : > { %v4039_v27 = vpop.f32.mrf.mxu0 }
 0x934   : > { %v2977_v21 = vpack.c.bf16 %v4039_v27, %v4038_v53  ;;  %v6573_v27 = vld [vmem:[#allocation39_spill] sm:$0xff] }
 0x935   : > { %v2944_v52 = vpop.f32.mrf.mxu0 }
 0x936   : > { %v2976_v37 = vpack.c.bf16 %v2944_v52, %v2941_v46  ;;  %v6574_v52 = vld [vmem:[#allocation23_spill] sm:$0xff] }
 0x938   : > { %3020 = vrot.lane.b32.xlu1 %v2976_v37, %s4701_s12  ;;  %v6575_v37 = vpack.c.bf16 %v6573_v27, %v6574_v52 }
 0x939   : > { %v4042_v54 = vpop.f32.mrf.mxu0 }
 0x93b   : > { %v2957_v25 = vpop.f32.mrf.mxu0 }
 0x93c   : > { %3022 = vrot.lane.b32.xlu1 %v2977_v21, %s4701_s12  ;;  %v6576_v21 = vld [vmem:[#allocation44_spill] sm:$0xff] }
 0x93d   : > { %v4043_v11 = vpop.f32.mrf.mxu0 }
 0x93e   : > { %v2979_v10 = vpack.c.bf16 %v4043_v11, %v4042_v54 }
 0x93f   : > { %v2960_v33 = vpop.f32.mrf.mxu0 }
 0x940   : > { %v2978_v44 = vpack.c.bf16 %v2960_v33, %v2957_v25  ;;  %v6577_v25 = vld [vmem:[#allocation24_spill] sm:$0xff] }
 0x941   : > { %v6578_v11 = vpack.c.bf16 %v6576_v21, %v6577_v25 }
 0x942   : > { %3024 = vrot.lane.b32.xlu1 %v2978_v44, %s4701_s12 }
 0x946   : > { %3026 = vrot.lane.b32.xlu1 %v2979_v10, %s4701_s12  ;;  %v6579_v10 = vld [vmem:[#allocation28_spill] sm:$0xff] }
 0x96a   : > { %v3015_v4 = vpop.permute.xlu1 %3014 }
 0x96b   : > { %v3066_v0 = vsel %vm1211_vm0, %v6549_v30, %v3015_v4  ;;  %v6581_v4 = vpack.c.bf16 %v6579_v10, %v6580_v19 }
 0x96c   : > { %v3013_v22 = vpop.permute.xlu0 %3012 }
 0x96d   : > { %v3062_v18 = vsel %vm1211_vm0, %v6547_v40, %v3013_v22 }
 0x96e   : > { %3252 = vmatprep.mubr.bf16.mxu0 %v3062_v18 }
 0x96f   : > { %3253 = vmatmul.mubr.bf16.vlgmr.msra.gmra.mxu0 %v3030_v28 }
 0x970   : > { %3260 = vmatprep.mubr.bf16.mxu0 %v3066_v0  ;;  %v2991_v43 = vpop.permute.xlu0 %2990 }
 0x971   : > { %v3034_v59 = vsel %vm1211_vm0, %v6550_v23, %v2991_v43 }
 0x974   : > { %v3017_v47 = vpop.permute.xlu1 %3016  ;;  %v2993_v2 = vpop.permute.xlu0 %2992 }
 0x975   : > { %v3070_v8 = vsel %vm1211_vm0, %v6551_v35, %v3017_v47  ;;  %v3038_v13 = vsel %vm1211_vm0, %v6552_v24, %v2993_v2 }
 0x977   : > { %3261 = vmatmul.mubr.bf16.gmra.mxu0 %v3034_v59 }
 0x978   : > { %3268 = vmatprep.mubr.bf16.mxu0 %v3070_v8  ;;  %v3019_v50 = vpop.permute.xlu1 %3018  ;;  %v2995_v57 = vpop.permute.xlu0 %2994 }
 0x979   : > { %v3074_v56 = vsel %vm1211_vm0, %v6554_v29, %v3019_v50  ;;  %v3042_v49 = vsel %vm1211_vm0, %v6557_v14, %v2995_v57 }
 0x97c   : > { %v2997_v55 = vpop.permute.xlu0 %2996 }
 0x97d   : > { %v3046_v16 = vsel %vm1211_vm0, %v6563_v60, %v2997_v55 }
 0x97f   : > { %3269 = vmatmul.mubr.bf16.gmra.mxu0 %v3038_v13 }
 0x980   : > { %3276 = vmatprep.mubr.bf16.mxu0 %v3074_v56  ;;  %v2999_v39 = vpop.permute.xlu0 %2998 }
 0x981   : > { %v3050_v62 = vsel %vm1211_vm0, %v6569_v3, %v2999_v39 }
 0x984   : > { %v3001_v53 = vpop.permute.xlu0 %3000 }
 0x985   : > { %v3054_v54 = vsel %vm1211_vm0, %v6575_v37, %v3001_v53 }
 0x987   : > { %3277 = vmatmul.mubr.bf16.gmra.mxu0 %v3042_v49 }
 0x988   : > { %v3003_v44 = vpop.permute.xlu0 %3002 }
 0x989   : > { %v3058_v22 = vsel %vm1211_vm0, %v6581_v4, %v3003_v44 }
 0x9aa   : > { %v3021_v26 = vpop.permute.xlu1 %3020 }
 0x9ab   : > { %v3078_v31 = vsel %vm1211_vm0, %v6560_v36, %v3021_v26 }
 0x9ac   : > { %3284 = vmatprep.mubr.bf16.mxu0 %v3078_v31 }
 0x9ad   : > { %3285 = vmatmul.mubr.bf16.gmra.mxu0 %v3046_v16 }
 0x9ae   : > { %v3023_v17 = vpop.permute.xlu1 %3022 }
 0x9af   : > { %v3082_v63 = vsel %vm1211_vm0, %v6566_v34, %v3023_v17 }
 0x9b0   : > { %3292 = vmatprep.mubr.bf16.mxu0 %v3082_v63 }
 0x9b4   : > { %v3025_v5 = vpop.permute.xlu1 %3024 }
 0x9b5   : > { %3293 = vmatmul.mubr.bf16.gmra.mxu0 %v3050_v62  ;;  %v3086_v38 = vsel %vm1211_vm0, %v6572_v42, %v3025_v5 }
 0x9b6   : > { %3300 = vmatprep.mubr.bf16.mxu0 %v3086_v38 }
 0x9b8   : > { %v3027_v46 = vpop.permute.xlu1 %3026 }
 0x9b9   : > { %v3090_v33 = vsel %vm1211_vm0, %v6578_v11, %v3027_v46 }
 0x9bd   : > { %3301 = vmatmul.mubr.bf16.gmra.mxu0 %v3054_v54 }
 0x9be   : > { %3308 = vmatprep.mubr.bf16.mxu0 %v3090_v33 }
 0x9c5   : > { %3309 = vmatmul.mubr.bf16.gmra.mxu0 %v3058_v22 }
 0xa2f   : > { %v3740_v40 = vpop.f32.mrf.mxu0 }
 0xa31   : > { %v3741_v18 = vpop.f32.mrf.mxu0 }
 0xa32   : > { %v3742_v45 = vadd.f32 %v3741_v18, %v3740_v40 }
 0xa33   : > { %v3743_v28 = vpop.f32.mrf.mxu0 }
 0xa34   : > { %3317 = vst [vmem:[%s6294_s16] sm:$0xff] %v3742_v45 }
 0xa35   : > { %v3744_v30 = vpop.f32.mrf.mxu0 }
 0xa36   : > { %v3745_v0 = vadd.f32 %v3744_v30, %v3743_v28 }
 0xa37   : > { %v3746_v43 = vpop.f32.mrf.mxu0 }
 0xa38   : > { %3318 = vst [vmem:[%s6294_s16 + $0x8] sm:$0xff] %v3745_v0 }
 0xa39   : > { %v3747_v47 = vpop.f32.mrf.mxu0 }
 0xa3a   : > { %v3748_v23 = vadd.f32 %v3747_v47, %v3746_v43 }
 0xa3b   : > { %v3749_v59 = vpop.f32.mrf.mxu0 }
 0xa3c   : > { %3319 = vst [vmem:[%s6294_s16 + $0x10] sm:$0xff] %v3748_v23 }
 0xa3d   : > { %v3750_v35 = vpop.f32.mrf.mxu0 }
 0xa3e   : > { %v3751_v8 = vadd.f32 %v3750_v35, %v3749_v59 }
 0xa3f   : > { %v3752_v2 = vpop.f32.mrf.mxu0 }
 0xa40   : > { %3320 = vst [vmem:[%s6294_s16 + $0x18] sm:$0xff] %v3751_v8 }
 0xa41   : > { %v3753_v50 = vpop.f32.mrf.mxu0 }
 0xa42   : > { %v3754_v24 = vadd.f32 %v3753_v50, %v3752_v2 }
 0xa43   : > { %v3755_v13 = vpop.f32.mrf.mxu0 }
 0xa44   : > { %3321 = vst [vmem:[%s6294_s16 + $0x20] sm:$0xff] %v3754_v24 }
 0xa45   : > { %v3756_v51 = vpop.f32.mrf.mxu0 }
 0xa46   : > { %v3757_v29 = vadd.f32 %v3756_v51, %v3755_v13 }
 0xa47   : > { %v3758_v56 = vpop.f32.mrf.mxu0 }
 0xa48   : > { %3322 = vst [vmem:[%s6294_s16 + $0x28] sm:$0xff] %v3757_v29 }
 0xa49   : > { %v3759_v57 = vpop.f32.mrf.mxu0 }
 0xa4a   : > { %v3760_v12 = vadd.f32 %v3759_v57, %v3758_v56 }
 0xa4b   : > { %v3761_v41 = vpop.f32.mrf.mxu0 }
 0xa4c   : > { %3323 = vst [vmem:[%s6294_s16 + $0x30] sm:$0xff] %v3760_v12 }
 0xa4d   : > { %v3762_v14 = vpop.f32.mrf.mxu0 }
 0xa4e   : > { %v3763_v49 = vadd.f32 %v3762_v14, %v3761_v41 }
 0xa50   : > { %3324 = vst [vmem:[%s6294_s16 + $0x38] sm:$0xff] %v3763_v49 }
 0xa6d   : > { %v3764_v55 = vpop.f32.mrf.mxu0 }
 0xa6f   : > { %v3765_v26 = vpop.f32.mrf.mxu0 }
 0xa70   : > { %v3766_v58 = vadd.f32 %v3765_v26, %v3764_v55 }
 0xa71   : > { %v3767_v6 = vpop.f32.mrf.mxu0 }
 0xa72   : > { %3325 = vst [vmem:[%s6294_s16 + $0x40] sm:$0xff] %v3766_v58 }
 0xa73   : > { %v3768_v36 = vpop.f32.mrf.mxu0 }
 0xa74   : > { %v3769_v31 = vadd.f32 %v3768_v36, %v3767_v6 }
 0xa75   : > { %v3770_v1 = vpop.f32.mrf.mxu0 }
 0xa76   : > { %3326 = vst [vmem:[%s6294_s16 + $0x48] sm:$0xff] %v3769_v31 }
 0xa77   : > { %v3771_v15 = vpop.f32.mrf.mxu0 }
 0xa78   : > { %v3772_v60 = vadd.f32 %v3771_v15, %v3770_v1 }
 0xa79   : > { %v3773_v16 = vpop.f32.mrf.mxu0 }
 0xa7a   : > { %3327 = vst [vmem:[%s6294_s16 + $0x50] sm:$0xff] %v3772_v60 }
 0xa7b   : > { %v3774_v17 = vpop.f32.mrf.mxu0 }
 0xa7c   : > { %v3775_v7 = vadd.f32 %v3774_v17, %v3773_v16 }
 0xa7d   : > { %v3776_v9 = vpop.f32.mrf.mxu0 }
 0xa7e   : > { %3328 = vst [vmem:[%s6294_s16 + $0x58] sm:$0xff] %v3775_v7 }
 0xa7f   : > { %v3777_v34 = vpop.f32.mrf.mxu0 }
 0xa80   : > { %v3778_v63 = vadd.f32 %v3777_v34, %v3776_v9 }
 0xa81   : > { %v3779_v39 = vpop.f32.mrf.mxu0 }
 0xa82   : > { %3329 = vst [vmem:[%s6294_s16 + $0x60] sm:$0xff] %v3778_v63 }
 0xa83   : > { %v3780_v48 = vpop.f32.mrf.mxu0 }
 0xa84   : > { %v3781_v20 = vadd.f32 %v3780_v48, %v3779_v39 }
 0xa85   : > { %v3782_v3 = vpop.f32.mrf.mxu0 }
 0xa86   : > { %3330 = vst [vmem:[%s6294_s16 + $0x68] sm:$0xff] %v3781_v20 }
 0xa87   : > { %v3783_v62 = vpop.f32.mrf.mxu0 }
 0xa88   : > { %v3784_v5 = vadd.f32 %v3783_v62, %v3782_v3 }
 0xa89   : > { %v3785_v32 = vpop.f32.mrf.mxu0 }
 0xa8a   : > { %3331 = vst [vmem:[%s6294_s16 + $0x70] sm:$0xff] %v3784_v5 }
 0xa8b   : > { %v3786_v61 = vpop.f32.mrf.mxu0 }
 0xa8c   : > { %v3787_v42 = vadd.f32 %v3786_v61, %v3785_v32 }
 0xa8e   : > { %3332 = vst [vmem:[%s6294_s16 + $0x78] sm:$0xff] %v3787_v42 }
 0xa8f   : > { %4636 = shalt.err (!%p4633_p9)
}
 0xa90   : > { %s4637_s26 = scalar_lea.hbm %s6316_s23, 2048  ;;  %s4641_s12 = scalar_lea.hbm %s6367_s5, 4096 }
 0xa91   : > { %p4638_p13 = scmp.ne.s32.totalorder %s6316_s23, %s4637_s26  ;;  %p4642_p4 = scmp.lt.s32.totalorder %s6316_s23, %s6367_s5 }
 0xa92   : > { %p4643_p8 = scmp.lt.s32.totalorder %s4641_s12, %s4637_s26 }
 0xa93   : > { %p4639_p5 = pnand %p4638_p13, %p6582_p10 }
 0xa94   : > { %p4644_p7 = por %p4643_p8, %p4642_p4 }
 0xa95   : > { %p4640_p0 = pneg %p4639_p5 }
 0xa97   : > { %p4645_p11 = pnand %p4644_p7, %p4640_p0 }
 0xa99   : > { %4648 = shalt.err (!%p4645_p11)
}
 0xa9a   : > { %s4703_s9 = smov 128   ;;  %s4704_s11 = smov 8  }
 0xa9b   : > { %4102 = dma.vmem_to_hbm [thread:$0]  (%p6582_p10), %s6318_s30, 2048, %s6316_s23, %s3334_s13, %s4703_s9, %s4703_s9, %s4704_s11  }
 0xa9c PF: > { %s3362_s27 = sand.u32 1, %s4679_s18   ;;  %p6583_p1 = scmp.ne.s32.totalorder %s6427_s25, 0 }
 0xa9d   : > { %p6584_p2 = scmp.ge.s32.totalorder %s4691_s21, 2  ;;  %s3363_s7 = scalar_lea.sflag [#allocation4], %s3362_s27 }
 0xa9f   : > { %p4116_p6 = pnand %p6584_p2, %p6583_p1 }
 0xaa1   : > { %p4117_p12 = pneg %p4116_p6 }
 0xaa3   : > { %4674 = dma.done.wait (%p4117_p12), %s3363_s7, 2048  }
 0xaa4   : > { %4676 = vsyncadd (%p4117_p12), %s3363_s7, 4294965248  ;;  %p19_p3 = scmp.ge.s32.totalorder %s4810_s17, 4   ;;  %s6585_s18 = smov %s4683_s19 }
 0xaa5   : > { %s6586_s19 = smov %s4687_s20  ;;  %s6587_s20 = smov %s4819_s28 }
 0xaa6   : > { %s6588_s21 = smov %s4810_s17  ;;  %21 = sbr.rel (!%p19_p3) target bundleno = 6 (0x6), region = 93 }
 0xaab   :  { %3368 = vsyncpa [#allocation3], 1 }
 0xaac   :  { %3370 = vsyncpa [#allocation3 + $0x1], 1 }
 0xaad   :  { %3371 = vsyncpa [#allocation6], 1 }
 0xaae   :  { %3372 = vsyncpa [#allocation4], 1 }
 0xaaf   :  { %3374 = vsyncpa [#allocation4 + $0x1], 1 }

</bundles_post_ra>
